<compile_context>
chip_gen: v6e
topology: v6e:2x2x1
jax: 0.10.0
libtpu: 0.0.40
codegen_flags: <defaults>
</compile_context>

<pallas_src>
import functools
import math

import jax
import jax.numpy as jnp
from jax.experimental import pallas as pl
from jax.experimental.pallas import tpu as pltpu

# ---- small test configuration (consistent with the module; emb scaled down) ----
IN_DIM = 156       # patch_embed input features (hard-coded in the PyTorch module)
EMB = 128          # emb_size
NUM_HEADS = 4      # head_dim = 32 (even, divisible by 4 as the nested RoPE requires)
MLP_DIM = 256
DEPTH = 2
OUT_DIM = 192      # out_proj_dim


def _gelu_exact(v):
    # nn.GELU() default: exact erf-based GELU
    return 0.5 * v * (1.0 + jax.lax.erf(v * (1.0 / math.sqrt(2.0))))


def _layernorm(v, g, b):
    mu = jnp.mean(v, axis=-1, keepdims=True)
    c = v - mu
    var = jnp.mean(c * c, axis=-1, keepdims=True)
    return c * jax.lax.rsqrt(var + 1e-5) * g + b


# ------------------------------- RoPE host-side tables -------------------------------
def _rope_tables(L, hd):
    inv_freq = 1.0 / (10000.0 ** (jnp.arange(0, hd, 2, dtype=jnp.float32) / hd))
    pos = jnp.arange(L, dtype=jnp.float32)
    sinusoid = pos[:, None] * inv_freq[None, :]          # (L, hd//2)
    return jnp.cos(sinusoid), jnp.sin(sinusoid)


def _rope_lane_tables(B, L, H, hd):
    """cos/sin laid out lane-dense over the full (B*L, E) activation (rows are b-major)."""
    cos, sin = _rope_tables(L, hd)                       # (L, hd//2)
    cos_h = jnp.concatenate([cos, cos], axis=-1)         # (L, hd): same table for both halves
    sin_h = jnp.concatenate([sin, sin], axis=-1)
    cos_e = jnp.tile(cos_h, (1, H))                      # (L, E): same table for every head
    sin_e = jnp.tile(sin_h, (1, H))
    return jnp.tile(cos_e, (B, 1)), jnp.tile(sin_e, (B, 1))   # (B*L, E)


def _rope_rotation_matrix(H, hd):
    """Signed block-diagonal permutation R such that, per head, [a,b,c,d] @ R = [-b,a,-d,c]
    (the nested rotate_half of the PyTorch module, sign included)."""
    qtr = hd // 4
    eye = jnp.eye(qtr, dtype=jnp.float32)
    z = jnp.zeros((qtr, qtr), jnp.float32)
    head = jnp.block([
        [z,    eye,  z,    z],
        [-eye, z,    z,    z],
        [z,    z,    z,    eye],
        [z,    z,    -eye, z],
    ])                                                    # (hd, hd)
    zero_hd = jnp.zeros((hd, hd), jnp.float32)
    blocks = [[head if i == j else zero_hd for j in range(H)] for i in range(H)]
    return jnp.block(blocks)                              # (E, E)


# ------------------------------- single fused kernel -------------------------------
def _make_speechsim_kernel(B, L, H, depth):
    def kernel(x_ref, w_pe_ref,
               ln1_g_ref, ln1_b_ref, w_qkv_ref, b_qkv_ref, w_o_ref, b_o_ref,
               ln2_g_ref, ln2_b_ref, w_1_ref, b_1_ref, w_2_ref, b_2_ref,
               cos_ref, sin_ref, rot_ref, w_head_ref, b_head_ref, o_ref):
        f32 = jnp.float32
        E = w_pe_ref.shape[1]
        hd = E // H
        scale = 1.0 / math.sqrt(hd)

        cos = cos_ref[...]                                # (B*L, E)
        sin = sin_ref[...]
        rot = rot_ref[...]                                # (E, E) signed permutation

        # patch_embed (no bias)
        h = jnp.dot(x_ref[...], w_pe_ref[...], preferred_element_type=f32)   # (B*L, E)

        def rope(t):
            # lane-dense RoPE: nested rotate_half folded into one MXU matmul
            return t * cos + jnp.dot(t, rot, preferred_element_type=f32) * sin

        for d in range(depth):
            # ---------- attention sublayer: x + out_proj(attn(ln1(x))) ----------
            xn = _layernorm(h, ln1_g_ref[d], ln1_b_ref[d])
            qkv = jnp.dot(xn, w_qkv_ref[d], preferred_element_type=f32) + b_qkv_ref[d]
            q = rope(qkv[:, :E])
            k = rope(qkv[:, E:2 * E])
            v = qkv[:, 2 * E:]

            batch_outs = []
            for b in range(B):
                rows = slice(b * L, (b + 1) * L)
                qb, kb, vb = q[rows], k[rows], v[rows]    # (L, E) each, VMEM-resident
                head_outs = []
                for hh in range(H):
                    lanes = slice(hh * hd, (hh + 1) * hd)
                    qh, kh, vh = qb[:, lanes], kb[:, lanes], vb[:, lanes]
                    s = jax.lax.dot_general(qh, kh, (((1,), (1,)), ((), ())),
                                            preferred_element_type=f32) * scale   # (L, L)
                    s = s - jnp.max(s, axis=-1, keepdims=True)
                    p = jnp.exp(s)
                    p = p / jnp.sum(p, axis=-1, keepdims=True)
                    # attention dropout: identity at inference
                    head_outs.append(jnp.dot(p, vh, preferred_element_type=f32))
                batch_outs.append(jnp.concatenate(head_outs, axis=-1))            # (L, E)
            attn = jnp.concatenate(batch_outs, axis=0)                            # (B*L, E)

            h = h + jnp.dot(attn, w_o_ref[d], preferred_element_type=f32) + b_o_ref[d]

            # ---------- MLP sublayer: x + mlp(ln2(x)) ----------
            xn2 = _layernorm(h, ln2_g_ref[d], ln2_b_ref[d])
            m = _gelu_exact(jnp.dot(xn2, w_1_ref[d], preferred_element_type=f32) + b_1_ref[d])
            h = h + jnp.dot(m, w_2_ref[d], preferred_element_type=f32) + b_2_ref[d]

        # ---------- mean pool over sequence + output head ----------
        pooled = jnp.concatenate(
            [jnp.mean(h[b * L:(b + 1) * L, :], axis=0, keepdims=True) for b in range(B)],
            axis=0)                                                               # (B, E)
        y = jnp.dot(pooled, w_head_ref[...], preferred_element_type=f32) + b_head_ref[...]
        o_ref[...] = y.astype(o_ref.dtype)

    return kernel


# ----------------------------------- wrapper -------------------------------------
def speechsim_forward(params, x, *, num_heads):
    B, L, Fin = x.shape
    E = params["w_pe"].shape[1]
    H = num_heads
    hd = E // H
    assert E % H == 0 and hd % 4 == 0, "nested RoPE requires head_dim % 4 == 0"
    depth = len(params["blocks"])
    mlp = params["blocks"][0]["w_1"].shape[1]
    out_dim = params["w_head"].shape[1]
    M = B * L

    cos_bl, sin_bl = _rope_lane_tables(B, L, H, hd)       # (M, E)
    rot = _rope_rotation_matrix(H, hd)                    # (E, E)

    def stack(name):
        return jnp.stack([blk[name] for blk in params["blocks"]], axis=0)

    c2 = lambda i: (0, 0)
    c3 = lambda i: (0, 0, 0)

    in_specs = [
        pl.BlockSpec((M, Fin), c2),                       # x (flattened rows)
        pl.BlockSpec((Fin, E), c2),                       # w_pe
        pl.BlockSpec((depth, 1, E), c3),                  # ln1_g
        pl.BlockSpec((depth, 1, E), c3),                  # ln1_b
        pl.BlockSpec((depth, E, 3 * E), c3),              # w_qkv
        pl.BlockSpec((depth, 1, 3 * E), c3),              # b_qkv
        pl.BlockSpec((depth, E, E), c3),                  # w_o
        pl.BlockSpec((depth, 1, E), c3),                  # b_o
        pl.BlockSpec((depth, 1, E), c3),                  # ln2_g
        pl.BlockSpec((depth, 1, E), c3),                  # ln2_b
        pl.BlockSpec((depth, E, mlp), c3),                # w_1
        pl.BlockSpec((depth, 1, mlp), c3),                # b_1
        pl.BlockSpec((depth, mlp, E), c3),                # w_2
        pl.BlockSpec((depth, 1, E), c3),                  # b_2
        pl.BlockSpec((M, E), c2),                         # cos
        pl.BlockSpec((M, E), c2),                         # sin
        pl.BlockSpec((E, E), c2),                         # RoPE rotation matrix
        pl.BlockSpec((E, out_dim), c2),                   # w_head
        pl.BlockSpec((1, out_dim), c2),                   # b_head
    ]

    return pl.pallas_call(
        _make_speechsim_kernel(B, L, H, depth),
        out_shape=jax.ShapeDtypeStruct((B, out_dim), x.dtype),
        grid=(1,),
        in_specs=in_specs,
        out_specs=pl.BlockSpec((B, out_dim), c2),
        compiler_params=pltpu.CompilerParams(dimension_semantics=("arbitrary",)),
    )(x.reshape(M, Fin), params["w_pe"],
      stack("ln1_g"), stack("ln1_b"), stack("w_qkv"), stack("b_qkv"),
      stack("w_o"), stack("b_o"),
      stack("ln2_g"), stack("ln2_b"), stack("w_1"), stack("b_1"),
      stack("w_2"), stack("b_2"),
      cos_bl, sin_bl, rot, params["w_head"], params["b_head"])


# ------------------------------- parameter init ----------------------------------
def init_params(key, *, in_dim, emb, mlp, depth, out_dim):
    """Weights stored transposed as [in, out]; init mimics nn.Linear's U(+-1/sqrt(fan_in))."""
    keys = iter(jax.random.split(key, 1 + 8 * depth + 2))

    def lin_w(k, fin, fout):
        bnd = 1.0 / math.sqrt(fin)
        return jax.random.uniform(k, (fin, fout), jnp.float32, -bnd, bnd)

    def lin_b(k, fin, fout):
        bnd = 1.0 / math.sqrt(fin)
        return jax.random.uniform(k, (1, fout), jnp.float32, -bnd, bnd)

    params = {"w_pe": lin_w(next(keys), in_dim, emb), "blocks": []}
    for _ in range(depth):
        params["blocks"].append({
            "ln1_g": jnp.ones((1, emb), jnp.float32),
            "ln1_b": jnp.zeros((1, emb), jnp.float32),
            "w_qkv": lin_w(next(keys), emb, 3 * emb),
            "b_qkv": lin_b(next(keys), emb, 3 * emb),
            "w_o": lin_w(next(keys), emb, emb),
            "b_o": lin_b(next(keys), emb, emb),
            "ln2_g": jnp.ones((1, emb), jnp.float32),
            "ln2_b": jnp.zeros((1, emb), jnp.float32),
            "w_1": lin_w(next(keys), emb, mlp),
            "b_1": lin_b(next(keys), emb, mlp),
            "w_2": lin_w(next(keys), mlp, emb),
            "b_2": lin_b(next(keys), mlp, emb),
        })
    params["w_head"] = lin_w(next(keys), emb, out_dim)
    params["b_head"] = lin_b(next(keys), emb, out_dim)
    return params


# ------------------------------ pure-JAX reference --------------------------------
def speechsim_ref(params, x, *, num_heads):
    B, L, _ = x.shape
    E = params["w_pe"].shape[1]
    H = num_heads
    hd = E // H
    HP = jax.lax.Precision.HIGHEST

    def hdot(a, b):
        return jnp.dot(a, b, precision=HP)

    cos, sin = _rope_tables(L, hd)
    c4 = cos[None, :, None, :]
    s4 = sin[None, :, None, :]

    def rot_half(t):
        half = t.shape[-1] // 2
        return jnp.concatenate([-t[..., half:], t[..., :half]], axis=-1)

    def rope(t):
        t1, t2 = t[..., :hd // 2], t[..., hd // 2:]
        return jnp.concatenate([t1 * c4 + rot_half(t1) * s4,
                                t2 * c4 + rot_half(t2) * s4], axis=-1)

    h = hdot(x, params["w_pe"])
    for p in params["blocks"]:
        xn = _layernorm(h, p["ln1_g"], p["ln1_b"])
        qkv = hdot(xn, p["w_qkv"]) + p["b_qkv"]
        q = qkv[..., :E].reshape(B, L, H, hd)
        k = qkv[..., E:2 * E].reshape(B, L, H, hd)
        v = qkv[..., 2 * E:].reshape(B, L, H, hd)
        q, k = rope(q), rope(k)
        q, k, v = (t.transpose(0, 2, 1, 3) for t in (q, k, v))
        s = jnp.einsum("bhqd,bhkd->bhqk", q, k, precision=HP) / math.sqrt(hd)
        a = jax.nn.softmax(s, axis=-1)
        o = jnp.einsum("bhqk,bhkd->bhqd", a, v, precision=HP)
        o = o.transpose(0, 2, 1, 3).reshape(B, L, E)
        h = h + hdot(o, p["w_o"]) + p["b_o"]
        xn2 = _layernorm(h, p["ln2_g"], p["ln2_b"])
        m = _gelu_exact(hdot(xn2, p["w_1"]) + p["b_1"])
        h = h + hdot(m, p["w_2"]) + p["b_2"]
    pooled = jnp.mean(h, axis=1)
    return hdot(pooled, params["w_head"]) + params["b_head"]


if __name__ == "__main__":
    key = jax.random.PRNGKey(0)
    k_param, k_x = jax.random.split(key)

    B, L = 2, 16
    params = init_params(k_param, in_dim=IN_DIM, emb=EMB, mlp=MLP_DIM,
                         depth=DEPTH, out_dim=OUT_DIM)
    x = jax.random.normal(k_x, (B, L, IN_DIM), jnp.float32)

    fwd = jax.jit(functools.partial(speechsim_forward, num_heads=NUM_HEADS))
    out = jax.block_until_ready(fwd(params, x))

    ref = speechsim_ref(params, x, num_heads=NUM_HEADS)
    assert out.shape == (B, OUT_DIM)
    assert jnp.allclose(out, ref, atol=2e-3, rtol=2e-3), (
        f"mismatch vs reference, max abs diff = {jnp.max(jnp.abs(out - ref))}")

    print("KERNEL_OK")
</pallas_src>

<mosaic_0001>
module attributes {stable_mosaic.version = 11 : i64} {
  func.func @kernel(%arg0: i32, %arg1: memref<32x156xf32, #tpu.memory_space<vmem>>, %arg2: memref<156x128xf32, #tpu.memory_space<vmem>>, %arg3: memref<2x1x128xf32, #tpu.memory_space<vmem>>, %arg4: memref<2x1x128xf32, #tpu.memory_space<vmem>>, %arg5: memref<2x128x384xf32, #tpu.memory_space<vmem>>, %arg6: memref<2x1x384xf32, #tpu.memory_space<vmem>>, %arg7: memref<2x128x128xf32, #tpu.memory_space<vmem>>, %arg8: memref<2x1x128xf32, #tpu.memory_space<vmem>>, %arg9: memref<2x1x128xf32, #tpu.memory_space<vmem>>, %arg10: memref<2x1x128xf32, #tpu.memory_space<vmem>>, %arg11: memref<2x128x256xf32, #tpu.memory_space<vmem>>, %arg12: memref<2x1x256xf32, #tpu.memory_space<vmem>>, %arg13: memref<2x256x128xf32, #tpu.memory_space<vmem>>, %arg14: memref<2x1x128xf32, #tpu.memory_space<vmem>>, %arg15: memref<32x128xf32, #tpu.memory_space<vmem>>, %arg16: memref<32x128xf32, #tpu.memory_space<vmem>>, %arg17: memref<128x128xf32, #tpu.memory_space<vmem>>, %arg18: memref<128x192xf32, #tpu.memory_space<vmem>>, %arg19: memref<1x192xf32, #tpu.memory_space<vmem>>, %arg20: memref<2x192xf32, #tpu.memory_space<vmem>>) attributes {dimension_semantics = [#tpu.dimension_semantics<arbitrary>], iteration_bounds = array<i64: 1>, scalar_prefetch = 0 : i64, scratch_operands = 0 : i64, tpu.core_type = #tpu.core_type<tc>, window_params = [{pipeline_mode = #tpu.pipeline_mode<synchronous>, transform_indices = @transform_0, window_bounds = array<i64: 32, 156>}, {pipeline_mode = #tpu.pipeline_mode<synchronous>, transform_indices = @transform_1, window_bounds = array<i64: 156, 128>}, {pipeline_mode = #tpu.pipeline_mode<synchronous>, transform_indices = @transform_2, window_bounds = array<i64: 2, 1, 128>}, {pipeline_mode = #tpu.pipeline_mode<synchronous>, transform_indices = @transform_3, window_bounds = array<i64: 2, 1, 128>}, {pipeline_mode = #tpu.pipeline_mode<synchronous>, transform_indices = @transform_4, window_bounds = array<i64: 2, 128, 384>}, {pipeline_mode = #tpu.pipeline_mode<synchronous>, transform_indices = @transform_5, window_bounds = array<i64: 2, 1, 384>}, {pipeline_mode = #tpu.pipeline_mode<synchronous>, transform_indices = @transform_6, window_bounds = array<i64: 2, 128, 128>}, {pipeline_mode = #tpu.pipeline_mode<synchronous>, transform_indices = @transform_7, window_bounds = array<i64: 2, 1, 128>}, {pipeline_mode = #tpu.pipeline_mode<synchronous>, transform_indices = @transform_8, window_bounds = array<i64: 2, 1, 128>}, {pipeline_mode = #tpu.pipeline_mode<synchronous>, transform_indices = @transform_9, window_bounds = array<i64: 2, 1, 128>}, {pipeline_mode = #tpu.pipeline_mode<synchronous>, transform_indices = @transform_10, window_bounds = array<i64: 2, 128, 256>}, {pipeline_mode = #tpu.pipeline_mode<synchronous>, transform_indices = @transform_11, window_bounds = array<i64: 2, 1, 256>}, {pipeline_mode = #tpu.pipeline_mode<synchronous>, transform_indices = @transform_12, window_bounds = array<i64: 2, 256, 128>}, {pipeline_mode = #tpu.pipeline_mode<synchronous>, transform_indices = @transform_13, window_bounds = array<i64: 2, 1, 128>}, {pipeline_mode = #tpu.pipeline_mode<synchronous>, transform_indices = @transform_14, window_bounds = array<i64: 32, 128>}, {pipeline_mode = #tpu.pipeline_mode<synchronous>, transform_indices = @transform_15, window_bounds = array<i64: 32, 128>}, {pipeline_mode = #tpu.pipeline_mode<synchronous>, transform_indices = @transform_16, window_bounds = array<i64: 128, 128>}, {pipeline_mode = #tpu.pipeline_mode<synchronous>, transform_indices = @transform_17, window_bounds = array<i64: 128, 192>}, {pipeline_mode = #tpu.pipeline_mode<synchronous>, transform_indices = @transform_18, window_bounds = array<i64: 1, 192>}, {pipeline_mode = #tpu.pipeline_mode<synchronous>, transform_indices = @transform_19, window_bounds = array<i64: 2, 192>}]} {
    %c0 = arith.constant 0 : index
    %c0_0 = arith.constant 0 : index
    %0 = vector.load %arg15[%c0, %c0_0] : memref<32x128xf32, #tpu.memory_space<vmem>>, vector<32x128xf32>
    %c0_1 = arith.constant 0 : index
    %c0_2 = arith.constant 0 : index
    %1 = vector.load %arg16[%c0_1, %c0_2] : memref<32x128xf32, #tpu.memory_space<vmem>>, vector<32x128xf32>
    %c0_3 = arith.constant 0 : index
    %c0_4 = arith.constant 0 : index
    %2 = vector.load %arg17[%c0_3, %c0_4] : memref<128x128xf32, #tpu.memory_space<vmem>>, vector<128x128xf32>
    %c0_5 = arith.constant 0 : index
    %c0_6 = arith.constant 0 : index
    %3 = vector.load %arg1[%c0_5, %c0_6] : memref<32x156xf32, #tpu.memory_space<vmem>>, vector<32x156xf32>
    %c0_7 = arith.constant 0 : index
    %c0_8 = arith.constant 0 : index
    %4 = vector.load %arg2[%c0_7, %c0_8] : memref<156x128xf32, #tpu.memory_space<vmem>>, vector<156x128xf32>
    %cst = arith.constant dense<0.000000e+00> : vector<32x128xf32>
    %5 = tpu.matmul %3, %4, %cst {dimension_numbers = #tpu.dot_dimension_numbers<[1], [0], [0], [1], [0, 0, 1, 1], [], []>} : vector<32x156xf32>, vector<156x128xf32>, vector<32x128xf32> -> vector<32x128xf32>
    %c0_9 = arith.constant 0 : index
    %c0_10 = arith.constant 0 : index
    %c0_11 = arith.constant 0 : index
    %6 = vector.load %arg3[%c0_9, %c0_10, %c0_11] : memref<2x1x128xf32, #tpu.memory_space<vmem>>, vector<1x1x128xf32>
    %7 = vector.shape_cast %6 : vector<1x1x128xf32> to vector<1x128xf32>
    %c0_12 = arith.constant 0 : index
    %c0_13 = arith.constant 0 : index
    %c0_14 = arith.constant 0 : index
    %8 = vector.load %arg4[%c0_12, %c0_13, %c0_14] : memref<2x1x128xf32, #tpu.memory_space<vmem>>, vector<1x1x128xf32>
    %9 = vector.shape_cast %8 : vector<1x1x128xf32> to vector<1x128xf32>
    %cst_15 = arith.constant dense<0.000000e+00> : vector<32xf32>
    %10 = vector.multi_reduction <add>, %5, %cst_15 [1] : vector<32x128xf32> to vector<32xf32>
    %11 = vector.shape_cast %10 : vector<32xf32> to vector<32x1xf32>
    %cst_16 = arith.constant 1.280000e+02 : f32
    %12 = vector.broadcast %cst_16 : f32 to vector<32x1xf32>
    %13 = arith.divf %11, %12 : vector<32x1xf32>
    %14 = vector.broadcast %13 : vector<32x1xf32> to vector<32x128xf32>
    %15 = arith.subf %5, %14 : vector<32x128xf32>
    %16 = arith.mulf %15, %15 : vector<32x128xf32>
    %cst_17 = arith.constant dense<0.000000e+00> : vector<32xf32>
    %17 = vector.multi_reduction <add>, %16, %cst_17 [1] : vector<32x128xf32> to vector<32xf32>
    %18 = vector.shape_cast %17 : vector<32xf32> to vector<32x1xf32>
    %cst_18 = arith.constant 1.280000e+02 : f32
    %19 = vector.broadcast %cst_18 : f32 to vector<32x1xf32>
    %20 = arith.divf %18, %19 : vector<32x1xf32>
    %cst_19 = arith.constant 9.99999974E-6 : f32
    %21 = vector.broadcast %cst_19 : f32 to vector<32x1xf32>
    %22 = arith.addf %20, %21 : vector<32x1xf32>
    %23 = math.rsqrt %22 : vector<32x1xf32>
    %24 = vector.broadcast %23 : vector<32x1xf32> to vector<32x128xf32>
    %25 = arith.mulf %15, %24 : vector<32x128xf32>
    %26 = vector.broadcast %7 : vector<1x128xf32> to vector<32x128xf32>
    %27 = arith.mulf %25, %26 : vector<32x128xf32>
    %28 = vector.broadcast %9 : vector<1x128xf32> to vector<32x128xf32>
    %29 = arith.addf %27, %28 : vector<32x128xf32>
    %c0_20 = arith.constant 0 : index
    %c0_21 = arith.constant 0 : index
    %c0_22 = arith.constant 0 : index
    %30 = vector.load %arg5[%c0_20, %c0_21, %c0_22] : memref<2x128x384xf32, #tpu.memory_space<vmem>>, vector<1x128x384xf32>
    %31 = vector.shape_cast %30 : vector<1x128x384xf32> to vector<128x384xf32>
    %cst_23 = arith.constant dense<0.000000e+00> : vector<32x384xf32>
    %32 = tpu.matmul %29, %31, %cst_23 {dimension_numbers = #tpu.dot_dimension_numbers<[1], [0], [0], [1], [0, 0, 1, 1], [], []>} : vector<32x128xf32>, vector<128x384xf32>, vector<32x384xf32> -> vector<32x384xf32>
    %c0_24 = arith.constant 0 : index
    %c0_25 = arith.constant 0 : index
    %c0_26 = arith.constant 0 : index
    %33 = vector.load %arg6[%c0_24, %c0_25, %c0_26] : memref<2x1x384xf32, #tpu.memory_space<vmem>>, vector<1x1x384xf32>
    %34 = vector.shape_cast %33 : vector<1x1x384xf32> to vector<1x384xf32>
    %35 = vector.broadcast %34 : vector<1x384xf32> to vector<32x384xf32>
    %36 = arith.addf %32, %35 : vector<32x384xf32>
    %37 = vector.extract_strided_slice %36 {offsets = [0, 0], sizes = [32, 128], strides = [1, 1]} : vector<32x384xf32> to vector<32x128xf32>
    %38 = arith.mulf %37, %0 : vector<32x128xf32>
    %cst_27 = arith.constant dense<0.000000e+00> : vector<32x128xf32>
    %39 = tpu.matmul %37, %2, %cst_27 {dimension_numbers = #tpu.dot_dimension_numbers<[1], [0], [0], [1], [0, 0, 1, 1], [], []>} : vector<32x128xf32>, vector<128x128xf32>, vector<32x128xf32> -> vector<32x128xf32>
    %40 = arith.mulf %39, %1 : vector<32x128xf32>
    %41 = arith.addf %38, %40 : vector<32x128xf32>
    %42 = vector.extract_strided_slice %36 {offsets = [0, 128], sizes = [32, 128], strides = [1, 1]} : vector<32x384xf32> to vector<32x128xf32>
    %43 = arith.mulf %42, %0 : vector<32x128xf32>
    %cst_28 = arith.constant dense<0.000000e+00> : vector<32x128xf32>
    %44 = tpu.matmul %42, %2, %cst_28 {dimension_numbers = #tpu.dot_dimension_numbers<[1], [0], [0], [1], [0, 0, 1, 1], [], []>} : vector<32x128xf32>, vector<128x128xf32>, vector<32x128xf32> -> vector<32x128xf32>
    %45 = arith.mulf %44, %1 : vector<32x128xf32>
    %46 = arith.addf %43, %45 : vector<32x128xf32>
    %47 = vector.extract_strided_slice %36 {offsets = [0, 256], sizes = [32, 128], strides = [1, 1]} : vector<32x384xf32> to vector<32x128xf32>
    %48 = vector.extract_strided_slice %41 {offsets = [0, 0], sizes = [16, 128], strides = [1, 1]} : vector<32x128xf32> to vector<16x128xf32>
    %49 = vector.extract_strided_slice %46 {offsets = [0, 0], sizes = [16, 128], strides = [1, 1]} : vector<32x128xf32> to vector<16x128xf32>
    %50 = vector.extract_strided_slice %47 {offsets = [0, 0], sizes = [16, 128], strides = [1, 1]} : vector<32x128xf32> to vector<16x128xf32>
    %51 = vector.extract_strided_slice %48 {offsets = [0, 0], sizes = [16, 32], strides = [1, 1]} : vector<16x128xf32> to vector<16x32xf32>
    %52 = vector.extract_strided_slice %49 {offsets = [0, 0], sizes = [16, 32], strides = [1, 1]} : vector<16x128xf32> to vector<16x32xf32>
    %53 = vector.extract_strided_slice %50 {offsets = [0, 0], sizes = [16, 32], strides = [1, 1]} : vector<16x128xf32> to vector<16x32xf32>
    %cst_29 = arith.constant dense<0.000000e+00> : vector<16x16xf32>
    %54 = tpu.matmul %51, %52, %cst_29 {dimension_numbers = #tpu.dot_dimension_numbers<[1], [1], [0], [0], [0, 0, 1, 0], [], []>} : vector<16x32xf32>, vector<16x32xf32>, vector<16x16xf32> -> vector<16x16xf32>
    %cst_30 = arith.constant 0.176776692 : f32
    %55 = vector.broadcast %cst_30 : f32 to vector<16x16xf32>
    %56 = arith.mulf %54, %55 : vector<16x16xf32>
    %cst_31 = arith.constant dense<0xFF800000> : vector<16xf32>
    %57 = vector.multi_reduction <maximumf>, %56, %cst_31 [1] : vector<16x16xf32> to vector<16xf32>
    %58 = vector.shape_cast %57 : vector<16xf32> to vector<16x1xf32>
    %59 = vector.broadcast %58 : vector<16x1xf32> to vector<16x16xf32>
    %60 = arith.subf %56, %59 : vector<16x16xf32>
    %61 = math.exp %60 : vector<16x16xf32>
    %cst_32 = arith.constant dense<0.000000e+00> : vector<16xf32>
    %62 = vector.multi_reduction <add>, %61, %cst_32 [1] : vector<16x16xf32> to vector<16xf32>
    %63 = vector.shape_cast %62 : vector<16xf32> to vector<16x1xf32>
    %64 = vector.broadcast %63 : vector<16x1xf32> to vector<16x16xf32>
    %65 = arith.divf %61, %64 : vector<16x16xf32>
    %cst_33 = arith.constant dense<0.000000e+00> : vector<16x32xf32>
    %66 = tpu.matmul %65, %53, %cst_33 {dimension_numbers = #tpu.dot_dimension_numbers<[1], [0], [0], [1], [0, 0, 1, 1], [], []>} : vector<16x16xf32>, vector<16x32xf32>, vector<16x32xf32> -> vector<16x32xf32>
    %67 = vector.extract_strided_slice %48 {offsets = [0, 32], sizes = [16, 32], strides = [1, 1]} : vector<16x128xf32> to vector<16x32xf32>
    %68 = vector.extract_strided_slice %49 {offsets = [0, 32], sizes = [16, 32], strides = [1, 1]} : vector<16x128xf32> to vector<16x32xf32>
    %69 = vector.extract_strided_slice %50 {offsets = [0, 32], sizes = [16, 32], strides = [1, 1]} : vector<16x128xf32> to vector<16x32xf32>
    %cst_34 = arith.constant dense<0.000000e+00> : vector<16x16xf32>
    %70 = tpu.matmul %67, %68, %cst_34 {dimension_numbers = #tpu.dot_dimension_numbers<[1], [1], [0], [0], [0, 0, 1, 0], [], []>} : vector<16x32xf32>, vector<16x32xf32>, vector<16x16xf32> -> vector<16x16xf32>
    %cst_35 = arith.constant 0.176776692 : f32
    %71 = vector.broadcast %cst_35 : f32 to vector<16x16xf32>
    %72 = arith.mulf %70, %71 : vector<16x16xf32>
    %cst_36 = arith.constant dense<0xFF800000> : vector<16xf32>
    %73 = vector.multi_reduction <maximumf>, %72, %cst_36 [1] : vector<16x16xf32> to vector<16xf32>
    %74 = vector.shape_cast %73 : vector<16xf32> to vector<16x1xf32>
    %75 = vector.broadcast %74 : vector<16x1xf32> to vector<16x16xf32>
    %76 = arith.subf %72, %75 : vector<16x16xf32>
    %77 = math.exp %76 : vector<16x16xf32>
    %cst_37 = arith.constant dense<0.000000e+00> : vector<16xf32>
    %78 = vector.multi_reduction <add>, %77, %cst_37 [1] : vector<16x16xf32> to vector<16xf32>
    %79 = vector.shape_cast %78 : vector<16xf32> to vector<16x1xf32>
    %80 = vector.broadcast %79 : vector<16x1xf32> to vector<16x16xf32>
    %81 = arith.divf %77, %80 : vector<16x16xf32>
    %cst_38 = arith.constant dense<0.000000e+00> : vector<16x32xf32>
    %82 = tpu.matmul %81, %69, %cst_38 {dimension_numbers = #tpu.dot_dimension_numbers<[1], [0], [0], [1], [0, 0, 1, 1], [], []>} : vector<16x16xf32>, vector<16x32xf32>, vector<16x32xf32> -> vector<16x32xf32>
    %83 = vector.extract_strided_slice %48 {offsets = [0, 64], sizes = [16, 32], strides = [1, 1]} : vector<16x128xf32> to vector<16x32xf32>
    %84 = vector.extract_strided_slice %49 {offsets = [0, 64], sizes = [16, 32], strides = [1, 1]} : vector<16x128xf32> to vector<16x32xf32>
    %85 = vector.extract_strided_slice %50 {offsets = [0, 64], sizes = [16, 32], strides = [1, 1]} : vector<16x128xf32> to vector<16x32xf32>
    %cst_39 = arith.constant dense<0.000000e+00> : vector<16x16xf32>
    %86 = tpu.matmul %83, %84, %cst_39 {dimension_numbers = #tpu.dot_dimension_numbers<[1], [1], [0], [0], [0, 0, 1, 0], [], []>} : vector<16x32xf32>, vector<16x32xf32>, vector<16x16xf32> -> vector<16x16xf32>
    %cst_40 = arith.constant 0.176776692 : f32
    %87 = vector.broadcast %cst_40 : f32 to vector<16x16xf32>
    %88 = arith.mulf %86, %87 : vector<16x16xf32>
    %cst_41 = arith.constant dense<0xFF800000> : vector<16xf32>
    %89 = vector.multi_reduction <maximumf>, %88, %cst_41 [1] : vector<16x16xf32> to vector<16xf32>
    %90 = vector.shape_cast %89 : vector<16xf32> to vector<16x1xf32>
    %91 = vector.broadcast %90 : vector<16x1xf32> to vector<16x16xf32>
    %92 = arith.subf %88, %91 : vector<16x16xf32>
    %93 = math.exp %92 : vector<16x16xf32>
    %cst_42 = arith.constant dense<0.000000e+00> : vector<16xf32>
    %94 = vector.multi_reduction <add>, %93, %cst_42 [1] : vector<16x16xf32> to vector<16xf32>
    %95 = vector.shape_cast %94 : vector<16xf32> to vector<16x1xf32>
    %96 = vector.broadcast %95 : vector<16x1xf32> to vector<16x16xf32>
    %97 = arith.divf %93, %96 : vector<16x16xf32>
    %cst_43 = arith.constant dense<0.000000e+00> : vector<16x32xf32>
    %98 = tpu.matmul %97, %85, %cst_43 {dimension_numbers = #tpu.dot_dimension_numbers<[1], [0], [0], [1], [0, 0, 1, 1], [], []>} : vector<16x16xf32>, vector<16x32xf32>, vector<16x32xf32> -> vector<16x32xf32>
    %99 = vector.extract_strided_slice %48 {offsets = [0, 96], sizes = [16, 32], strides = [1, 1]} : vector<16x128xf32> to vector<16x32xf32>
    %100 = vector.extract_strided_slice %49 {offsets = [0, 96], sizes = [16, 32], strides = [1, 1]} : vector<16x128xf32> to vector<16x32xf32>
    %101 = vector.extract_strided_slice %50 {offsets = [0, 96], sizes = [16, 32], strides = [1, 1]} : vector<16x128xf32> to vector<16x32xf32>
    %cst_44 = arith.constant dense<0.000000e+00> : vector<16x16xf32>
    %102 = tpu.matmul %99, %100, %cst_44 {dimension_numbers = #tpu.dot_dimension_numbers<[1], [1], [0], [0], [0, 0, 1, 0], [], []>} : vector<16x32xf32>, vector<16x32xf32>, vector<16x16xf32> -> vector<16x16xf32>
    %cst_45 = arith.constant 0.176776692 : f32
    %103 = vector.broadcast %cst_45 : f32 to vector<16x16xf32>
    %104 = arith.mulf %102, %103 : vector<16x16xf32>
    %cst_46 = arith.constant dense<0xFF800000> : vector<16xf32>
    %105 = vector.multi_reduction <maximumf>, %104, %cst_46 [1] : vector<16x16xf32> to vector<16xf32>
    %106 = vector.shape_cast %105 : vector<16xf32> to vector<16x1xf32>
    %107 = vector.broadcast %106 : vector<16x1xf32> to vector<16x16xf32>
    %108 = arith.subf %104, %107 : vector<16x16xf32>
    %109 = math.exp %108 : vector<16x16xf32>
    %cst_47 = arith.constant dense<0.000000e+00> : vector<16xf32>
    %110 = vector.multi_reduction <add>, %109, %cst_47 [1] : vector<16x16xf32> to vector<16xf32>
    %111 = vector.shape_cast %110 : vector<16xf32> to vector<16x1xf32>
    %112 = vector.broadcast %111 : vector<16x1xf32> to vector<16x16xf32>
    %113 = arith.divf %109, %112 : vector<16x16xf32>
    %cst_48 = arith.constant dense<0.000000e+00> : vector<16x32xf32>
    %114 = tpu.matmul %113, %101, %cst_48 {dimension_numbers = #tpu.dot_dimension_numbers<[1], [0], [0], [1], [0, 0, 1, 1], [], []>} : vector<16x16xf32>, vector<16x32xf32>, vector<16x32xf32> -> vector<16x32xf32>
    %115 = tpu.concatenate %66, %82, %98, %114 in 1 : vector<16x32xf32>, vector<16x32xf32>, vector<16x32xf32>, vector<16x32xf32> -> vector<16x128xf32>
    %116 = vector.extract_strided_slice %41 {offsets = [16, 0], sizes = [16, 128], strides = [1, 1]} : vector<32x128xf32> to vector<16x128xf32>
    %117 = vector.extract_strided_slice %46 {offsets = [16, 0], sizes = [16, 128], strides = [1, 1]} : vector<32x128xf32> to vector<16x128xf32>
    %118 = vector.extract_strided_slice %47 {offsets = [16, 0], sizes = [16, 128], strides = [1, 1]} : vector<32x128xf32> to vector<16x128xf32>
    %119 = vector.extract_strided_slice %116 {offsets = [0, 0], sizes = [16, 32], strides = [1, 1]} : vector<16x128xf32> to vector<16x32xf32>
    %120 = vector.extract_strided_slice %117 {offsets = [0, 0], sizes = [16, 32], strides = [1, 1]} : vector<16x128xf32> to vector<16x32xf32>
    %121 = vector.extract_strided_slice %118 {offsets = [0, 0], sizes = [16, 32], strides = [1, 1]} : vector<16x128xf32> to vector<16x32xf32>
    %cst_49 = arith.constant dense<0.000000e+00> : vector<16x16xf32>
    %122 = tpu.matmul %119, %120, %cst_49 {dimension_numbers = #tpu.dot_dimension_numbers<[1], [1], [0], [0], [0, 0, 1, 0], [], []>} : vector<16x32xf32>, vector<16x32xf32>, vector<16x16xf32> -> vector<16x16xf32>
    %cst_50 = arith.constant 0.176776692 : f32
    %123 = vector.broadcast %cst_50 : f32 to vector<16x16xf32>
    %124 = arith.mulf %122, %123 : vector<16x16xf32>
    %cst_51 = arith.constant dense<0xFF800000> : vector<16xf32>
    %125 = vector.multi_reduction <maximumf>, %124, %cst_51 [1] : vector<16x16xf32> to vector<16xf32>
    %126 = vector.shape_cast %125 : vector<16xf32> to vector<16x1xf32>
    %127 = vector.broadcast %126 : vector<16x1xf32> to vector<16x16xf32>
    %128 = arith.subf %124, %127 : vector<16x16xf32>
    %129 = math.exp %128 : vector<16x16xf32>
    %cst_52 = arith.constant dense<0.000000e+00> : vector<16xf32>
    %130 = vector.multi_reduction <add>, %129, %cst_52 [1] : vector<16x16xf32> to vector<16xf32>
    %131 = vector.shape_cast %130 : vector<16xf32> to vector<16x1xf32>
    %132 = vector.broadcast %131 : vector<16x1xf32> to vector<16x16xf32>
    %133 = arith.divf %129, %132 : vector<16x16xf32>
    %cst_53 = arith.constant dense<0.000000e+00> : vector<16x32xf32>
    %134 = tpu.matmul %133, %121, %cst_53 {dimension_numbers = #tpu.dot_dimension_numbers<[1], [0], [0], [1], [0, 0, 1, 1], [], []>} : vector<16x16xf32>, vector<16x32xf32>, vector<16x32xf32> -> vector<16x32xf32>
    %135 = vector.extract_strided_slice %116 {offsets = [0, 32], sizes = [16, 32], strides = [1, 1]} : vector<16x128xf32> to vector<16x32xf32>
    %136 = vector.extract_strided_slice %117 {offsets = [0, 32], sizes = [16, 32], strides = [1, 1]} : vector<16x128xf32> to vector<16x32xf32>
    %137 = vector.extract_strided_slice %118 {offsets = [0, 32], sizes = [16, 32], strides = [1, 1]} : vector<16x128xf32> to vector<16x32xf32>
    %cst_54 = arith.constant dense<0.000000e+00> : vector<16x16xf32>
    %138 = tpu.matmul %135, %136, %cst_54 {dimension_numbers = #tpu.dot_dimension_numbers<[1], [1], [0], [0], [0, 0, 1, 0], [], []>} : vector<16x32xf32>, vector<16x32xf32>, vector<16x16xf32> -> vector<16x16xf32>
    %cst_55 = arith.constant 0.176776692 : f32
    %139 = vector.broadcast %cst_55 : f32 to vector<16x16xf32>
    %140 = arith.mulf %138, %139 : vector<16x16xf32>
    %cst_56 = arith.constant dense<0xFF800000> : vector<16xf32>
    %141 = vector.multi_reduction <maximumf>, %140, %cst_56 [1] : vector<16x16xf32> to vector<16xf32>
    %142 = vector.shape_cast %141 : vector<16xf32> to vector<16x1xf32>
    %143 = vector.broadcast %142 : vector<16x1xf32> to vector<16x16xf32>
    %144 = arith.subf %140, %143 : vector<16x16xf32>
    %145 = math.exp %144 : vector<16x16xf32>
    %cst_57 = arith.constant dense<0.000000e+00> : vector<16xf32>
    %146 = vector.multi_reduction <add>, %145, %cst_57 [1] : vector<16x16xf32> to vector<16xf32>
    %147 = vector.shape_cast %146 : vector<16xf32> to vector<16x1xf32>
    %148 = vector.broadcast %147 : vector<16x1xf32> to vector<16x16xf32>
    %149 = arith.divf %145, %148 : vector<16x16xf32>
    %cst_58 = arith.constant dense<0.000000e+00> : vector<16x32xf32>
    %150 = tpu.matmul %149, %137, %cst_58 {dimension_numbers = #tpu.dot_dimension_numbers<[1], [0], [0], [1], [0, 0, 1, 1], [], []>} : vector<16x16xf32>, vector<16x32xf32>, vector<16x32xf32> -> vector<16x32xf32>
    %151 = vector.extract_strided_slice %116 {offsets = [0, 64], sizes = [16, 32], strides = [1, 1]} : vector<16x128xf32> to vector<16x32xf32>
    %152 = vector.extract_strided_slice %117 {offsets = [0, 64], sizes = [16, 32], strides = [1, 1]} : vector<16x128xf32> to vector<16x32xf32>
    %153 = vector.extract_strided_slice %118 {offsets = [0, 64], sizes = [16, 32], strides = [1, 1]} : vector<16x128xf32> to vector<16x32xf32>
    %cst_59 = arith.constant dense<0.000000e+00> : vector<16x16xf32>
    %154 = tpu.matmul %151, %152, %cst_59 {dimension_numbers = #tpu.dot_dimension_numbers<[1], [1], [0], [0], [0, 0, 1, 0], [], []>} : vector<16x32xf32>, vector<16x32xf32>, vector<16x16xf32> -> vector<16x16xf32>
    %cst_60 = arith.constant 0.176776692 : f32
    %155 = vector.broadcast %cst_60 : f32 to vector<16x16xf32>
    %156 = arith.mulf %154, %155 : vector<16x16xf32>
    %cst_61 = arith.constant dense<0xFF800000> : vector<16xf32>
    %157 = vector.multi_reduction <maximumf>, %156, %cst_61 [1] : vector<16x16xf32> to vector<16xf32>
    %158 = vector.shape_cast %157 : vector<16xf32> to vector<16x1xf32>
    %159 = vector.broadcast %158 : vector<16x1xf32> to vector<16x16xf32>
    %160 = arith.subf %156, %159 : vector<16x16xf32>
    %161 = math.exp %160 : vector<16x16xf32>
    %cst_62 = arith.constant dense<0.000000e+00> : vector<16xf32>
    %162 = vector.multi_reduction <add>, %161, %cst_62 [1] : vector<16x16xf32> to vector<16xf32>
    %163 = vector.shape_cast %162 : vector<16xf32> to vector<16x1xf32>
    %164 = vector.broadcast %163 : vector<16x1xf32> to vector<16x16xf32>
    %165 = arith.divf %161, %164 : vector<16x16xf32>
    %cst_63 = arith.constant dense<0.000000e+00> : vector<16x32xf32>
    %166 = tpu.matmul %165, %153, %cst_63 {dimension_numbers = #tpu.dot_dimension_numbers<[1], [0], [0], [1], [0, 0, 1, 1], [], []>} : vector<16x16xf32>, vector<16x32xf32>, vector<16x32xf32> -> vector<16x32xf32>
    %167 = vector.extract_strided_slice %116 {offsets = [0, 96], sizes = [16, 32], strides = [1, 1]} : vector<16x128xf32> to vector<16x32xf32>
    %168 = vector.extract_strided_slice %117 {offsets = [0, 96], sizes = [16, 32], strides = [1, 1]} : vector<16x128xf32> to vector<16x32xf32>
    %169 = vector.extract_strided_slice %118 {offsets = [0, 96], sizes = [16, 32], strides = [1, 1]} : vector<16x128xf32> to vector<16x32xf32>
    %cst_64 = arith.constant dense<0.000000e+00> : vector<16x16xf32>
    %170 = tpu.matmul %167, %168, %cst_64 {dimension_numbers = #tpu.dot_dimension_numbers<[1], [1], [0], [0], [0, 0, 1, 0], [], []>} : vector<16x32xf32>, vector<16x32xf32>, vector<16x16xf32> -> vector<16x16xf32>
    %cst_65 = arith.constant 0.176776692 : f32
    %171 = vector.broadcast %cst_65 : f32 to vector<16x16xf32>
    %172 = arith.mulf %170, %171 : vector<16x16xf32>
    %cst_66 = arith.constant dense<0xFF800000> : vector<16xf32>
    %173 = vector.multi_reduction <maximumf>, %172, %cst_66 [1] : vector<16x16xf32> to vector<16xf32>
    %174 = vector.shape_cast %173 : vector<16xf32> to vector<16x1xf32>
    %175 = vector.broadcast %174 : vector<16x1xf32> to vector<16x16xf32>
    %176 = arith.subf %172, %175 : vector<16x16xf32>
    %177 = math.exp %176 : vector<16x16xf32>
    %cst_67 = arith.constant dense<0.000000e+00> : vector<16xf32>
    %178 = vector.multi_reduction <add>, %177, %cst_67 [1] : vector<16x16xf32> to vector<16xf32>
    %179 = vector.shape_cast %178 : vector<16xf32> to vector<16x1xf32>
    %180 = vector.broadcast %179 : vector<16x1xf32> to vector<16x16xf32>
    %181 = arith.divf %177, %180 : vector<16x16xf32>
    %cst_68 = arith.constant dense<0.000000e+00> : vector<16x32xf32>
    %182 = tpu.matmul %181, %169, %cst_68 {dimension_numbers = #tpu.dot_dimension_numbers<[1], [0], [0], [1], [0, 0, 1, 1], [], []>} : vector<16x16xf32>, vector<16x32xf32>, vector<16x32xf32> -> vector<16x32xf32>
    %183 = tpu.concatenate %134, %150, %166, %182 in 1 : vector<16x32xf32>, vector<16x32xf32>, vector<16x32xf32>, vector<16x32xf32> -> vector<16x128xf32>
    %184 = tpu.concatenate %115, %183 in 0 : vector<16x128xf32>, vector<16x128xf32> -> vector<32x128xf32>
    %c0_69 = arith.constant 0 : index
    %c0_70 = arith.constant 0 : index
    %c0_71 = arith.constant 0 : index
    %185 = vector.load %arg7[%c0_69, %c0_70, %c0_71] : memref<2x128x128xf32, #tpu.memory_space<vmem>>, vector<1x128x128xf32>
    %186 = vector.shape_cast %185 : vector<1x128x128xf32> to vector<128x128xf32>
    %cst_72 = arith.constant dense<0.000000e+00> : vector<32x128xf32>
    %187 = tpu.matmul %184, %186, %cst_72 {dimension_numbers = #tpu.dot_dimension_numbers<[1], [0], [0], [1], [0, 0, 1, 1], [], []>} : vector<32x128xf32>, vector<128x128xf32>, vector<32x128xf32> -> vector<32x128xf32>
    %188 = arith.addf %5, %187 : vector<32x128xf32>
    %c0_73 = arith.constant 0 : index
    %c0_74 = arith.constant 0 : index
    %c0_75 = arith.constant 0 : index
    %189 = vector.load %arg8[%c0_73, %c0_74, %c0_75] : memref<2x1x128xf32, #tpu.memory_space<vmem>>, vector<1x1x128xf32>
    %190 = vector.shape_cast %189 : vector<1x1x128xf32> to vector<1x128xf32>
    %191 = vector.broadcast %190 : vector<1x128xf32> to vector<32x128xf32>
    %192 = arith.addf %188, %191 : vector<32x128xf32>
    %c0_76 = arith.constant 0 : index
    %c0_77 = arith.constant 0 : index
    %c0_78 = arith.constant 0 : index
    %193 = vector.load %arg9[%c0_76, %c0_77, %c0_78] : memref<2x1x128xf32, #tpu.memory_space<vmem>>, vector<1x1x128xf32>
    %194 = vector.shape_cast %193 : vector<1x1x128xf32> to vector<1x128xf32>
    %c0_79 = arith.constant 0 : index
    %c0_80 = arith.constant 0 : index
    %c0_81 = arith.constant 0 : index
    %195 = vector.load %arg10[%c0_79, %c0_80, %c0_81] : memref<2x1x128xf32, #tpu.memory_space<vmem>>, vector<1x1x128xf32>
    %196 = vector.shape_cast %195 : vector<1x1x128xf32> to vector<1x128xf32>
    %cst_82 = arith.constant dense<0.000000e+00> : vector<32xf32>
    %197 = vector.multi_reduction <add>, %192, %cst_82 [1] : vector<32x128xf32> to vector<32xf32>
    %198 = vector.shape_cast %197 : vector<32xf32> to vector<32x1xf32>
    %cst_83 = arith.constant 1.280000e+02 : f32
    %199 = vector.broadcast %cst_83 : f32 to vector<32x1xf32>
    %200 = arith.divf %198, %199 : vector<32x1xf32>
    %201 = vector.broadcast %200 : vector<32x1xf32> to vector<32x128xf32>
    %202 = arith.subf %192, %201 : vector<32x128xf32>
    %203 = arith.mulf %202, %202 : vector<32x128xf32>
    %cst_84 = arith.constant dense<0.000000e+00> : vector<32xf32>
    %204 = vector.multi_reduction <add>, %203, %cst_84 [1] : vector<32x128xf32> to vector<32xf32>
    %205 = vector.shape_cast %204 : vector<32xf32> to vector<32x1xf32>
    %cst_85 = arith.constant 1.280000e+02 : f32
    %206 = vector.broadcast %cst_85 : f32 to vector<32x1xf32>
    %207 = arith.divf %205, %206 : vector<32x1xf32>
    %cst_86 = arith.constant 9.99999974E-6 : f32
    %208 = vector.broadcast %cst_86 : f32 to vector<32x1xf32>
    %209 = arith.addf %207, %208 : vector<32x1xf32>
    %210 = math.rsqrt %209 : vector<32x1xf32>
    %211 = vector.broadcast %210 : vector<32x1xf32> to vector<32x128xf32>
    %212 = arith.mulf %202, %211 : vector<32x128xf32>
    %213 = vector.broadcast %194 : vector<1x128xf32> to vector<32x128xf32>
    %214 = arith.mulf %212, %213 : vector<32x128xf32>
    %215 = vector.broadcast %196 : vector<1x128xf32> to vector<32x128xf32>
    %216 = arith.addf %214, %215 : vector<32x128xf32>
    %c0_87 = arith.constant 0 : index
    %c0_88 = arith.constant 0 : index
    %c0_89 = arith.constant 0 : index
    %217 = vector.load %arg11[%c0_87, %c0_88, %c0_89] : memref<2x128x256xf32, #tpu.memory_space<vmem>>, vector<1x128x256xf32>
    %218 = vector.shape_cast %217 : vector<1x128x256xf32> to vector<128x256xf32>
    %cst_90 = arith.constant dense<0.000000e+00> : vector<32x256xf32>
    %219 = tpu.matmul %216, %218, %cst_90 {dimension_numbers = #tpu.dot_dimension_numbers<[1], [0], [0], [1], [0, 0, 1, 1], [], []>} : vector<32x128xf32>, vector<128x256xf32>, vector<32x256xf32> -> vector<32x256xf32>
    %c0_91 = arith.constant 0 : index
    %c0_92 = arith.constant 0 : index
    %c0_93 = arith.constant 0 : index
    %220 = vector.load %arg12[%c0_91, %c0_92, %c0_93] : memref<2x1x256xf32, #tpu.memory_space<vmem>>, vector<1x1x256xf32>
    %221 = vector.shape_cast %220 : vector<1x1x256xf32> to vector<1x256xf32>
    %222 = vector.broadcast %221 : vector<1x256xf32> to vector<32x256xf32>
    %223 = arith.addf %219, %222 : vector<32x256xf32>
    %cst_94 = arith.constant 5.000000e-01 : f32
    %224 = vector.broadcast %cst_94 : f32 to vector<32x256xf32>
    %225 = arith.mulf %224, %223 : vector<32x256xf32>
    %cst_95 = arith.constant 0.707106769 : f32
    %226 = vector.broadcast %cst_95 : f32 to vector<32x256xf32>
    %227 = arith.mulf %223, %226 : vector<32x256xf32>
    %228 = math.erf %227 : vector<32x256xf32>
    %cst_96 = arith.constant 1.000000e+00 : f32
    %229 = vector.broadcast %cst_96 : f32 to vector<32x256xf32>
    %230 = arith.addf %229, %228 : vector<32x256xf32>
    %231 = arith.mulf %225, %230 : vector<32x256xf32>
    %c0_97 = arith.constant 0 : index
    %c0_98 = arith.constant 0 : index
    %c0_99 = arith.constant 0 : index
    %232 = vector.load %arg13[%c0_97, %c0_98, %c0_99] : memref<2x256x128xf32, #tpu.memory_space<vmem>>, vector<1x256x128xf32>
    %233 = vector.shape_cast %232 : vector<1x256x128xf32> to vector<256x128xf32>
    %cst_100 = arith.constant dense<0.000000e+00> : vector<32x128xf32>
    %234 = tpu.matmul %231, %233, %cst_100 {dimension_numbers = #tpu.dot_dimension_numbers<[1], [0], [0], [1], [0, 0, 1, 1], [], []>} : vector<32x256xf32>, vector<256x128xf32>, vector<32x128xf32> -> vector<32x128xf32>
    %235 = arith.addf %192, %234 : vector<32x128xf32>
    %c0_101 = arith.constant 0 : index
    %c0_102 = arith.constant 0 : index
    %c0_103 = arith.constant 0 : index
    %236 = vector.load %arg14[%c0_101, %c0_102, %c0_103] : memref<2x1x128xf32, #tpu.memory_space<vmem>>, vector<1x1x128xf32>
    %237 = vector.shape_cast %236 : vector<1x1x128xf32> to vector<1x128xf32>
    %238 = vector.broadcast %237 : vector<1x128xf32> to vector<32x128xf32>
    %239 = arith.addf %235, %238 : vector<32x128xf32>
    %c1 = arith.constant 1 : index
    %c0_104 = arith.constant 0 : index
    %c0_105 = arith.constant 0 : index
    %240 = vector.load %arg3[%c1, %c0_104, %c0_105] : memref<2x1x128xf32, #tpu.memory_space<vmem>>, vector<1x1x128xf32>
    %241 = vector.shape_cast %240 : vector<1x1x128xf32> to vector<1x128xf32>
    %c1_106 = arith.constant 1 : index
    %c0_107 = arith.constant 0 : index
    %c0_108 = arith.constant 0 : index
    %242 = vector.load %arg4[%c1_106, %c0_107, %c0_108] : memref<2x1x128xf32, #tpu.memory_space<vmem>>, vector<1x1x128xf32>
    %243 = vector.shape_cast %242 : vector<1x1x128xf32> to vector<1x128xf32>
    %cst_109 = arith.constant dense<0.000000e+00> : vector<32xf32>
    %244 = vector.multi_reduction <add>, %239, %cst_109 [1] : vector<32x128xf32> to vector<32xf32>
    %245 = vector.shape_cast %244 : vector<32xf32> to vector<32x1xf32>
    %cst_110 = arith.constant 1.280000e+02 : f32
    %246 = vector.broadcast %cst_110 : f32 to vector<32x1xf32>
    %247 = arith.divf %245, %246 : vector<32x1xf32>
    %248 = vector.broadcast %247 : vector<32x1xf32> to vector<32x128xf32>
    %249 = arith.subf %239, %248 : vector<32x128xf32>
    %250 = arith.mulf %249, %249 : vector<32x128xf32>
    %cst_111 = arith.constant dense<0.000000e+00> : vector<32xf32>
    %251 = vector.multi_reduction <add>, %250, %cst_111 [1] : vector<32x128xf32> to vector<32xf32>
    %252 = vector.shape_cast %251 : vector<32xf32> to vector<32x1xf32>
    %cst_112 = arith.constant 1.280000e+02 : f32
    %253 = vector.broadcast %cst_112 : f32 to vector<32x1xf32>
    %254 = arith.divf %252, %253 : vector<32x1xf32>
    %cst_113 = arith.constant 9.99999974E-6 : f32
    %255 = vector.broadcast %cst_113 : f32 to vector<32x1xf32>
    %256 = arith.addf %254, %255 : vector<32x1xf32>
    %257 = math.rsqrt %256 : vector<32x1xf32>
    %258 = vector.broadcast %257 : vector<32x1xf32> to vector<32x128xf32>
    %259 = arith.mulf %249, %258 : vector<32x128xf32>
    %260 = vector.broadcast %241 : vector<1x128xf32> to vector<32x128xf32>
    %261 = arith.mulf %259, %260 : vector<32x128xf32>
    %262 = vector.broadcast %243 : vector<1x128xf32> to vector<32x128xf32>
    %263 = arith.addf %261, %262 : vector<32x128xf32>
    %c1_114 = arith.constant 1 : index
    %c0_115 = arith.constant 0 : index
    %c0_116 = arith.constant 0 : index
    %264 = vector.load %arg5[%c1_114, %c0_115, %c0_116] : memref<2x128x384xf32, #tpu.memory_space<vmem>>, vector<1x128x384xf32>
    %265 = vector.shape_cast %264 : vector<1x128x384xf32> to vector<128x384xf32>
    %cst_117 = arith.constant dense<0.000000e+00> : vector<32x384xf32>
    %266 = tpu.matmul %263, %265, %cst_117 {dimension_numbers = #tpu.dot_dimension_numbers<[1], [0], [0], [1], [0, 0, 1, 1], [], []>} : vector<32x128xf32>, vector<128x384xf32>, vector<32x384xf32> -> vector<32x384xf32>
    %c1_118 = arith.constant 1 : index
    %c0_119 = arith.constant 0 : index
    %c0_120 = arith.constant 0 : index
    %267 = vector.load %arg6[%c1_118, %c0_119, %c0_120] : memref<2x1x384xf32, #tpu.memory_space<vmem>>, vector<1x1x384xf32>
    %268 = vector.shape_cast %267 : vector<1x1x384xf32> to vector<1x384xf32>
    %269 = vector.broadcast %268 : vector<1x384xf32> to vector<32x384xf32>
    %270 = arith.addf %266, %269 : vector<32x384xf32>
    %271 = vector.extract_strided_slice %270 {offsets = [0, 0], sizes = [32, 128], strides = [1, 1]} : vector<32x384xf32> to vector<32x128xf32>
    %272 = arith.mulf %271, %0 : vector<32x128xf32>
    %cst_121 = arith.constant dense<0.000000e+00> : vector<32x128xf32>
    %273 = tpu.matmul %271, %2, %cst_121 {dimension_numbers = #tpu.dot_dimension_numbers<[1], [0], [0], [1], [0, 0, 1, 1], [], []>} : vector<32x128xf32>, vector<128x128xf32>, vector<32x128xf32> -> vector<32x128xf32>
    %274 = arith.mulf %273, %1 : vector<32x128xf32>
    %275 = arith.addf %272, %274 : vector<32x128xf32>
    %276 = vector.extract_strided_slice %270 {offsets = [0, 128], sizes = [32, 128], strides = [1, 1]} : vector<32x384xf32> to vector<32x128xf32>
    %277 = arith.mulf %276, %0 : vector<32x128xf32>
    %cst_122 = arith.constant dense<0.000000e+00> : vector<32x128xf32>
    %278 = tpu.matmul %276, %2, %cst_122 {dimension_numbers = #tpu.dot_dimension_numbers<[1], [0], [0], [1], [0, 0, 1, 1], [], []>} : vector<32x128xf32>, vector<128x128xf32>, vector<32x128xf32> -> vector<32x128xf32>
    %279 = arith.mulf %278, %1 : vector<32x128xf32>
    %280 = arith.addf %277, %279 : vector<32x128xf32>
    %281 = vector.extract_strided_slice %270 {offsets = [0, 256], sizes = [32, 128], strides = [1, 1]} : vector<32x384xf32> to vector<32x128xf32>
    %282 = vector.extract_strided_slice %275 {offsets = [0, 0], sizes = [16, 128], strides = [1, 1]} : vector<32x128xf32> to vector<16x128xf32>
    %283 = vector.extract_strided_slice %280 {offsets = [0, 0], sizes = [16, 128], strides = [1, 1]} : vector<32x128xf32> to vector<16x128xf32>
    %284 = vector.extract_strided_slice %281 {offsets = [0, 0], sizes = [16, 128], strides = [1, 1]} : vector<32x128xf32> to vector<16x128xf32>
    %285 = vector.extract_strided_slice %282 {offsets = [0, 0], sizes = [16, 32], strides = [1, 1]} : vector<16x128xf32> to vector<16x32xf32>
    %286 = vector.extract_strided_slice %283 {offsets = [0, 0], sizes = [16, 32], strides = [1, 1]} : vector<16x128xf32> to vector<16x32xf32>
    %287 = vector.extract_strided_slice %284 {offsets = [0, 0], sizes = [16, 32], strides = [1, 1]} : vector<16x128xf32> to vector<16x32xf32>
    %cst_123 = arith.constant dense<0.000000e+00> : vector<16x16xf32>
    %288 = tpu.matmul %285, %286, %cst_123 {dimension_numbers = #tpu.dot_dimension_numbers<[1], [1], [0], [0], [0, 0, 1, 0], [], []>} : vector<16x32xf32>, vector<16x32xf32>, vector<16x16xf32> -> vector<16x16xf32>
    %cst_124 = arith.constant 0.176776692 : f32
    %289 = vector.broadcast %cst_124 : f32 to vector<16x16xf32>
    %290 = arith.mulf %288, %289 : vector<16x16xf32>
    %cst_125 = arith.constant dense<0xFF800000> : vector<16xf32>
    %291 = vector.multi_reduction <maximumf>, %290, %cst_125 [1] : vector<16x16xf32> to vector<16xf32>
    %292 = vector.shape_cast %291 : vector<16xf32> to vector<16x1xf32>
    %293 = vector.broadcast %292 : vector<16x1xf32> to vector<16x16xf32>
    %294 = arith.subf %290, %293 : vector<16x16xf32>
    %295 = math.exp %294 : vector<16x16xf32>
    %cst_126 = arith.constant dense<0.000000e+00> : vector<16xf32>
    %296 = vector.multi_reduction <add>, %295, %cst_126 [1] : vector<16x16xf32> to vector<16xf32>
    %297 = vector.shape_cast %296 : vector<16xf32> to vector<16x1xf32>
    %298 = vector.broadcast %297 : vector<16x1xf32> to vector<16x16xf32>
    %299 = arith.divf %295, %298 : vector<16x16xf32>
    %cst_127 = arith.constant dense<0.000000e+00> : vector<16x32xf32>
    %300 = tpu.matmul %299, %287, %cst_127 {dimension_numbers = #tpu.dot_dimension_numbers<[1], [0], [0], [1], [0, 0, 1, 1], [], []>} : vector<16x16xf32>, vector<16x32xf32>, vector<16x32xf32> -> vector<16x32xf32>
    %301 = vector.extract_strided_slice %282 {offsets = [0, 32], sizes = [16, 32], strides = [1, 1]} : vector<16x128xf32> to vector<16x32xf32>
    %302 = vector.extract_strided_slice %283 {offsets = [0, 32], sizes = [16, 32], strides = [1, 1]} : vector<16x128xf32> to vector<16x32xf32>
    %303 = vector.extract_strided_slice %284 {offsets = [0, 32], sizes = [16, 32], strides = [1, 1]} : vector<16x128xf32> to vector<16x32xf32>
    %cst_128 = arith.constant dense<0.000000e+00> : vector<16x16xf32>
    %304 = tpu.matmul %301, %302, %cst_128 {dimension_numbers = #tpu.dot_dimension_numbers<[1], [1], [0], [0], [0, 0, 1, 0], [], []>} : vector<16x32xf32>, vector<16x32xf32>, vector<16x16xf32> -> vector<16x16xf32>
    %cst_129 = arith.constant 0.176776692 : f32
    %305 = vector.broadcast %cst_129 : f32 to vector<16x16xf32>
    %306 = arith.mulf %304, %305 : vector<16x16xf32>
    %cst_130 = arith.constant dense<0xFF800000> : vector<16xf32>
    %307 = vector.multi_reduction <maximumf>, %306, %cst_130 [1] : vector<16x16xf32> to vector<16xf32>
    %308 = vector.shape_cast %307 : vector<16xf32> to vector<16x1xf32>
    %309 = vector.broadcast %308 : vector<16x1xf32> to vector<16x16xf32>
    %310 = arith.subf %306, %309 : vector<16x16xf32>
    %311 = math.exp %310 : vector<16x16xf32>
    %cst_131 = arith.constant dense<0.000000e+00> : vector<16xf32>
    %312 = vector.multi_reduction <add>, %311, %cst_131 [1] : vector<16x16xf32> to vector<16xf32>
    %313 = vector.shape_cast %312 : vector<16xf32> to vector<16x1xf32>
    %314 = vector.broadcast %313 : vector<16x1xf32> to vector<16x16xf32>
    %315 = arith.divf %311, %314 : vector<16x16xf32>
    %cst_132 = arith.constant dense<0.000000e+00> : vector<16x32xf32>
    %316 = tpu.matmul %315, %303, %cst_132 {dimension_numbers = #tpu.dot_dimension_numbers<[1], [0], [0], [1], [0, 0, 1, 1], [], []>} : vector<16x16xf32>, vector<16x32xf32>, vector<16x32xf32> -> vector<16x32xf32>
    %317 = vector.extract_strided_slice %282 {offsets = [0, 64], sizes = [16, 32], strides = [1, 1]} : vector<16x128xf32> to vector<16x32xf32>
    %318 = vector.extract_strided_slice %283 {offsets = [0, 64], sizes = [16, 32], strides = [1, 1]} : vector<16x128xf32> to vector<16x32xf32>
    %319 = vector.extract_strided_slice %284 {offsets = [0, 64], sizes = [16, 32], strides = [1, 1]} : vector<16x128xf32> to vector<16x32xf32>
    %cst_133 = arith.constant dense<0.000000e+00> : vector<16x16xf32>
    %320 = tpu.matmul %317, %318, %cst_133 {dimension_numbers = #tpu.dot_dimension_numbers<[1], [1], [0], [0], [0, 0, 1, 0], [], []>} : vector<16x32xf32>, vector<16x32xf32>, vector<16x16xf32> -> vector<16x16xf32>
    %cst_134 = arith.constant 0.176776692 : f32
    %321 = vector.broadcast %cst_134 : f32 to vector<16x16xf32>
    %322 = arith.mulf %320, %321 : vector<16x16xf32>
    %cst_135 = arith.constant dense<0xFF800000> : vector<16xf32>
    %323 = vector.multi_reduction <maximumf>, %322, %cst_135 [1] : vector<16x16xf32> to vector<16xf32>
    %324 = vector.shape_cast %323 : vector<16xf32> to vector<16x1xf32>
    %325 = vector.broadcast %324 : vector<16x1xf32> to vector<16x16xf32>
    %326 = arith.subf %322, %325 : vector<16x16xf32>
    %327 = math.exp %326 : vector<16x16xf32>
    %cst_136 = arith.constant dense<0.000000e+00> : vector<16xf32>
    %328 = vector.multi_reduction <add>, %327, %cst_136 [1] : vector<16x16xf32> to vector<16xf32>
    %329 = vector.shape_cast %328 : vector<16xf32> to vector<16x1xf32>
    %330 = vector.broadcast %329 : vector<16x1xf32> to vector<16x16xf32>
    %331 = arith.divf %327, %330 : vector<16x16xf32>
    %cst_137 = arith.constant dense<0.000000e+00> : vector<16x32xf32>
    %332 = tpu.matmul %331, %319, %cst_137 {dimension_numbers = #tpu.dot_dimension_numbers<[1], [0], [0], [1], [0, 0, 1, 1], [], []>} : vector<16x16xf32>, vector<16x32xf32>, vector<16x32xf32> -> vector<16x32xf32>
    %333 = vector.extract_strided_slice %282 {offsets = [0, 96], sizes = [16, 32], strides = [1, 1]} : vector<16x128xf32> to vector<16x32xf32>
    %334 = vector.extract_strided_slice %283 {offsets = [0, 96], sizes = [16, 32], strides = [1, 1]} : vector<16x128xf32> to vector<16x32xf32>
    %335 = vector.extract_strided_slice %284 {offsets = [0, 96], sizes = [16, 32], strides = [1, 1]} : vector<16x128xf32> to vector<16x32xf32>
    %cst_138 = arith.constant dense<0.000000e+00> : vector<16x16xf32>
    %336 = tpu.matmul %333, %334, %cst_138 {dimension_numbers = #tpu.dot_dimension_numbers<[1], [1], [0], [0], [0, 0, 1, 0], [], []>} : vector<16x32xf32>, vector<16x32xf32>, vector<16x16xf32> -> vector<16x16xf32>
    %cst_139 = arith.constant 0.176776692 : f32
    %337 = vector.broadcast %cst_139 : f32 to vector<16x16xf32>
    %338 = arith.mulf %336, %337 : vector<16x16xf32>
    %cst_140 = arith.constant dense<0xFF800000> : vector<16xf32>
    %339 = vector.multi_reduction <maximumf>, %338, %cst_140 [1] : vector<16x16xf32> to vector<16xf32>
    %340 = vector.shape_cast %339 : vector<16xf32> to vector<16x1xf32>
    %341 = vector.broadcast %340 : vector<16x1xf32> to vector<16x16xf32>
    %342 = arith.subf %338, %341 : vector<16x16xf32>
    %343 = math.exp %342 : vector<16x16xf32>
    %cst_141 = arith.constant dense<0.000000e+00> : vector<16xf32>
    %344 = vector.multi_reduction <add>, %343, %cst_141 [1] : vector<16x16xf32> to vector<16xf32>
    %345 = vector.shape_cast %344 : vector<16xf32> to vector<16x1xf32>
    %346 = vector.broadcast %345 : vector<16x1xf32> to vector<16x16xf32>
    %347 = arith.divf %343, %346 : vector<16x16xf32>
    %cst_142 = arith.constant dense<0.000000e+00> : vector<16x32xf32>
    %348 = tpu.matmul %347, %335, %cst_142 {dimension_numbers = #tpu.dot_dimension_numbers<[1], [0], [0], [1], [0, 0, 1, 1], [], []>} : vector<16x16xf32>, vector<16x32xf32>, vector<16x32xf32> -> vector<16x32xf32>
    %349 = tpu.concatenate %300, %316, %332, %348 in 1 : vector<16x32xf32>, vector<16x32xf32>, vector<16x32xf32>, vector<16x32xf32> -> vector<16x128xf32>
    %350 = vector.extract_strided_slice %275 {offsets = [16, 0], sizes = [16, 128], strides = [1, 1]} : vector<32x128xf32> to vector<16x128xf32>
    %351 = vector.extract_strided_slice %280 {offsets = [16, 0], sizes = [16, 128], strides = [1, 1]} : vector<32x128xf32> to vector<16x128xf32>
    %352 = vector.extract_strided_slice %281 {offsets = [16, 0], sizes = [16, 128], strides = [1, 1]} : vector<32x128xf32> to vector<16x128xf32>
    %353 = vector.extract_strided_slice %350 {offsets = [0, 0], sizes = [16, 32], strides = [1, 1]} : vector<16x128xf32> to vector<16x32xf32>
    %354 = vector.extract_strided_slice %351 {offsets = [0, 0], sizes = [16, 32], strides = [1, 1]} : vector<16x128xf32> to vector<16x32xf32>
    %355 = vector.extract_strided_slice %352 {offsets = [0, 0], sizes = [16, 32], strides = [1, 1]} : vector<16x128xf32> to vector<16x32xf32>
    %cst_143 = arith.constant dense<0.000000e+00> : vector<16x16xf32>
    %356 = tpu.matmul %353, %354, %cst_143 {dimension_numbers = #tpu.dot_dimension_numbers<[1], [1], [0], [0], [0, 0, 1, 0], [], []>} : vector<16x32xf32>, vector<16x32xf32>, vector<16x16xf32> -> vector<16x16xf32>
    %cst_144 = arith.constant 0.176776692 : f32
    %357 = vector.broadcast %cst_144 : f32 to vector<16x16xf32>
    %358 = arith.mulf %356, %357 : vector<16x16xf32>
    %cst_145 = arith.constant dense<0xFF800000> : vector<16xf32>
    %359 = vector.multi_reduction <maximumf>, %358, %cst_145 [1] : vector<16x16xf32> to vector<16xf32>
    %360 = vector.shape_cast %359 : vector<16xf32> to vector<16x1xf32>
    %361 = vector.broadcast %360 : vector<16x1xf32> to vector<16x16xf32>
    %362 = arith.subf %358, %361 : vector<16x16xf32>
    %363 = math.exp %362 : vector<16x16xf32>
    %cst_146 = arith.constant dense<0.000000e+00> : vector<16xf32>
    %364 = vector.multi_reduction <add>, %363, %cst_146 [1] : vector<16x16xf32> to vector<16xf32>
    %365 = vector.shape_cast %364 : vector<16xf32> to vector<16x1xf32>
    %366 = vector.broadcast %365 : vector<16x1xf32> to vector<16x16xf32>
    %367 = arith.divf %363, %366 : vector<16x16xf32>
    %cst_147 = arith.constant dense<0.000000e+00> : vector<16x32xf32>
    %368 = tpu.matmul %367, %355, %cst_147 {dimension_numbers = #tpu.dot_dimension_numbers<[1], [0], [0], [1], [0, 0, 1, 1], [], []>} : vector<16x16xf32>, vector<16x32xf32>, vector<16x32xf32> -> vector<16x32xf32>
    %369 = vector.extract_strided_slice %350 {offsets = [0, 32], sizes = [16, 32], strides = [1, 1]} : vector<16x128xf32> to vector<16x32xf32>
    %370 = vector.extract_strided_slice %351 {offsets = [0, 32], sizes = [16, 32], strides = [1, 1]} : vector<16x128xf32> to vector<16x32xf32>
    %371 = vector.extract_strided_slice %352 {offsets = [0, 32], sizes = [16, 32], strides = [1, 1]} : vector<16x128xf32> to vector<16x32xf32>
    %cst_148 = arith.constant dense<0.000000e+00> : vector<16x16xf32>
    %372 = tpu.matmul %369, %370, %cst_148 {dimension_numbers = #tpu.dot_dimension_numbers<[1], [1], [0], [0], [0, 0, 1, 0], [], []>} : vector<16x32xf32>, vector<16x32xf32>, vector<16x16xf32> -> vector<16x16xf32>
    %cst_149 = arith.constant 0.176776692 : f32
    %373 = vector.broadcast %cst_149 : f32 to vector<16x16xf32>
    %374 = arith.mulf %372, %373 : vector<16x16xf32>
    %cst_150 = arith.constant dense<0xFF800000> : vector<16xf32>
    %375 = vector.multi_reduction <maximumf>, %374, %cst_150 [1] : vector<16x16xf32> to vector<16xf32>
    %376 = vector.shape_cast %375 : vector<16xf32> to vector<16x1xf32>
    %377 = vector.broadcast %376 : vector<16x1xf32> to vector<16x16xf32>
    %378 = arith.subf %374, %377 : vector<16x16xf32>
    %379 = math.exp %378 : vector<16x16xf32>
    %cst_151 = arith.constant dense<0.000000e+00> : vector<16xf32>
    %380 = vector.multi_reduction <add>, %379, %cst_151 [1] : vector<16x16xf32> to vector<16xf32>
    %381 = vector.shape_cast %380 : vector<16xf32> to vector<16x1xf32>
    %382 = vector.broadcast %381 : vector<16x1xf32> to vector<16x16xf32>
    %383 = arith.divf %379, %382 : vector<16x16xf32>
    %cst_152 = arith.constant dense<0.000000e+00> : vector<16x32xf32>
    %384 = tpu.matmul %383, %371, %cst_152 {dimension_numbers = #tpu.dot_dimension_numbers<[1], [0], [0], [1], [0, 0, 1, 1], [], []>} : vector<16x16xf32>, vector<16x32xf32>, vector<16x32xf32> -> vector<16x32xf32>
    %385 = vector.extract_strided_slice %350 {offsets = [0, 64], sizes = [16, 32], strides = [1, 1]} : vector<16x128xf32> to vector<16x32xf32>
    %386 = vector.extract_strided_slice %351 {offsets = [0, 64], sizes = [16, 32], strides = [1, 1]} : vector<16x128xf32> to vector<16x32xf32>
    %387 = vector.extract_strided_slice %352 {offsets = [0, 64], sizes = [16, 32], strides = [1, 1]} : vector<16x128xf32> to vector<16x32xf32>
    %cst_153 = arith.constant dense<0.000000e+00> : vector<16x16xf32>
    %388 = tpu.matmul %385, %386, %cst_153 {dimension_numbers = #tpu.dot_dimension_numbers<[1], [1], [0], [0], [0, 0, 1, 0], [], []>} : vector<16x32xf32>, vector<16x32xf32>, vector<16x16xf32> -> vector<16x16xf32>
    %cst_154 = arith.constant 0.176776692 : f32
    %389 = vector.broadcast %cst_154 : f32 to vector<16x16xf32>
    %390 = arith.mulf %388, %389 : vector<16x16xf32>
    %cst_155 = arith.constant dense<0xFF800000> : vector<16xf32>
    %391 = vector.multi_reduction <maximumf>, %390, %cst_155 [1] : vector<16x16xf32> to vector<16xf32>
    %392 = vector.shape_cast %391 : vector<16xf32> to vector<16x1xf32>
    %393 = vector.broadcast %392 : vector<16x1xf32> to vector<16x16xf32>
    %394 = arith.subf %390, %393 : vector<16x16xf32>
    %395 = math.exp %394 : vector<16x16xf32>
    %cst_156 = arith.constant dense<0.000000e+00> : vector<16xf32>
    %396 = vector.multi_reduction <add>, %395, %cst_156 [1] : vector<16x16xf32> to vector<16xf32>
    %397 = vector.shape_cast %396 : vector<16xf32> to vector<16x1xf32>
    %398 = vector.broadcast %397 : vector<16x1xf32> to vector<16x16xf32>
    %399 = arith.divf %395, %398 : vector<16x16xf32>
    %cst_157 = arith.constant dense<0.000000e+00> : vector<16x32xf32>
    %400 = tpu.matmul %399, %387, %cst_157 {dimension_numbers = #tpu.dot_dimension_numbers<[1], [0], [0], [1], [0, 0, 1, 1], [], []>} : vector<16x16xf32>, vector<16x32xf32>, vector<16x32xf32> -> vector<16x32xf32>
    %401 = vector.extract_strided_slice %350 {offsets = [0, 96], sizes = [16, 32], strides = [1, 1]} : vector<16x128xf32> to vector<16x32xf32>
    %402 = vector.extract_strided_slice %351 {offsets = [0, 96], sizes = [16, 32], strides = [1, 1]} : vector<16x128xf32> to vector<16x32xf32>
    %403 = vector.extract_strided_slice %352 {offsets = [0, 96], sizes = [16, 32], strides = [1, 1]} : vector<16x128xf32> to vector<16x32xf32>
    %cst_158 = arith.constant dense<0.000000e+00> : vector<16x16xf32>
    %404 = tpu.matmul %401, %402, %cst_158 {dimension_numbers = #tpu.dot_dimension_numbers<[1], [1], [0], [0], [0, 0, 1, 0], [], []>} : vector<16x32xf32>, vector<16x32xf32>, vector<16x16xf32> -> vector<16x16xf32>
    %cst_159 = arith.constant 0.176776692 : f32
    %405 = vector.broadcast %cst_159 : f32 to vector<16x16xf32>
    %406 = arith.mulf %404, %405 : vector<16x16xf32>
    %cst_160 = arith.constant dense<0xFF800000> : vector<16xf32>
    %407 = vector.multi_reduction <maximumf>, %406, %cst_160 [1] : vector<16x16xf32> to vector<16xf32>
    %408 = vector.shape_cast %407 : vector<16xf32> to vector<16x1xf32>
    %409 = vector.broadcast %408 : vector<16x1xf32> to vector<16x16xf32>
    %410 = arith.subf %406, %409 : vector<16x16xf32>
    %411 = math.exp %410 : vector<16x16xf32>
    %cst_161 = arith.constant dense<0.000000e+00> : vector<16xf32>
    %412 = vector.multi_reduction <add>, %411, %cst_161 [1] : vector<16x16xf32> to vector<16xf32>
    %413 = vector.shape_cast %412 : vector<16xf32> to vector<16x1xf32>
    %414 = vector.broadcast %413 : vector<16x1xf32> to vector<16x16xf32>
    %415 = arith.divf %411, %414 : vector<16x16xf32>
    %cst_162 = arith.constant dense<0.000000e+00> : vector<16x32xf32>
    %416 = tpu.matmul %415, %403, %cst_162 {dimension_numbers = #tpu.dot_dimension_numbers<[1], [0], [0], [1], [0, 0, 1, 1], [], []>} : vector<16x16xf32>, vector<16x32xf32>, vector<16x32xf32> -> vector<16x32xf32>
    %417 = tpu.concatenate %368, %384, %400, %416 in 1 : vector<16x32xf32>, vector<16x32xf32>, vector<16x32xf32>, vector<16x32xf32> -> vector<16x128xf32>
    %418 = tpu.concatenate %349, %417 in 0 : vector<16x128xf32>, vector<16x128xf32> -> vector<32x128xf32>
    %c1_163 = arith.constant 1 : index
    %c0_164 = arith.constant 0 : index
    %c0_165 = arith.constant 0 : index
    %419 = vector.load %arg7[%c1_163, %c0_164, %c0_165] : memref<2x128x128xf32, #tpu.memory_space<vmem>>, vector<1x128x128xf32>
    %420 = vector.shape_cast %419 : vector<1x128x128xf32> to vector<128x128xf32>
    %cst_166 = arith.constant dense<0.000000e+00> : vector<32x128xf32>
    %421 = tpu.matmul %418, %420, %cst_166 {dimension_numbers = #tpu.dot_dimension_numbers<[1], [0], [0], [1], [0, 0, 1, 1], [], []>} : vector<32x128xf32>, vector<128x128xf32>, vector<32x128xf32> -> vector<32x128xf32>
    %422 = arith.addf %239, %421 : vector<32x128xf32>
    %c1_167 = arith.constant 1 : index
    %c0_168 = arith.constant 0 : index
    %c0_169 = arith.constant 0 : index
    %423 = vector.load %arg8[%c1_167, %c0_168, %c0_169] : memref<2x1x128xf32, #tpu.memory_space<vmem>>, vector<1x1x128xf32>
    %424 = vector.shape_cast %423 : vector<1x1x128xf32> to vector<1x128xf32>
    %425 = vector.broadcast %424 : vector<1x128xf32> to vector<32x128xf32>
    %426 = arith.addf %422, %425 : vector<32x128xf32>
    %c1_170 = arith.constant 1 : index
    %c0_171 = arith.constant 0 : index
    %c0_172 = arith.constant 0 : index
    %427 = vector.load %arg9[%c1_170, %c0_171, %c0_172] : memref<2x1x128xf32, #tpu.memory_space<vmem>>, vector<1x1x128xf32>
    %428 = vector.shape_cast %427 : vector<1x1x128xf32> to vector<1x128xf32>
    %c1_173 = arith.constant 1 : index
    %c0_174 = arith.constant 0 : index
    %c0_175 = arith.constant 0 : index
    %429 = vector.load %arg10[%c1_173, %c0_174, %c0_175] : memref<2x1x128xf32, #tpu.memory_space<vmem>>, vector<1x1x128xf32>
    %430 = vector.shape_cast %429 : vector<1x1x128xf32> to vector<1x128xf32>
    %cst_176 = arith.constant dense<0.000000e+00> : vector<32xf32>
    %431 = vector.multi_reduction <add>, %426, %cst_176 [1] : vector<32x128xf32> to vector<32xf32>
    %432 = vector.shape_cast %431 : vector<32xf32> to vector<32x1xf32>
    %cst_177 = arith.constant 1.280000e+02 : f32
    %433 = vector.broadcast %cst_177 : f32 to vector<32x1xf32>
    %434 = arith.divf %432, %433 : vector<32x1xf32>
    %435 = vector.broadcast %434 : vector<32x1xf32> to vector<32x128xf32>
    %436 = arith.subf %426, %435 : vector<32x128xf32>
    %437 = arith.mulf %436, %436 : vector<32x128xf32>
    %cst_178 = arith.constant dense<0.000000e+00> : vector<32xf32>
    %438 = vector.multi_reduction <add>, %437, %cst_178 [1] : vector<32x128xf32> to vector<32xf32>
    %439 = vector.shape_cast %438 : vector<32xf32> to vector<32x1xf32>
    %cst_179 = arith.constant 1.280000e+02 : f32
    %440 = vector.broadcast %cst_179 : f32 to vector<32x1xf32>
    %441 = arith.divf %439, %440 : vector<32x1xf32>
    %cst_180 = arith.constant 9.99999974E-6 : f32
    %442 = vector.broadcast %cst_180 : f32 to vector<32x1xf32>
    %443 = arith.addf %441, %442 : vector<32x1xf32>
    %444 = math.rsqrt %443 : vector<32x1xf32>
    %445 = vector.broadcast %444 : vector<32x1xf32> to vector<32x128xf32>
    %446 = arith.mulf %436, %445 : vector<32x128xf32>
    %447 = vector.broadcast %428 : vector<1x128xf32> to vector<32x128xf32>
    %448 = arith.mulf %446, %447 : vector<32x128xf32>
    %449 = vector.broadcast %430 : vector<1x128xf32> to vector<32x128xf32>
    %450 = arith.addf %448, %449 : vector<32x128xf32>
    %c1_181 = arith.constant 1 : index
    %c0_182 = arith.constant 0 : index
    %c0_183 = arith.constant 0 : index
    %451 = vector.load %arg11[%c1_181, %c0_182, %c0_183] : memref<2x128x256xf32, #tpu.memory_space<vmem>>, vector<1x128x256xf32>
    %452 = vector.shape_cast %451 : vector<1x128x256xf32> to vector<128x256xf32>
    %cst_184 = arith.constant dense<0.000000e+00> : vector<32x256xf32>
    %453 = tpu.matmul %450, %452, %cst_184 {dimension_numbers = #tpu.dot_dimension_numbers<[1], [0], [0], [1], [0, 0, 1, 1], [], []>} : vector<32x128xf32>, vector<128x256xf32>, vector<32x256xf32> -> vector<32x256xf32>
    %c1_185 = arith.constant 1 : index
    %c0_186 = arith.constant 0 : index
    %c0_187 = arith.constant 0 : index
    %454 = vector.load %arg12[%c1_185, %c0_186, %c0_187] : memref<2x1x256xf32, #tpu.memory_space<vmem>>, vector<1x1x256xf32>
    %455 = vector.shape_cast %454 : vector<1x1x256xf32> to vector<1x256xf32>
    %456 = vector.broadcast %455 : vector<1x256xf32> to vector<32x256xf32>
    %457 = arith.addf %453, %456 : vector<32x256xf32>
    %cst_188 = arith.constant 5.000000e-01 : f32
    %458 = vector.broadcast %cst_188 : f32 to vector<32x256xf32>
    %459 = arith.mulf %458, %457 : vector<32x256xf32>
    %cst_189 = arith.constant 0.707106769 : f32
    %460 = vector.broadcast %cst_189 : f32 to vector<32x256xf32>
    %461 = arith.mulf %457, %460 : vector<32x256xf32>
    %462 = math.erf %461 : vector<32x256xf32>
    %cst_190 = arith.constant 1.000000e+00 : f32
    %463 = vector.broadcast %cst_190 : f32 to vector<32x256xf32>
    %464 = arith.addf %463, %462 : vector<32x256xf32>
    %465 = arith.mulf %459, %464 : vector<32x256xf32>
    %c1_191 = arith.constant 1 : index
    %c0_192 = arith.constant 0 : index
    %c0_193 = arith.constant 0 : index
    %466 = vector.load %arg13[%c1_191, %c0_192, %c0_193] : memref<2x256x128xf32, #tpu.memory_space<vmem>>, vector<1x256x128xf32>
    %467 = vector.shape_cast %466 : vector<1x256x128xf32> to vector<256x128xf32>
    %cst_194 = arith.constant dense<0.000000e+00> : vector<32x128xf32>
    %468 = tpu.matmul %465, %467, %cst_194 {dimension_numbers = #tpu.dot_dimension_numbers<[1], [0], [0], [1], [0, 0, 1, 1], [], []>} : vector<32x256xf32>, vector<256x128xf32>, vector<32x128xf32> -> vector<32x128xf32>
    %469 = arith.addf %426, %468 : vector<32x128xf32>
    %c1_195 = arith.constant 1 : index
    %c0_196 = arith.constant 0 : index
    %c0_197 = arith.constant 0 : index
    %470 = vector.load %arg14[%c1_195, %c0_196, %c0_197] : memref<2x1x128xf32, #tpu.memory_space<vmem>>, vector<1x1x128xf32>
    %471 = vector.shape_cast %470 : vector<1x1x128xf32> to vector<1x128xf32>
    %472 = vector.broadcast %471 : vector<1x128xf32> to vector<32x128xf32>
    %473 = arith.addf %469, %472 : vector<32x128xf32>
    %474 = vector.extract_strided_slice %473 {offsets = [0, 0], sizes = [16, 128], strides = [1, 1]} : vector<32x128xf32> to vector<16x128xf32>
    %cst_198 = arith.constant dense<0.000000e+00> : vector<128xf32>
    %475 = vector.multi_reduction <add>, %474, %cst_198 [0] : vector<16x128xf32> to vector<128xf32>
    %476 = vector.shape_cast %475 : vector<128xf32> to vector<1x128xf32>
    %cst_199 = arith.constant 1.600000e+01 : f32
    %477 = vector.broadcast %cst_199 : f32 to vector<1x128xf32>
    %478 = arith.divf %476, %477 : vector<1x128xf32>
    %479 = vector.extract_strided_slice %473 {offsets = [16, 0], sizes = [16, 128], strides = [1, 1]} : vector<32x128xf32> to vector<16x128xf32>
    %cst_200 = arith.constant dense<0.000000e+00> : vector<128xf32>
    %480 = vector.multi_reduction <add>, %479, %cst_200 [0] : vector<16x128xf32> to vector<128xf32>
    %481 = vector.shape_cast %480 : vector<128xf32> to vector<1x128xf32>
    %cst_201 = arith.constant 1.600000e+01 : f32
    %482 = vector.broadcast %cst_201 : f32 to vector<1x128xf32>
    %483 = arith.divf %481, %482 : vector<1x128xf32>
    %484 = tpu.concatenate %478, %483 in 0 : vector<1x128xf32>, vector<1x128xf32> -> vector<2x128xf32>
    %c0_202 = arith.constant 0 : index
    %c0_203 = arith.constant 0 : index
    %485 = vector.load %arg18[%c0_202, %c0_203] : memref<128x192xf32, #tpu.memory_space<vmem>>, vector<128x192xf32>
    %cst_204 = arith.constant dense<0.000000e+00> : vector<2x192xf32>
    %486 = tpu.matmul %484, %485, %cst_204 {dimension_numbers = #tpu.dot_dimension_numbers<[1], [0], [0], [1], [0, 0, 1, 1], [], []>} : vector<2x128xf32>, vector<128x192xf32>, vector<2x192xf32> -> vector<2x192xf32>
    %c0_205 = arith.constant 0 : index
    %c0_206 = arith.constant 0 : index
    %487 = vector.load %arg19[%c0_205, %c0_206] : memref<1x192xf32, #tpu.memory_space<vmem>>, vector<1x192xf32>
    %488 = vector.broadcast %487 : vector<1x192xf32> to vector<2x192xf32>
    %489 = arith.addf %486, %488 : vector<2x192xf32>
    %c0_207 = arith.constant 0 : index
    %c0_208 = arith.constant 0 : index
    %490 = vector.load %arg20[%c0_207, %c0_208] : memref<2x192xf32, #tpu.memory_space<vmem>>, vector<2x192xf32>
    tpu.vector_store %arg20[%c0_207, %c0_208], %489 {strides = array<i32>} : memref<2x192xf32, #tpu.memory_space<vmem>>, vector<2x192xf32>,
    return
  }
  func.func @transform_0(%arg0: i32) -> (i32, i32) {
    %c0_i32 = arith.constant 0 : i32
    %c0_i32_0 = arith.constant 0 : i32
    %c0_i32_1 = arith.constant 0 : i32
    return %c0_i32, %c0_i32_0 : i32, i32
  }
  func.func @transform_1(%arg0: i32) -> (i32, i32) {
    %c0_i32 = arith.constant 0 : i32
    %c0_i32_0 = arith.constant 0 : i32
    %c0_i32_1 = arith.constant 0 : i32
    return %c0_i32, %c0_i32_0 : i32, i32
  }
  func.func @transform_2(%arg0: i32) -> (i32, i32, i32) {
    %c0_i32 = arith.constant 0 : i32
    %c0_i32_0 = arith.constant 0 : i32
    %c0_i32_1 = arith.constant 0 : i32
    %c0_i32_2 = arith.constant 0 : i32
    return %c0_i32, %c0_i32_0, %c0_i32_1 : i32, i32, i32
  }
  func.func @transform_3(%arg0: i32) -> (i32, i32, i32) {
    %c0_i32 = arith.constant 0 : i32
    %c0_i32_0 = arith.constant 0 : i32
    %c0_i32_1 = arith.constant 0 : i32
    %c0_i32_2 = arith.constant 0 : i32
    return %c0_i32, %c0_i32_0, %c0_i32_1 : i32, i32, i32
  }
  func.func @transform_4(%arg0: i32) -> (i32, i32, i32) {
    %c0_i32 = arith.constant 0 : i32
    %c0_i32_0 = arith.constant 0 : i32
    %c0_i32_1 = arith.constant 0 : i32
    %c0_i32_2 = arith.constant 0 : i32
    return %c0_i32, %c0_i32_0, %c0_i32_1 : i32, i32, i32
  }
  func.func @transform_5(%arg0: i32) -> (i32, i32, i32) {
    %c0_i32 = arith.constant 0 : i32
    %c0_i32_0 = arith.constant 0 : i32
    %c0_i32_1 = arith.constant 0 : i32
    %c0_i32_2 = arith.constant 0 : i32
    return %c0_i32, %c0_i32_0, %c0_i32_1 : i32, i32, i32
  }
  func.func @transform_6(%arg0: i32) -> (i32, i32, i32) {
    %c0_i32 = arith.constant 0 : i32
    %c0_i32_0 = arith.constant 0 : i32
    %c0_i32_1 = arith.constant 0 : i32
    %c0_i32_2 = arith.constant 0 : i32
    return %c0_i32, %c0_i32_0, %c0_i32_1 : i32, i32, i32
  }
  func.func @transform_7(%arg0: i32) -> (i32, i32, i32) {
    %c0_i32 = arith.constant 0 : i32
    %c0_i32_0 = arith.constant 0 : i32
    %c0_i32_1 = arith.constant 0 : i32
    %c0_i32_2 = arith.constant 0 : i32
    return %c0_i32, %c0_i32_0, %c0_i32_1 : i32, i32, i32
  }
  func.func @transform_8(%arg0: i32) -> (i32, i32, i32) {
    %c0_i32 = arith.constant 0 : i32
    %c0_i32_0 = arith.constant 0 : i32
    %c0_i32_1 = arith.constant 0 : i32
    %c0_i32_2 = arith.constant 0 : i32
    return %c0_i32, %c0_i32_0, %c0_i32_1 : i32, i32, i32
  }
  func.func @transform_9(%arg0: i32) -> (i32, i32, i32) {
    %c0_i32 = arith.constant 0 : i32
    %c0_i32_0 = arith.constant 0 : i32
    %c0_i32_1 = arith.constant 0 : i32
    %c0_i32_2 = arith.constant 0 : i32
    return %c0_i32, %c0_i32_0, %c0_i32_1 : i32, i32, i32
  }
  func.func @transform_10(%arg0: i32) -> (i32, i32, i32) {
    %c0_i32 = arith.constant 0 : i32
    %c0_i32_0 = arith.constant 0 : i32
    %c0_i32_1 = arith.constant 0 : i32
    %c0_i32_2 = arith.constant 0 : i32
    return %c0_i32, %c0_i32_0, %c0_i32_1 : i32, i32, i32
  }
  func.func @transform_11(%arg0: i32) -> (i32, i32, i32) {
    %c0_i32 = arith.constant 0 : i32
    %c0_i32_0 = arith.constant 0 : i32
    %c0_i32_1 = arith.constant 0 : i32
    %c0_i32_2 = arith.constant 0 : i32
    return %c0_i32, %c0_i32_0, %c0_i32_1 : i32, i32, i32
  }
  func.func @transform_12(%arg0: i32) -> (i32, i32, i32) {
    %c0_i32 = arith.constant 0 : i32
    %c0_i32_0 = arith.constant 0 : i32
    %c0_i32_1 = arith.constant 0 : i32
    %c0_i32_2 = arith.constant 0 : i32
    return %c0_i32, %c0_i32_0, %c0_i32_1 : i32, i32, i32
  }
  func.func @transform_13(%arg0: i32) -> (i32, i32, i32) {
    %c0_i32 = arith.constant 0 : i32
    %c0_i32_0 = arith.constant 0 : i32
    %c0_i32_1 = arith.constant 0 : i32
    %c0_i32_2 = arith.constant 0 : i32
    return %c0_i32, %c0_i32_0, %c0_i32_1 : i32, i32, i32
  }
  func.func @transform_14(%arg0: i32) -> (i32, i32) {
    %c0_i32 = arith.constant 0 : i32
    %c0_i32_0 = arith.constant 0 : i32
    %c0_i32_1 = arith.constant 0 : i32
    return %c0_i32, %c0_i32_0 : i32, i32
  }
  func.func @transform_15(%arg0: i32) -> (i32, i32) {
    %c0_i32 = arith.constant 0 : i32
    %c0_i32_0 = arith.constant 0 : i32
    %c0_i32_1 = arith.constant 0 : i32
    return %c0_i32, %c0_i32_0 : i32, i32
  }
  func.func @transform_16(%arg0: i32) -> (i32, i32) {
    %c0_i32 = arith.constant 0 : i32
    %c0_i32_0 = arith.constant 0 : i32
    %c0_i32_1 = arith.constant 0 : i32
    return %c0_i32, %c0_i32_0 : i32, i32
  }
  func.func @transform_17(%arg0: i32) -> (i32, i32) {
    %c0_i32 = arith.constant 0 : i32
    %c0_i32_0 = arith.constant 0 : i32
    %c0_i32_1 = arith.constant 0 : i32
    return %c0_i32, %c0_i32_0 : i32, i32
  }
  func.func @transform_18(%arg0: i32) -> (i32, i32) {
    %c0_i32 = arith.constant 0 : i32
    %c0_i32_0 = arith.constant 0 : i32
    %c0_i32_1 = arith.constant 0 : i32
    return %c0_i32, %c0_i32_0 : i32, i32
  }
  func.func @transform_19(%arg0: i32) -> (i32, i32) {
    %c0_i32 = arith.constant 0 : i32
    %c0_i32_0 = arith.constant 0 : i32
    %c0_i32_1 = arith.constant 0 : i32
    return %c0_i32, %c0_i32_0 : i32, i32
  }
}

</mosaic_0001>

<bundles_post_ra>
// kernel: speechsim_forward.1
= control target key start
LH: loop header
LB: loop body
LE: loop exit
PB: predicated region body
PF: predicated region fallthrough
CT: control target
= control target key end

     0   :  { %s9335_s0 = inlined_call_operand.vmem [shape: f32[32,156], index: 0, kind: input, shape index: {}]   ;;  %s9336_s1 = inlined_call_operand.vmem [shape: f32[156,128], index: 1, kind: input, shape index: {}]   ;;  %s9337_s2 = inlined_call_operand.vmem [shape: f32[2,1,128], index: 2, kind: input, shape index: {}]   ;;  %s9338_s3 = inlined_call_operand.vmem [shape: f32[2,1,128], index: 3, kind: input, shape index: {}]   ;;  %s9339_s4 = inlined_call_operand.vmem [shape: f32[2,128,384], index: 4, kind: input, shape index: {}]   ;;  %s9340_s5 = inlined_call_operand.vmem [shape: f32[2,1,384], index: 5, kind: input, shape index: {}]   ;;  %s9341_s6 = inlined_call_operand.vmem [shape: f32[2,128,128], index: 6, kind: input, shape index: {}]   ;;  %s9342_s7 = inlined_call_operand.vmem [shape: f32[2,1,128], index: 7, kind: input, shape index: {}]   ;;  %s9343_s8 = inlined_call_operand.vmem [shape: f32[2,1,128], index: 8, kind: input, shape index: {}]   ;;  %s9344_s9 = inlined_call_operand.vmem [shape: f32[2,1,128], index: 9, kind: input, shape index: {}]   ;;  %s9345_s10 = inlined_call_operand.vmem [shape: f32[2,128,256], index: 10, kind: input, shape index: {}]   ;;  %s9346_s11 = inlined_call_operand.vmem [shape: f32[2,1,256], index: 11, kind: input, shape index: {}]   ;;  %s9347_s12 = inlined_call_operand.vmem [shape: f32[2,256,128], index: 12, kind: input, shape index: {}]   ;;  %s9348_s13 = inlined_call_operand.vmem [shape: f32[2,1,128], index: 13, kind: input, shape index: {}]   ;;  %s9349_s14 = inlined_call_operand.vmem [shape: f32[32,128], index: 14, kind: input, shape index: {}]   ;;  %s9350_s15 = inlined_call_operand.vmem [shape: f32[32,128], index: 15, kind: input, shape index: {}]   ;;  %s9351_s16 = inlined_call_operand.vmem [shape: f32[128,128], index: 16, kind: input, shape index: {}]   ;;  %s9352_s17 = inlined_call_operand.vmem [shape: f32[128,192], index: 17, kind: input, shape index: {}]   ;;  %s9353_s18 = inlined_call_operand.vmem [shape: f32[1,192], index: 18, kind: input, shape index: {}]   ;;  %s9354_s19 = inlined_call_operand.hbm [shape: f32[2,192], index: 19, kind: output, shape index: {}]  }
   0x1   :  { %9359 = sst [smem:[#allocation5_spill]] %s9335_s0 }
   0x2   :  { %9360 = sst [smem:[#allocation6_spill]] %s9336_s1 }
   0x3   :  { %9361 = sst [smem:[#allocation7_spill]] %s9337_s2 }
   0x4   :  { %9362 = sst [smem:[#allocation8_spill]] %s9338_s3 }
   0x5   :  { %s9363_s20 = sld [smem:[#allocation6_spill]]  ;;  %v7146_v1 = vmov 0.0   ;;  %vm115_vm0 = vcmask 228352  }
   0x6   :  { %132 = vmatprep.subr.mxu0 %v7146_v1  ;;  %413 = vmatprep.mubr.f32.mxu1 %v7146_v1  ;;  %s9364_s26 = sld [smem:[#allocation5_spill]] }
   0xb   :  { %v110_v0 = vld [vmem:[%s9363_s20 + $0x78] sm:$0xff]  ;;  %v109_v2 = vld [vmem:[%s9363_s20 + $0x70] sm:$0xff]  ;;  %v108_v3 = vld [vmem:[%s9363_s20 + $0x68] sm:$0xff] }
   0xc   :  { %133 = vmatpush1.msra.mxu0 %v110_v0  ;;  %v107_v4 = vld [vmem:[%s9363_s20 + $0x60] sm:$0xff]  ;;  %v88_v5 = vld [vmem:[%s9364_s26 + $0x8] sm:$0xff]  ;;  %v106_v6 = vld [vmem:[%s9363_s20 + $0x58] sm:$0xff] }
   0xd   :  { %134 = vmatprep.subr.mxu0 %v7146_v1  ;;  %5690 = vmatprep.mubr.msk.f32.mxu0 %vm115_vm0, %v88_v5  ;;  %v105_v7 = vld [vmem:[%s9363_s20 + $0x50] sm:$0xff] }
   0xe   :  { %135 = vmatpush1.msra.mxu0 %v109_v2 }
   0xf   :  { %136 = vmatprep.subr.mxu0 %v7146_v1 }
  0x10   :  { %137 = vmatpush1.msra.mxu0 %v108_v3 }
  0x11   :  { %138 = vmatprep.subr.mxu0 %v7146_v1 }
  0x12   :  { %139 = vmatpush1.msra.mxu0 %v107_v4 }
  0x13   :  { %140 = vmatprep.subr.mxu0 %v7146_v1 }
  0x14   :  { %24 = vsyncpa [#allocation3], 0  ;;  %141 = vmatpush1.msra.mxu0 %v106_v6  ;;  %v104_v8 = vld [vmem:[%s9363_s20 + $0x48] sm:$0xff]  ;;  %v103_v9 = vld [vmem:[%s9363_s20 + $0x40] sm:$0xff]  ;;  %vm128_vm1 = vcmask 1043456   ;;  %s9365_s3 = sld [smem:[#allocation7_spill]] }
  0x15   :  { %142 = vmatprep.subr.mxu0 %v7146_v1  ;;  %v102_v10 = vld [vmem:[%s9363_s20 + $0x38] sm:$0xff]  ;;  %v101_v11 = vld [vmem:[%s9363_s20 + $0x30] sm:$0xff]  ;;  %v100_v12 = vld [vmem:[%s9363_s20 + $0x28] sm:$0xff]  ;;  %s9366_s29 = sld [smem:[#allocation8_spill]]  ;;  %vm717_vm2 = vcmask 261120   ;;  %vm807_vm3 = vcmask 130048  }
  0x16   :  { %143 = vmatpush1.msra.mxu0 %v105_v7  ;;  %v99_v13 = vld [vmem:[%s9363_s20 + $0x20] sm:$0xff]  ;;  %v98_v14 = vld [vmem:[%s9363_s20 + $0x18] sm:$0xff]  ;;  %v97_v15 = vld [vmem:[%s9363_s20 + $0x10] sm:$0xff]  ;;  %s7147_s21 = smov 96   ;;  %s7149_s1 = smov 32   ;;  %vm1545_vm4 = vcmask 523264  }
  0x17   :  { %144 = vmatprep.subr.mxu0 %v7146_v1  ;;  %v96_v16 = vld [vmem:[%s9363_s20 + $0x8] sm:$0xff]  ;;  %v95_v17 = vld [vmem:[%s9363_s20] sm:$0xff]  ;;  %v114_v18 = vld [vmem:[%s9363_s20 + $0x98] sm:$0xf]  ;;  %vm1548_vm5 = vcmask 785408   ;;  %vm5543_vm6 = vcmask 1040384  }
  0x18   :  { %145 = vmatpush1.msra.mxu0 %v104_v8  ;;  %v113_v19 = vld [vmem:[%s9363_s20 + $0x90] sm:$0xff]  ;;  %v112_v20 = vld [vmem:[%s9363_s20 + $0x88] sm:$0xff]  ;;  %v111_v21 = vld [vmem:[%s9363_s20 + $0x80] sm:$0xff]  ;;  %vm5671_vm7 = vcmask 1041408   ;;  %vm5672_vm8 = vcmask 519170  }
  0x19   :  { %146 = vmatprep.subr.mxu0 %v7146_v1  ;;  %v87_v22 = vld [vmem:[%s9364_s26] sm:$0xff]  ;;  %v90_v23 = vld [vmem:[%s9364_s26 + $0x18] sm:$0xff]  ;;  %v89_v24 = vld [vmem:[%s9364_s26 + $0x10] sm:$0xff] }
  0x1a   :  { %147 = vmatpush1.msra.mxu0 %v103_v9  ;;  %v92_v25 = vld [vmem:[%s9364_s26 + $0x28] sm:$0xff]  ;;  %v91_v26 = vld [vmem:[%s9364_s26 + $0x20] sm:$0xff]  ;;  %v94_v27 = vld [vmem:[%s9364_s26 + $0x38] sm:$0xff] }
  0x1b   :  { %148 = vmatprep.subr.mxu0 %v7146_v1  ;;  %v93_v28 = vld [vmem:[%s9364_s26 + $0x30] sm:$0xff]  ;;  %v329_v38 = vld [vmem:[%s9339_s4 + $0x168] sm:$0xff]  ;;  %v327_v39 = vld [vmem:[%s9339_s4 + $0x158] sm:$0xff]  ;;  %s7148_s26 = smov 64  }
  0x1c   :  { %149 = vmatpush1.msra.mxu0 %v102_v10  ;;  %v330_v37 = vld [vmem:[%s9339_s4 + $0x170] sm:$0xff]  ;;  %v324_v41 = vld [vmem:[%s9339_s4 + $0x140] sm:$0xff]  ;;  %v323_v42 = vld [vmem:[%s9339_s4 + $0x138] sm:$0xff] }
  0x1d   :  { %150 = vmatprep.subr.mxu0 %v7146_v1  ;;  %349 = vmatprep.subr.mxu1 %v330_v37  ;;  %v326_v40 = vld [vmem:[%s9339_s4 + $0x150] sm:$0xff]  ;;  %v321_v43 = vld [vmem:[%s9339_s4 + $0x128] sm:$0xff]  ;;  %v320_v44 = vld [vmem:[%s9339_s4 + $0x120] sm:$0xff] }
  0x1e   :  { %151 = vmatpush1.msra.mxu0 %v101_v11  ;;  %350 = vmatpush1.msra.mxu1 %v329_v38  ;;  %v318_v57 = vld [vmem:[%s9339_s4 + $0x110] sm:$0xff]  ;;  %v317_v58 = vld [vmem:[%s9339_s4 + $0x108] sm:$0xff]  ;;  %v315_v59 = vld [vmem:[%s9339_s4 + $0xf8] sm:$0xff] }
  0x1f   :  { %152 = vmatprep.subr.mxu0 %v7146_v1  ;;  %351 = vmatprep.subr.mxu1 %v327_v39  ;;  %v314_v60 = vld [vmem:[%s9339_s4 + $0xf0] sm:$0xff]  ;;  %v312_v61 = vld [vmem:[%s9339_s4 + $0xe0] sm:$0xff]  ;;  %v311_v62 = vld [vmem:[%s9339_s4 + $0xd8] sm:$0xff] }
  0x20   :  { %153 = vmatpush1.msra.mxu0 %v100_v12  ;;  %352 = vmatpush1.msra.mxu1 %v326_v40  ;;  %v309_v63 = vld [vmem:[%s9339_s4 + $0xc8] sm:$0xff]  ;;  %v308_v0 = vld [vmem:[%s9339_s4 + $0xc0] sm:$0xff]  ;;  %v306_v2 = vld [vmem:[%s9339_s4 + $0xb0] sm:$0xff] }
  0x21   :  { %154 = vmatprep.subr.mxu0 %v7146_v1  ;;  %353 = vmatprep.subr.mxu1 %v324_v41  ;;  %v305_v3 = vld [vmem:[%s9339_s4 + $0xa8] sm:$0xff]  ;;  %v303_v4 = vld [vmem:[%s9339_s4 + $0x98] sm:$0xff]  ;;  %v302_v5 = vld [vmem:[%s9339_s4 + $0x90] sm:$0xff] }
  0x22   :  { %155 = vmatpush1.msra.mxu0 %v99_v13  ;;  %354 = vmatpush1.msra.mxu1 %v323_v42  ;;  %v300_v6 = vld [vmem:[%s9339_s4 + $0x80] sm:$0xff]  ;;  %v299_v7 = vld [vmem:[%s9339_s4 + $0x78] sm:$0xff]  ;;  %v297_v8 = vld [vmem:[%s9339_s4 + $0x68] sm:$0xff] }
  0x23   :  { %156 = vmatprep.subr.mxu0 %v7146_v1  ;;  %355 = vmatprep.subr.mxu1 %v321_v43  ;;  %v296_v9 = vld [vmem:[%s9339_s4 + $0x60] sm:$0xff]  ;;  %v294_v10 = vld [vmem:[%s9339_s4 + $0x50] sm:$0xff]  ;;  %v293_v11 = vld [vmem:[%s9339_s4 + $0x48] sm:$0xff] }
  0x24   :  { %157 = vmatpush1.msra.mxu0 %v98_v14  ;;  %356 = vmatpush1.msra.mxu1 %v320_v44  ;;  %v291_v12 = vld [vmem:[%s9339_s4 + $0x38] sm:$0xff]  ;;  %v290_v13 = vld [vmem:[%s9339_s4 + $0x30] sm:$0xff]  ;;  %v288_v14 = vld [vmem:[%s9339_s4 + $0x20] sm:$0xff] }
  0x25   :  { %158 = vmatprep.subr.mxu0 %v7146_v1  ;;  %357 = vmatprep.subr.mxu1 %v318_v57  ;;  %v7495_v37 = vld [vmem:[%s9365_s3] ss:$0 sm:$0xff]  ;;  %v307_v57 = vld [vmem:[%s9339_s4 + $0xb8] sm:$0xff]  ;;  %vm5673_vm9 = vmor %vm5672_vm8, %vm5671_vm7 }
  0x26   :  { %159 = vmatpush1.msra.mxu0 %v97_v15  ;;  %358 = vmatpush1.msra.mxu1 %v317_v58  ;;  %v287_v15 = vld [vmem:[%s9339_s4 + $0x18] sm:$0xff]  ;;  %v7501_v39 = vld [vmem:[%s9366_s29] ss:$0 sm:$0xff] }
  0x27   :  { %160 = vmatprep.subr.mxu0 %v7146_v1  ;;  %359 = vmatprep.subr.mxu1 %v315_v59  ;;  %v328_v44 = vld [vmem:[%s9339_s4 + $0x160] sm:$0xff]  ;;  %v301_v59 = vld [vmem:[%s9339_s4 + $0x88] sm:$0xff] }
  0x28   :  { %161 = vmatpush1.msra.mxu0 %v96_v16  ;;  %360 = vmatpush1.msra.mxu1 %v314_v60  ;;  %v285_v16 = vld [vmem:[%s9339_s4 + $0x8] sm:$0xff]  ;;  %v304_v58 = vld [vmem:[%s9339_s4 + $0xa0] sm:$0xff]  ;;  %v298_v60 = vld [vmem:[%s9339_s4 + $0x70] sm:$0xff] }
  0x29   :  { %162 = vmatprep.subr.mxu0 %v7146_v1  ;;  %361 = vmatprep.subr.mxu1 %v312_v61  ;;  %v295_v61 = vld [vmem:[%s9339_s4 + $0x58] sm:$0xff] }
  0x2a   :  { %163 = vmatpush1.msra.mxu0 %v95_v17  ;;  %362 = vmatpush1.msra.mxu1 %v311_v62  ;;  %v284_v17 = vld [vmem:[%s9339_s4] sm:$0xff] }
  0x2b   :  { %188 = vmatprep.subr.mxu0 %v7146_v1  ;;  %363 = vmatprep.subr.mxu1 %v309_v63  ;;  %v292_v62 = vld [vmem:[%s9339_s4 + $0x40] sm:$0xff]  ;;  %v289_v63 = vld [vmem:[%s9339_s4 + $0x28] sm:$0xff] }
  0x2c   :  { %5689 = vmatpush2.msk.msra.mxu0 %vm128_vm1, %v114_v18  ;;  %364 = vmatpush1.msra.mxu1 %v308_v0  ;;  %v331_v18 = vld [vmem:[%s9339_s4 + $0x178] sm:$0xff]  ;;  %v286_v0 = vld [vmem:[%s9339_s4 + $0x10] sm:$0xff] }
  0x2d   :  { %190 = vmatprep.subr.mxu0 %v7146_v1  ;;  %365 = vmatprep.subr.mxu1 %v306_v2  ;;  %v86_v2 = vld [vmem:[%s9351_s16 + $0x78] sm:$0xff] }
  0x2e   :  { %191 = vmatpush2.msra.mxu0 %v113_v19  ;;  %366 = vmatpush1.msra.mxu1 %v305_v3  ;;  %v85_v3 = vld [vmem:[%s9351_s16 + $0x70] sm:$0xff] }
  0x2f   :  { %192 = vmatprep.subr.mxu0 %v7146_v1  ;;  %367 = vmatprep.subr.mxu1 %v303_v4  ;;  %v84_v4 = vld [vmem:[%s9351_s16 + $0x68] sm:$0xff] }
  0x30   :  { %193 = vmatpush2.msra.mxu0 %v112_v20  ;;  %368 = vmatpush1.msra.mxu1 %v302_v5  ;;  %v83_v5 = vld [vmem:[%s9351_s16 + $0x60] sm:$0xff] }
  0x31   :  { %194 = vmatprep.subr.mxu0 %v7146_v1  ;;  %369 = vmatprep.subr.mxu1 %v300_v6  ;;  %v82_v6 = vld [vmem:[%s9351_s16 + $0x58] sm:$0xff] }
  0x32   :  { %195 = vmatpush2.msra.mxu0 %v111_v21  ;;  %370 = vmatpush1.msra.mxu1 %v299_v7  ;;  %v81_v7 = vld [vmem:[%s9351_s16 + $0x50] sm:$0xff] }
  0x33   :  { %197 = vmatmul.mubr.f32.vlgmr.msra.gmra.mxu0 %v87_v22  ;;  %371 = vmatprep.subr.mxu1 %v297_v8  ;;  %v80_v8 = vld [vmem:[%s9351_s16 + $0x48] sm:$0xff] }
  0x34   :  { %5691 = vmatprep.mubr.msk.f32.mxu0 %vm115_vm0, %v90_v23  ;;  %372 = vmatpush1.msra.mxu1 %v296_v9  ;;  %v79_v9 = vld [vmem:[%s9351_s16 + $0x40] sm:$0xff] }
  0x35   :  { %373 = vmatprep.subr.mxu1 %v294_v10  ;;  %6352 = vmatprep.subr.mxu0 %v86_v2  ;;  %v78_v10 = vld [vmem:[%s9351_s16 + $0x38] sm:$0xff] }
  0x36   :  { %374 = vmatpush1.msra.mxu1 %v293_v11  ;;  %6353 = vmatpush3.msra.mxu0 %v86_v2  ;;  %v77_v11 = vld [vmem:[%s9351_s16 + $0x30] sm:$0xff] }
  0x37   :  { %202 = vmatmul.mubr.f32.gmra.mxu0 %v89_v24  ;;  %375 = vmatprep.subr.mxu1 %v291_v12  ;;  %v76_v12 = vld [vmem:[%s9351_s16 + $0x28] sm:$0xff] }
  0x38   :  { %5692 = vmatprep.mubr.msk.f32.mxu0 %vm115_vm0, %v92_v25  ;;  %376 = vmatpush1.msra.mxu1 %v290_v13  ;;  %v75_v13 = vld [vmem:[%s9351_s16 + $0x20] sm:$0xff] }
  0x39   :  { %377 = vmatprep.subr.mxu1 %v288_v14  ;;  %6354 = vmatprep.subr.mxu0 %v85_v3  ;;  %v74_v14 = vld [vmem:[%s9351_s16 + $0x18] sm:$0xff] }
  0x3a   :  { %378 = vmatpush1.msra.mxu1 %v287_v15  ;;  %6355 = vmatpush3.msra.mxu0 %v85_v3  ;;  %v73_v15 = vld [vmem:[%s9351_s16 + $0x10] sm:$0xff] }
  0x3b   :  { %207 = vmatmul.mubr.f32.gmra.mxu0 %v91_v26  ;;  %379 = vmatprep.subr.mxu1 %v285_v16  ;;  %v72_v16 = vld [vmem:[%s9351_s16 + $0x8] sm:$0xff] }
  0x3c   :  { %5693 = vmatprep.mubr.msk.f32.mxu0 %vm115_vm0, %v94_v27  ;;  %380 = vmatpush1.msra.mxu1 %v284_v17  ;;  %v71_v17 = vld [vmem:[%s9351_s16] sm:$0xff] }
  0x3d   :  { %6314 = vmatprep.subr.mxu1 %v331_v18  ;;  %6356 = vmatprep.subr.mxu0 %v84_v4 }
  0x3e   :  { %6357 = vmatpush3.msra.mxu0 %v84_v4 }
  0x3f   :  { %212 = vmatmul.mubr.f32.gmra.mxu0 %v93_v28  ;;  %6358 = vmatprep.subr.mxu0 %v83_v5 }
  0x40   :  { %6359 = vmatpush3.msra.mxu0 %v83_v5 }
  0x41   :  { %6360 = vmatprep.subr.mxu0 %v82_v6 }
  0x42   :  { %6361 = vmatpush3.msra.mxu0 %v82_v6 }
  0x43   :  { %6362 = vmatprep.subr.mxu0 %v81_v7 }
  0x44   :  { %6363 = vmatpush3.msra.mxu0 %v81_v7 }
  0x45   :  { %6364 = vmatprep.subr.mxu0 %v80_v8 }
  0x46   :  { %6365 = vmatpush3.msra.mxu0 %v80_v8 }
  0x47   :  { %6366 = vmatprep.subr.mxu0 %v79_v9 }
  0x48   :  { %6367 = vmatpush3.msra.mxu0 %v79_v9 }
  0x49   :  { %6368 = vmatprep.subr.mxu0 %v78_v10 }
  0x4a   :  { %6369 = vmatpush3.msra.mxu0 %v78_v10 }
  0x4b   :  { %6370 = vmatprep.subr.mxu0 %v77_v11 }
  0x4c   :  { %6371 = vmatpush3.msra.mxu0 %v77_v11 }
  0x4d   :  { %6372 = vmatprep.subr.mxu0 %v76_v12 }
  0x4e   :  { %6373 = vmatpush3.msra.mxu0 %v76_v12 }
  0x4f   :  { %6374 = vmatprep.subr.mxu0 %v75_v13 }
  0x50   :  { %6375 = vmatpush3.msra.mxu0 %v75_v13 }
  0x51   :  { %6376 = vmatprep.subr.mxu0 %v74_v14 }
  0x52   :  { %6377 = vmatpush3.msra.mxu0 %v74_v14 }
  0x53   :  { %6378 = vmatprep.subr.mxu0 %v73_v15 }
  0x54   :  { %6379 = vmatpush3.msra.mxu0 %v73_v15 }
  0x55   :  { %6380 = vmatprep.subr.mxu0 %v72_v16 }
  0x56   :  { %6381 = vmatpush3.msra.mxu0 %v72_v16 }
  0x57   :  { %6382 = vmatprep.subr.mxu0 %v71_v17 }
  0x58   :  { %6383 = vmatpush3.msra.mxu0 %v71_v17 }
  0xf3   :  { %v7361_v29 = vpop.f32.mrf.mxu0 }
  0xf4   :  { %219 = vadd.xlane.f32.xlu0 %v7361_v29 }
  0xf5   :  { %v200_v30 = vpop.f32.mrf.mxu0 }
  0xf7   :  { %v7364_v31 = vpop.f32.mrf.mxu0 }
  0xf8   :  { %221 = vadd.xlane.f32.xlu0 %v7364_v31 }
  0xf9   :  { %v205_v32 = vpop.f32.mrf.mxu0 }
  0xfb   :  { %v7367_v33 = vpop.f32.mrf.mxu0 }
  0xfc   :  { %223 = vadd.xlane.f32.xlu0 %v7367_v33 }
  0xfd   :  { %v210_v34 = vpop.f32.mrf.mxu0 }
  0xff   :  { %v7370_v35 = vpop.f32.mrf.mxu0 }
 0x101   :  { %v215_v36 = vpop.f32.mrf.mxu0 }
 0x17d   :  { %v220_v45 = vpop.xlane.xlu0 %219 }
 0x17e   :  { %v228_v46 = vmul.f32 0.0078125, %v220_v45 }
 0x180   :  { %v7397_v47 = vsub.f32 %v7361_v29, %v228_v46 }
 0x181   :  { %v222_v48 = vpop.xlane.xlu0 %221 }
 0x182   :  { %v229_v49 = vmul.f32 0.0078125, %v222_v48  ;;  %v236_v50 = vmul.f32 %v7397_v47, %v7397_v47 }
 0x184   :  { %240 = vadd.xlane.f32.xlu1 %v236_v50  ;;  %v7402_v51 = vsub.f32 %v7364_v31, %v229_v49  ;;  %v322_v50 = vld [vmem:[%s9339_s4 + $0x130] sm:$0xff] }
 0x185   :  { %v224_v52 = vpop.xlane.xlu0 %223 }
 0x186   :  { %v230_v53 = vmul.f32 0.0078125, %v224_v52  ;;  %v237_v54 = vmul.f32 %v7402_v51, %v7402_v51  ;;  %v319_v52 = vld [vmem:[%s9339_s4 + $0x118] sm:$0xff] }
 0x188   :  { %242 = vadd.xlane.f32.xlu1 %v237_v54  ;;  %v7407_v55 = vsub.f32 %v7367_v33, %v230_v53  ;;  %v316_v54 = vld [vmem:[%s9339_s4 + $0x100] sm:$0xff] }
 0x18a   :  { %v238_v56 = vmul.f32 %v7407_v55, %v7407_v55 }
 0x18c   :  { %244 = vadd.xlane.f32.xlu0 %v238_v56  ;;  %225 = vadd.xlane.f32.xlu1 %v7370_v35  ;;  %v310_v56 = vld [vmem:[%s9339_s4 + $0xd0] sm:$0xff] }
 0x20d   :  { %v241_v19 = vpop.xlane.xlu1 %240 }
 0x20e   :  { %v248_v20 = vmul.f32 0.0078125, %v241_v19 }
 0x210   :  { %v252_v21 = vadd.f32 1e-05, %v248_v20 }
 0x211   :  { %v243_v22 = vpop.xlane.xlu1 %242 }
 0x212   :  { %6908 = vrsqrt.f32 %v252_v21  ;;  %v249_v23 = vmul.f32 0.0078125, %v243_v22 }
 0x214   :  { %v253_v24 = vadd.f32 1e-05, %v249_v23 }
 0x215   :  { %v245_v25 = vpop.xlane.xlu0 %244  ;;  %v226_v26 = vpop.xlane.xlu1 %225 }
 0x216   :  { %6910 = vrsqrt.f32 %v253_v24  ;;  %v250_v27 = vmul.f32 0.0078125, %v245_v25  ;;  %v231_v28 = vmul.f32 0.0078125, %v226_v26  ;;  %v334_v25 = vlaneseq }
 0x218   :  { %v254_v30 = vadd.f32 1e-05, %v250_v27  ;;  %v7488_v32 = vsub.f32 %v7370_v35, %v231_v28  ;;  %v7622_v26 = vshrl.u32 %v334_v25, 7  ;;  %v332_v28 = vld [vmem:[%s9340_s5] sm:$0x7] }
 0x21a   :  { %6912 = vrsqrt.f32 %v254_v30  ;;  %v239_v34 = vmul.f32 %v7488_v32, %v7488_v32  ;;  %v7625_v27 = vsub.s32 0, %v7622_v26  ;;  %v7631_v30 = vsub.s32 1, %v7622_v26 }
 0x21c   :  { %246 = vadd.xlane.f32.xlu1 %v239_v34  ;;  %v341_v34 = vrot.slane %v332_v28, %v7631_v30 }
 0x21f   :  { %v6909_v36 = vpop.eup %6908 }
 0x220   :  { %v260_v38 = vmul.f32 %v6909_v36, %v7397_v47  ;;  %v325_v47 = vld [vmem:[%s9339_s4 + $0x148] sm:$0xff] }
 0x222   :  { %v270_v40 = vmul.f32 %v7495_v37, %v260_v38 }
 0x223   :  { %v6911_v41 = vpop.eup %6910 }
 0x224   :  { %v7505_v42 = vadd.f32 %v7501_v39, %v270_v40  ;;  %v261_v43 = vmul.f32 %v6911_v41, %v7402_v51 }
 0x226   :  { %414 = vmatmul.mubr.f32.vlgmr.msra.gmra.mxu1 %v7505_v42  ;;  %v271_v45 = vmul.f32 %v7495_v37, %v261_v43 }
 0x227   :  { %v6913_v46 = vpop.eup %6912  ;;  %419 = vmatprep.mubr.f32.mxu1 %v7146_v1  ;;  %6315 = vmatpush3.msra.mxu1 %v331_v18 }
 0x228   :  { %v7518_v48 = vadd.f32 %v7501_v39, %v271_v45  ;;  %v262_v49 = vmul.f32 %v6913_v46, %v7407_v55  ;;  %6316 = vmatprep.subr.mxu1 %v328_v44  ;;  %v313_v55 = vld [vmem:[%s9339_s4 + $0xe8] sm:$0xff] }
 0x229   :  { %6317 = vmatpush3.msra.mxu1 %v328_v44 }
 0x22a   :  { %420 = vmatmul.mubr.f32.gmra.mxu1 %v7518_v48  ;;  %v272_v51 = vmul.f32 %v7495_v37, %v262_v49  ;;  %6318 = vmatprep.subr.mxu1 %v325_v47 }
 0x22b   :  { %425 = vmatprep.mubr.f32.mxu1 %v7146_v1  ;;  %6319 = vmatpush3.msra.mxu1 %v325_v47 }
 0x22c   :  { %v7531_v53 = vadd.f32 %v7501_v39, %v272_v51  ;;  %6320 = vmatprep.subr.mxu1 %v322_v50 }
 0x22d   :  { %6321 = vmatpush3.msra.mxu1 %v322_v50 }
 0x22e   :  { %426 = vmatmul.mubr.f32.gmra.mxu1 %v7531_v53  ;;  %6322 = vmatprep.subr.mxu1 %v319_v52 }
 0x22f   :  { %6323 = vmatpush3.msra.mxu1 %v319_v52  ;;  %431 = vmatprep.mubr.f32.mxu1 %v7146_v1  ;;  %v344_v52 = vsub.s32 2, %v7622_v26 }
 0x230   :  { %6324 = vmatprep.subr.mxu1 %v316_v54 }
 0x231   :  { %6325 = vmatpush3.msra.mxu1 %v316_v54 }
 0x232   :  { %6326 = vmatprep.subr.mxu1 %v313_v55 }
 0x233   :  { %6327 = vmatpush3.msra.mxu1 %v313_v55  ;;  %v345_v55 = vrot.slane %v332_v28, %v344_v52 }
 0x234   :  { %6328 = vmatprep.subr.mxu1 %v310_v56 }
 0x235   :  { %6329 = vmatpush3.msra.mxu1 %v310_v56 }
 0x236   :  { %6330 = vmatprep.subr.mxu1 %v307_v57 }
 0x237   :  { %6331 = vmatpush3.msra.mxu1 %v307_v57 }
 0x238   :  { %6332 = vmatprep.subr.mxu1 %v304_v58 }
 0x239   :  { %6333 = vmatpush3.msra.mxu1 %v304_v58 }
 0x23a   :  { %6334 = vmatprep.subr.mxu1 %v301_v59 }
 0x23b   :  { %6335 = vmatpush3.msra.mxu1 %v301_v59 }
 0x23c   :  { %6336 = vmatprep.subr.mxu1 %v298_v60 }
 0x23d   :  { %6337 = vmatpush3.msra.mxu1 %v298_v60  ;;  %v63_v60 = vld [vmem:[%s9349_s14] sm:$0xff] }
 0x23e   :  { %6338 = vmatprep.subr.mxu1 %v295_v61 }
 0x23f   :  { %6339 = vmatpush3.msra.mxu1 %v295_v61 }
 0x240   :  { %6340 = vmatprep.subr.mxu1 %v292_v62 }
 0x241   :  { %6341 = vmatpush3.msra.mxu1 %v292_v62  ;;  %v67_v62 = vld [vmem:[%s9350_s15] sm:$0xff] }
 0x242   :  { %6342 = vmatprep.subr.mxu1 %v289_v63 }
 0x243   :  { %6343 = vmatpush3.msra.mxu1 %v289_v63  ;;  %v64_v63 = vld [vmem:[%s9349_s14 + $0x8] sm:$0xff] }
 0x244   :  { %6344 = vmatprep.subr.mxu1 %v286_v0 }
 0x245   :  { %6345 = vmatpush3.msra.mxu1 %v286_v0  ;;  %v68_v0 = vld [vmem:[%s9350_s15 + $0x8] sm:$0xff] }
 0x246   :  { %6390 = vmatprep.subr.mxu1 %v86_v2 }
 0x2a5   :  { %v247_v18 = vpop.xlane.xlu1 %246 }
 0x2a6   :  { %v251_v19 = vmul.f32 0.0078125, %v247_v18 }
 0x2a8   :  { %v255_v20 = vadd.f32 1e-05, %v251_v19  ;;  %v7691_v19 = vld [vmem:[%s9349_s14 + $0x18] sm:$0xff] }
 0x2aa   :  { %6914 = vrsqrt.f32 %v255_v20  ;;  %v7696_v20 = vld [vmem:[%s9350_s15 + $0x18] sm:$0xff] }
 0x2b7   :  { %v6915_v21 = vpop.eup %6914 }
 0x2b8   :  { %v263_v22 = vmul.f32 %v6915_v21, %v7488_v32  ;;  %v337_v32 = vrot.slane %v332_v28, %v7625_v27  ;;  %v7701_v21 = vld [vmem:[%s9349_s14 + $0x10] sm:$0xff] }
 0x2ba   :  { %v273_v23 = vmul.f32 %v7495_v37, %v263_v22 }
 0x2bc   :  { %v283_v24 = vadd.f32 %v7501_v39, %v273_v23  ;;  %v7706_v23 = vld [vmem:[%s9350_s15 + $0x10] sm:$0xff] }
 0x2be   :  { %432 = vmatmul.mubr.f32.gmra.mxu1 %v283_v24 }
 0x2bf   :  { %6346 = vmatprep.mubr.f32.mxu1 %v7505_v42 }
 0x2c2   :  { %6347 = vmatmul.mubr.f32.vlgmr.msra.gmra.mxu1 %v7518_v48 }
 0x2c3   :  { %6349 = vmatprep.mubr.f32.mxu1 %v7531_v53  ;;  %6391 = vmatpush3.msra.mxu1 %v86_v2 }
 0x2c4   :  { %6392 = vmatprep.subr.mxu1 %v85_v3 }
 0x2c5   :  { %6393 = vmatpush3.msra.mxu1 %v85_v3 }
 0x2c6   :  { %6350 = vmatmul.mubr.f32.gmra.mxu1 %v283_v24  ;;  %6394 = vmatprep.subr.mxu1 %v84_v4 }
 0x2c7   :  { %6395 = vmatpush3.msra.mxu1 %v84_v4 }
 0x2c8   :  { %6396 = vmatprep.subr.mxu1 %v83_v5 }
 0x2c9   :  { %6397 = vmatpush3.msra.mxu1 %v83_v5 }
 0x2ca   :  { %6398 = vmatprep.subr.mxu1 %v82_v6 }
 0x2cb   :  { %6399 = vmatpush3.msra.mxu1 %v82_v6 }
 0x2cc   :  { %6400 = vmatprep.subr.mxu1 %v81_v7 }
 0x2cd   :  { %6401 = vmatpush3.msra.mxu1 %v81_v7 }
 0x2ce   :  { %6402 = vmatprep.subr.mxu1 %v80_v8 }
 0x2cf   :  { %6403 = vmatpush3.msra.mxu1 %v80_v8 }
 0x2d0   :  { %6404 = vmatprep.subr.mxu1 %v79_v9 }
 0x2d1   :  { %6405 = vmatpush3.msra.mxu1 %v79_v9 }
 0x2d2   :  { %6406 = vmatprep.subr.mxu1 %v78_v10 }
 0x2d3   :  { %6407 = vmatpush3.msra.mxu1 %v78_v10 }
 0x2d4   :  { %6408 = vmatprep.subr.mxu1 %v77_v11 }
 0x2d5   :  { %6409 = vmatpush3.msra.mxu1 %v77_v11 }
 0x2d6   :  { %6410 = vmatprep.subr.mxu1 %v76_v12 }
 0x2d7   :  { %6411 = vmatpush3.msra.mxu1 %v76_v12 }
 0x2d8   :  { %6412 = vmatprep.subr.mxu1 %v75_v13 }
 0x2d9   :  { %6413 = vmatpush3.msra.mxu1 %v75_v13 }
 0x2da   :  { %6414 = vmatprep.subr.mxu1 %v74_v14 }
 0x2db   :  { %6415 = vmatpush3.msra.mxu1 %v74_v14 }
 0x2dc   :  { %6416 = vmatprep.subr.mxu1 %v73_v15 }
 0x2dd   :  { %6417 = vmatpush3.msra.mxu1 %v73_v15 }
 0x2de   :  { %6418 = vmatprep.subr.mxu1 %v72_v16 }
 0x2df   :  { %6419 = vmatpush3.msra.mxu1 %v72_v16 }
 0x2e0   :  { %6420 = vmatprep.subr.mxu1 %v71_v17 }
 0x2e1   :  { %6421 = vmatpush3.msra.mxu1 %v71_v17 }
 0x2e6   :  { %v415_v36 = vpop.f32.mrf.mxu1 }
 0x2e7   :  { %v416_v37 = vadd.f32 %v415_v36, %v337_v32 }
 0x2e8   :  { %v417_v38 = vpop.f32.mrf.mxu1 }
 0x2e9   :  { %v418_v39 = vadd.f32 %v417_v38, %v341_v34  ;;  %6384 = vmatprep.mubr.f32.mxu0 %v416_v37  ;;  %v523_v4 = vmul.f32 %v416_v37, %v63_v60 }
 0x2ea   :  { %v421_v40 = vpop.f32.mrf.mxu1 }
 0x2eb   :  { %v422_v41 = vadd.f32 %v421_v40, %v337_v32  ;;  %6422 = vmatprep.mubr.f32.mxu1 %v418_v39  ;;  %v620_v9 = vmul.f32 %v418_v39, %v63_v60 }
 0x2ec   :  { %v423_v42 = vpop.f32.mrf.mxu1 }
 0x2ed   :  { %v424_v43 = vadd.f32 %v423_v42, %v341_v34  ;;  %6385 = vmatmul.mubr.f32.vlgmr.msra.gmra.mxu0 %v422_v41  ;;  %v524_v15 = vmul.f32 %v422_v41, %v64_v63 }
 0x2ee   :  { %v427_v44 = vpop.f32.mrf.mxu1 }
 0x2ef   :  { %v428_v45 = vadd.f32 %v427_v44, %v337_v32  ;;  %6423 = vmatmul.mubr.f32.vlgmr.msra.gmra.mxu1 %v424_v43  ;;  %v621_v5 = vmul.f32 %v424_v43, %v64_v63 }
 0x2f0   :  { %v429_v46 = vpop.f32.mrf.mxu1 }
 0x2f1   :  { %v7635_v47 = vadd.f32 %v429_v46, %v341_v34  ;;  %6387 = vmatprep.mubr.f32.mxu0 %v428_v45 }
 0x2f3   :  { %6425 = vmatprep.mubr.f32.mxu1 %v7635_v47 }
 0x37e   :  { %v433_v48 = vpop.f32.mrf.mxu1 }
 0x37f   :  { %v434_v49 = vadd.f32 %v433_v48, %v337_v32  ;;  %v525_v32 = vmul.f32 %v428_v45, %v7701_v21 }
 0x380   :  { %v435_v50 = vpop.f32.mrf.mxu1 }
 0x381   :  { %v7638_v51 = vadd.f32 %v435_v50, %v341_v34  ;;  %6388 = vmatmul.mubr.f32.gmra.mxu0 %v434_v49  ;;  %v526_v24 = vmul.f32 %v434_v49, %v7691_v19 }
 0x382   :  { %v6348_v53 = vpop.f32.mrf.mxu1 }
 0x383   :  { %6426 = vmatmul.mubr.f32.gmra.mxu1 %v7638_v51  ;;  %v7674_v16 = vadd.f32 %v6348_v53, %v345_v55 }
 0x384   :  { %v504_v54 = vpop.f32.mrf.mxu1 }
 0x385   :  { %v7681_v18 = vadd.f32 %v504_v54, %v345_v55 }
 0x386   :  { %v6351_v56 = vpop.f32.mrf.mxu1 }
 0x387   :  { %v7644_v57 = vadd.f32 %v6351_v56, %v345_v55 }
 0x388   :  { %v514_v58 = vpop.f32.mrf.mxu1 }
 0x389   :  { %v7646_v59 = vadd.f32 %v514_v58, %v345_v55 }
 0x3ad   :  { %v6386_v61 = vpop.f32.mrf.mxu0 }
 0x3ae   :  { %v613_v14 = vmul.f32 %v6386_v61, %v68_v0 }
 0x3af   :  { %v593_v2 = vpop.f32.mrf.mxu0  ;;  %v6424_v3 = vpop.f32.mrf.mxu1 }
 0x3b0   :  { %v612_v6 = vmul.f32 %v593_v2, %v67_v62  ;;  %v710_v7 = vmul.f32 %v6424_v3, %v68_v0  ;;  %v7678_v17 = vadd.f32 %v613_v14, %v524_v15 }
 0x3b1   :  { %v690_v8 = vpop.f32.mrf.mxu1 }
 0x3b2   :  { %v7660_v10 = vadd.f32 %v612_v6, %v523_v4  ;;  %v7662_v11 = vadd.f32 %v710_v7, %v621_v5  ;;  %v709_v12 = vmul.f32 %v690_v8, %v67_v62 }
 0x3b4   :  { %v7664_v13 = vadd.f32 %v709_v12, %v620_v9  ;;  %6428 = vmatprep.subr.msk.mxu0 %vm717_vm2, %v7662_v11  ;;  %6432 = vmatprep.mubr.msk.f32.mxu0 %vm717_vm2, %v7660_v10 }
 0x3b5   :  { %6429 = vmatpush3.xpose.msk.msra.mxu0 %vm717_vm2, %v7662_v11 }
 0x3b6   :  { %6430 = vmatprep.subr.msk.mxu0 %vm717_vm2, %v7664_v13 }
 0x3b9   :  { %6431 = vmatpush3.xpose.msk.msra.mxu0 %vm717_vm2, %v7664_v13 }
 0x3ba   :  { %6435 = vmatprep.subr.mxu0 %v7674_v16 }
 0x3bc   :  { %6433 = vmatmul.mubr.msk.f32.vlgmr.msra.gmra.mxu0 %vm717_vm2, %v7678_v17 }
 0x3bd   :  { %6436 = vmatpush3.msra.mxu0 %v7674_v16 }
 0x3be   :  { %6437 = vmatprep.subr.mxu0 %v7681_v18 }
 0x3bf   :  { %6438 = vmatpush3.msra.mxu0 %v7681_v18 }
 0x441   :  { %v6389_v22 = vpop.f32.mrf.mxu0 }
 0x442   :  { %v615_v25 = vmul.f32 %v6389_v22, %v7696_v20 }
 0x443   :  { %v603_v28 = vpop.f32.mrf.mxu0 }
 0x444   :  { %v7711_v34 = vadd.f32 %v615_v25, %v526_v24  ;;  %v614_v36 = vmul.f32 %v603_v28, %v7706_v23 }
 0x446   :  { %v7714_v37 = vadd.f32 %v614_v36, %v525_v32 }
 0x47c   :  { %v6434_v38 = vpop.f32.mrf.mxu0 }
 0x47d   :  { %v806_v39 = vmul.f32 0.17677669, %v6434_v38 }
 0x47e   :  { %v796_v40 = vpop.f32.mrf.mxu0 }
 0x47f   :  { %v805_v41 = vmul.f32 0.17677669, %v796_v40  ;;  %v811_v42 = vsel %vm807_vm3, %v806_v39, -inf }
 0x480   :  { %812 = vmax.xlane.f32.xlu1 %v811_v42 }
 0x481   :  { %v808_v43 = vsel %vm807_vm3, %v805_v41, -inf }
 0x482   :  { %809 = vmax.xlane.f32.xlu0 %v808_v43 }
 0x509   :  { %v813_v44 = vpop.xlane.xlu1 %812 }
 0x50a   :  { %v815_v46 = vsub.f32 %v806_v39, %v813_v44 }
 0x50b   :  { %v810_v45 = vpop.xlane.xlu0 %809 }
 0x50c   :  { %v818_v48 = vmul.f32 1.442695, %v815_v46  ;;  %v814_v49 = vsub.f32 %v805_v41, %v810_v45 }
 0x50e   :  { %6916 = vpow2.f32 %v818_v48  ;;  %v816_v50 = vmul.f32 1.442695, %v814_v49 }
 0x510   :  { %6918 = vpow2.f32 %v816_v50 }
 0x51b   :  { %v6917_v53 = vpop.eup %6916 }
 0x51c   :  { %v823_v54 = vsel %vm807_vm3, %v6917_v53, 0.0 }
 0x51d   :  { %v6919_v55 = vpop.eup %6918  ;;  %824 = vadd.xlane.f32.xlu1 %v823_v54 }
 0x51e   :  { %v820_v56 = vsel %vm807_vm3, %v6919_v55, 0.0 }
 0x51f   :  { %821 = vadd.xlane.f32.xlu0 %v820_v56 }
 0x52e   :  { %915 = vrot.lane.b32.xlu1 %v7664_v13, %s7147_s21 }
 0x532   :  { %911 = vrot.lane.b32.xlu1 %v7660_v10, %s7147_s21 }
 0x535   :  { %917 = vrot.lane.b32.xlu0 %v7662_v11, %s7147_s21 }
 0x536   :  { %913 = vrot.lane.b32.xlu1 %v7678_v17, %s7147_s21 }
 0x5a6   :  { %v825_v58 = vpop.xlane.xlu1 %824 }
 0x5a7   :  { %6920 = vrcp.f32 %v825_v58 }
 0x5a8   :  { %v822_v60 = vpop.xlane.xlu0 %821 }
 0x5a9   :  { %6922 = vrcp.f32 %v822_v60 }
 0x5aa   :  { %v916_v62 = vpop.permute.xlu1 %915 }
 0x5ac   :  { %v918_v61 = vpop.permute.xlu0 %917 }
 0x5ad   :  { %6442 = vmatprep.subr.msk.mxu0 %vm717_vm2, %v918_v61 }
 0x5ae   :  { %v912_v4 = vpop.permute.xlu1 %911 }
 0x5b2   :  { %v914_v5 = vpop.permute.xlu1 %913 }
 0x5b4   :  { %v6921_v63 = vpop.eup %6920 }
 0x5b5   :  { %v829_v3 = vmul.f32 %v6921_v63, %v6917_v53 }
 0x5b6   :  { %v6923_v0 = vpop.eup %6922 }
 0x5b7   :  { %v827_v2 = vmul.f32 %v6923_v0, %v6919_v55 }
 0x5b9   :  { %6439 = vmatprep.mubr.msk.f32.mxu0 %vm807_vm3, %v827_v2 }
 0x5ba   :  { %6440 = vmatmul.mubr.msk.f32.vlgmr.msra.gmra.mxu0 %vm807_vm3, %v829_v3 }
 0x5bb   :  { %6443 = vmatpush3.xpose.msk.msra.mxu0 %vm717_vm2, %v918_v61  ;;  %6446 = vmatprep.mubr.msk.f32.mxu0 %vm717_vm2, %v912_v4 }
 0x5bc   :  { %6444 = vmatprep.subr.msk.mxu0 %vm717_vm2, %v916_v62 }
 0x5bf   :  { %6445 = vmatpush3.xpose.msk.msra.mxu0 %vm717_vm2, %v916_v62 }
 0x5c2   :  { %6447 = vmatmul.mubr.msk.f32.vlgmr.msra.gmra.mxu0 %vm717_vm2, %v914_v5 }
 0x67a   :  { %v7736_v6 = vpop.f32.mrf.mxu0 }
 0x67c   :  { %v7738_v7 = vpop.f32.mrf.mxu0 }
 0x682   :  { %v6448_v8 = vpop.f32.mrf.mxu0 }
 0x683   :  { %v1003_v9 = vmul.f32 0.17677669, %v6448_v8 }
 0x684   :  { %v993_v12 = vpop.f32.mrf.mxu0 }
 0x685   :  { %v1002_v14 = vmul.f32 0.17677669, %v993_v12  ;;  %v1007_v15 = vsel %vm807_vm3, %v1003_v9, -inf }
 0x686   :  { %1008 = vmax.xlane.f32.xlu1 %v1007_v15 }
 0x687   :  { %v1004_v22 = vsel %vm807_vm3, %v1002_v14, -inf }
 0x688   :  { %1005 = vmax.xlane.f32.xlu0 %v1004_v22 }
 0x697   :  { %1028 = vrot.lane.b32.xlu1 %v7681_v18, %s7147_s21 }
 0x69b   :  { %1121 = vrot.lane.b32.xlu1 %v7662_v11, %s7148_s26 }
 0x69f   :  { %1119 = vrot.lane.b32.xlu1 %v7664_v13, %s7148_s26 }
 0x6a3   :  { %1117 = vrot.lane.b32.xlu1 %v7678_v17, %s7148_s26 }
 0x70f   :  { %v1009_v24 = vpop.xlane.xlu1 %1008 }
 0x710   :  { %v1011_v25 = vsub.f32 %v1003_v9, %v1009_v24 }
 0x711   :  { %v1006_v28 = vpop.xlane.xlu0 %1005 }
 0x712   :  { %v1014_v32 = vmul.f32 1.442695, %v1011_v25  ;;  %v1010_v36 = vsub.f32 %v1002_v14, %v1006_v28 }
 0x713   :  { %v1029_v46 = vpop.permute.xlu1 %1028 }
 0x714   :  { %6924 = vpow2.f32 %v1014_v32  ;;  %v1012_v38 = vmul.f32 1.442695, %v1010_v36 }
 0x716   :  { %6926 = vpow2.f32 %v1012_v38 }
 0x717   :  { %v1122_v48 = vpop.permute.xlu1 %1121 }
 0x71b   :  { %v1120_v56 = vpop.permute.xlu1 %1119 }
 0x71f   :  { %v1118_v58 = vpop.permute.xlu1 %1117 }
 0x721   :  { %v6925_v39 = vpop.eup %6924 }
 0x722   :  { %v1019_v40 = vsel %vm807_vm3, %v6925_v39, 0.0 }
 0x723   :  { %v6927_v41 = vpop.eup %6926  ;;  %1020 = vadd.xlane.f32.xlu0 %v1019_v40 }
 0x724   :  { %v1016_v42 = vsel %vm807_vm3, %v6927_v41, 0.0 }
 0x727   :  { %1017 = vadd.xlane.f32.xlu0 %v1016_v42 }
 0x73d   :  { %1030 = vrot.lane.b32.xlu0 %v7674_v16, %s7147_s21 }
 0x741   :  { %1115 = vrot.lane.b32.xlu0 %v7660_v10, %s7148_s26 }
 0x7ac   :  { %v1021_v43 = vpop.xlane.xlu0 %1020 }
 0x7ad   :  { %6928 = vrcp.f32 %v1021_v43 }
 0x7b0   :  { %v1018_v44 = vpop.xlane.xlu0 %1017 }
 0x7b1   :  { %6930 = vrcp.f32 %v1018_v44 }
 0x7b4   :  { %v1031_v45 = vpop.permute.xlu0 %1030 }
 0x7b5   :  { %6449 = vmatprep.subr.mxu0 %v1031_v45 }
 0x7b6   :  { %6450 = vmatpush3.msra.mxu0 %v1031_v45 }
 0x7b7   :  { %6451 = vmatprep.subr.mxu0 %v1029_v46 }
 0x7b8   :  { %6452 = vmatpush3.msra.mxu0 %v1029_v46  ;;  %v1116_v55 = vpop.permute.xlu0 %1115 }
 0x7b9   :  { %6456 = vmatprep.subr.msk.mxu0 %vm717_vm2, %v1122_v48 }
 0x7ba   :  { %v6929_v49 = vpop.eup %6928 }
 0x7bb   :  { %v1025_v54 = vmul.f32 %v6929_v49, %v6925_v39 }
 0x7be   :  { %v6931_v50 = vpop.eup %6930 }
 0x7bf   :  { %v1023_v53 = vmul.f32 %v6931_v50, %v6927_v41 }
 0x7c1   :  { %6453 = vmatprep.mubr.msk.f32.mxu0 %vm807_vm3, %v1023_v53 }
 0x7c2   :  { %6454 = vmatmul.mubr.msk.f32.vlgmr.msra.gmra.mxu0 %vm807_vm3, %v1025_v54 }
 0x7c3   :  { %6457 = vmatpush3.xpose.msk.msra.mxu0 %vm717_vm2, %v1122_v48  ;;  %6460 = vmatprep.mubr.msk.f32.mxu0 %vm717_vm2, %v1116_v55 }
 0x7c4   :  { %6458 = vmatprep.subr.msk.mxu0 %vm717_vm2, %v1120_v56 }
 0x7c7   :  { %6459 = vmatpush3.xpose.msk.msra.mxu0 %vm717_vm2, %v1120_v56 }
 0x7ca   :  { %6461 = vmatmul.mubr.msk.f32.vlgmr.msra.gmra.mxu0 %vm717_vm2, %v1118_v58 }
 0x882   :  { %v7764_v60 = vpop.f32.mrf.mxu0 }
 0x884   :  { %v7766_v61 = vpop.f32.mrf.mxu0 }
 0x885   :  { %v6848_v62 = vpack.i.bf16 %v7764_v60, %v7766_v61 }
 0x88a   :  { %v6462_v63 = vpop.f32.mrf.mxu0 }
 0x88b   :  { %v1207_v0 = vmul.f32 0.17677669, %v6462_v63 }
 0x88c   :  { %v1197_v2 = vpop.f32.mrf.mxu0 }
 0x88d   :  { %v1206_v3 = vmul.f32 0.17677669, %v1197_v2  ;;  %v1211_v4 = vsel %vm807_vm3, %v1207_v0, -inf }
 0x88e   :  { %1212 = vmax.xlane.f32.xlu1 %v1211_v4 }
 0x88f   :  { %v1208_v5 = vsel %vm807_vm3, %v1206_v3, -inf }
 0x890   :  { %1209 = vmax.xlane.f32.xlu0 %v1208_v5 }
 0x89f   :  { %1230 = vrot.lane.b32.xlu1 %v7681_v18, %s7148_s26 }
 0x8a3   :  { %1323 = vrot.lane.b32.xlu1 %v7662_v11, %s7149_s1 }
 0x8a7   :  { %1321 = vrot.lane.b32.xlu1 %v7664_v13, %s7149_s1 }
 0x8ab   :  { %1319 = vrot.lane.b32.xlu1 %v7678_v17, %s7149_s1 }
 0x917   :  { %v1213_v8 = vpop.xlane.xlu1 %1212 }
 0x918   :  { %v1215_v9 = vsub.f32 %v1207_v0, %v1213_v8 }
 0x919   :  { %v1210_v12 = vpop.xlane.xlu0 %1209 }
 0x91a   :  { %v1218_v14 = vmul.f32 1.442695, %v1215_v9  ;;  %v1214_v15 = vsub.f32 %v1206_v3, %v1210_v12 }
 0x91b   :  { %v1231_v32 = vpop.permute.xlu1 %1230 }
 0x91c   :  { %6932 = vpow2.f32 %v1218_v14  ;;  %v1216_v22 = vmul.f32 1.442695, %v1214_v15  ;;  %v6427_v14 = vpop.f32.mrf.mxu1 }
 0x91e   :  { %6934 = vpow2.f32 %v1216_v22  ;;  %v712_v22 = vmul.f32 %v6427_v14, %v7696_v20 }
 0x91f   :  { %v1324_v38 = vpop.permute.xlu1 %1323 }
 0x923   :  { %v1322_v43 = vpop.permute.xlu1 %1321 }
 0x927   :  { %v1320_v44 = vpop.permute.xlu1 %1319 }
 0x929   :  { %v6933_v24 = vpop.eup %6932 }
 0x92a   :  { %v1223_v25 = vsel %vm807_vm3, %v6933_v24, 0.0 }
 0x92b   :  { %v6935_v28 = vpop.eup %6934  ;;  %1224 = vadd.xlane.f32.xlu0 %v1223_v25  ;;  %v623_v25 = vmul.f32 %v7638_v51, %v7691_v19 }
 0x92c   :  { %v1220_v11 = vsel %vm807_vm3, %v6935_v28, 0.0 }
 0x92f   :  { %1221 = vadd.xlane.f32.xlu0 %v1220_v11  ;;  %v7815_v11 = vadd.f32 %v712_v22, %v623_v25 }
 0x945   :  { %1232 = vrot.lane.b32.xlu0 %v7674_v16, %s7148_s26 }
 0x949   :  { %1317 = vrot.lane.b32.xlu0 %v7660_v10, %s7149_s1 }
 0x9b4   :  { %v1225_v13 = vpop.xlane.xlu0 %1224 }
 0x9b5   :  { %6936 = vrcp.f32 %v1225_v13 }
 0x9b8   :  { %v1222_v17 = vpop.xlane.xlu0 %1221 }
 0x9b9   :  { %6938 = vrcp.f32 %v1222_v17 }
 0x9bc   :  { %v1233_v36 = vpop.permute.xlu0 %1232 }
 0x9bd   :  { %6463 = vmatprep.subr.mxu0 %v1233_v36 }
 0x9be   :  { %6464 = vmatpush3.msra.mxu0 %v1233_v36  ;;  %v622_v36 = vmul.f32 %v7635_v47, %v7701_v21 }
 0x9bf   :  { %6465 = vmatprep.subr.mxu0 %v1231_v32 }
 0x9c0   :  { %6466 = vmatpush3.msra.mxu0 %v1231_v32  ;;  %v1318_v10 = vpop.permute.xlu0 %1317 }
 0x9c1   :  { %6470 = vmatprep.subr.msk.mxu0 %vm717_vm2, %v1324_v38 }
 0x9c2   :  { %v6937_v39 = vpop.eup %6936 }
 0x9c3   :  { %v1229_v42 = vmul.f32 %v6937_v39, %v6933_v24 }
 0x9c6   :  { %v6939_v40 = vpop.eup %6938 }
 0x9c7   :  { %v1227_v41 = vmul.f32 %v6939_v40, %v6935_v28 }
 0x9c9   :  { %6467 = vmatprep.mubr.msk.f32.mxu0 %vm807_vm3, %v1227_v41 }
 0x9ca   :  { %6468 = vmatmul.mubr.msk.f32.vlgmr.msra.gmra.mxu0 %vm807_vm3, %v1229_v42 }
 0x9cb   :  { %6471 = vmatpush3.xpose.msk.msra.mxu0 %vm717_vm2, %v1324_v38  ;;  %6474 = vmatprep.mubr.msk.f32.mxu0 %vm717_vm2, %v1318_v10 }
 0x9cc   :  { %6472 = vmatprep.subr.msk.mxu0 %vm717_vm2, %v1322_v43 }
 0x9cf   :  { %6473 = vmatpush3.xpose.msk.msra.mxu0 %vm717_vm2, %v1322_v43 }
 0x9d0   :  { %6491 = vmatprep.subr.mxu0 %v7644_v57 }
 0x9d2   :  { %6475 = vmatmul.mubr.msk.f32.vlgmr.msra.gmra.mxu0 %vm717_vm2, %v1320_v44 }
 0x9d3   :  { %6492 = vmatpush3.msra.mxu0 %v7644_v57 }
 0x9d4   :  { %6493 = vmatprep.subr.mxu0 %v7646_v59 }
 0x9d5   :  { %6494 = vmatpush3.msra.mxu0 %v7646_v59 }
 0xa8a   :  { %v7798_v46 = vpop.f32.mrf.mxu0 }
 0xa8c   :  { %v7800_v45 = vpop.f32.mrf.mxu0 }
 0xa8d   :  { %v6853_v48 = vpack.i.bf16 %v7798_v46, %v7800_v45 }
 0xa92   :  { %v6476_v49 = vpop.f32.mrf.mxu0 }
 0xa93   :  { %v1409_v50 = vmul.f32 0.17677669, %v6476_v49 }
 0xa94   :  { %v1399_v53 = vpop.f32.mrf.mxu0 }
 0xa95   :  { %v1408_v54 = vmul.f32 0.17677669, %v1399_v53  ;;  %v1413_v55 = vsel %vm807_vm3, %v1409_v50, -inf }
 0xa96   :  { %1414 = vmax.xlane.f32.xlu1 %v1413_v55 }
 0xa97   :  { %v1410_v56 = vsel %vm807_vm3, %v1408_v54, -inf }
 0xa98   :  { %1411 = vmax.xlane.f32.xlu0 %v1410_v56 }
 0xaa7   :  { %1432 = vrot.lane.b32.xlu1 %v7681_v18, %s7149_s1 }
 0xb1f   :  { %v1415_v58 = vpop.xlane.xlu1 %1414 }
 0xb20   :  { %v1417_v63 = vsub.f32 %v1409_v50, %v1415_v58 }
 0xb21   :  { %v1412_v0 = vpop.xlane.xlu0 %1411 }
 0xb22   :  { %v1420_v2 = vmul.f32 1.442695, %v1417_v63  ;;  %v1416_v3 = vsub.f32 %v1408_v54, %v1412_v0 }
 0xb23   :  { %v1433_v28 = vpop.permute.xlu1 %1432 }
 0xb24   :  { %6940 = vpow2.f32 %v1420_v2  ;;  %v1418_v4 = vmul.f32 1.442695, %v1416_v3 }
 0xb26   :  { %6942 = vpow2.f32 %v1418_v4 }
 0xb31   :  { %v6941_v5 = vpop.eup %6940 }
 0xb32   :  { %v1425_v8 = vsel %vm807_vm3, %v6941_v5, 0.0 }
 0xb33   :  { %v6943_v9 = vpop.eup %6942  ;;  %1426 = vadd.xlane.f32.xlu0 %v1425_v8 }
 0xb34   :  { %v1422_v12 = vsel %vm807_vm3, %v6943_v9, 0.0 }
 0xb37   :  { %1423 = vadd.xlane.f32.xlu0 %v1422_v12 }
 0xb4d   :  { %1434 = vrot.lane.b32.xlu0 %v7674_v16, %s7149_s1  ;;  %v700_v16 = vpop.f32.mrf.mxu1 }
 0xb4e   :  { %v711_v32 = vmul.f32 %v700_v16, %v7706_v23 }
 0xb50   :  { %v7823_v19 = vadd.f32 %v711_v32, %v622_v36 }
 0xbbc   :  { %v1427_v18 = vpop.xlane.xlu0 %1426 }
 0xbbd   :  { %6944 = vrcp.f32 %v1427_v18 }
 0xbc0   :  { %v1424_v15 = vpop.xlane.xlu0 %1423 }
 0xbc1   :  { %6946 = vrcp.f32 %v1424_v15 }
 0xbc4   :  { %v1435_v24 = vpop.permute.xlu0 %1434 }
 0xbc5   :  { %6477 = vmatprep.subr.mxu1 %v1435_v24 }
 0xbc6   :  { %6478 = vmatpush3.msra.mxu1 %v1435_v24 }
 0xbc7   :  { %6479 = vmatprep.subr.mxu1 %v1433_v28 }
 0xbc8   :  { %6480 = vmatpush3.msra.mxu1 %v1433_v28 }
 0xbc9   :  { %6484 = vmatprep.subr.msk.mxu1 %vm717_vm2, %v7815_v11 }
 0xbca   :  { %v6945_v13 = vpop.eup %6944 }
 0xbcb   :  { %v1431_v51 = vmul.f32 %v6945_v13, %v6941_v5 }
 0xbce   :  { %v6947_v17 = vpop.eup %6946 }
 0xbcf   :  { %v1429_v20 = vmul.f32 %v6947_v17, %v6943_v9 }
 0xbd1   :  { %6481 = vmatprep.mubr.msk.f32.mxu1 %vm807_vm3, %v1429_v20 }
 0xbd2   :  { %6482 = vmatmul.mubr.msk.f32.vlgmr.msra.gmra.mxu1 %vm807_vm3, %v1431_v51 }
 0xbd3   :  { %6485 = vmatpush3.xpose.msk.msra.mxu1 %vm717_vm2, %v7815_v11  ;;  %6488 = vmatprep.mubr.msk.f32.mxu1 %vm717_vm2, %v7714_v37 }
 0xbd4   :  { %6486 = vmatprep.subr.msk.mxu1 %vm717_vm2, %v7823_v19 }
 0xbd7   :  { %6487 = vmatpush3.xpose.msk.msra.mxu1 %vm717_vm2, %v7823_v19 }
 0xbda   :  { %6489 = vmatmul.mubr.msk.f32.vlgmr.msra.gmra.mxu1 %vm717_vm2, %v7711_v34 }
 0xc92   :  { %v7836_v47 = vpop.f32.mrf.mxu1 }
 0xc94   :  { %v7838_v21 = vpop.f32.mrf.mxu1 }
 0xc95   :  { %v6858_v23 = vpack.i.bf16 %v7836_v47, %v7838_v21 }
 0xc9a   :  { %v6490_v38 = vpop.f32.mrf.mxu1 }
 0xc9b   :  { %v1639_v39 = vmul.f32 0.17677669, %v6490_v38 }
 0xc9c   :  { %v1629_v40 = vpop.f32.mrf.mxu1 }
 0xc9d   :  { %v1638_v41 = vmul.f32 0.17677669, %v1629_v40  ;;  %v1643_v42 = vsel %vm807_vm3, %v1639_v39, -inf }
 0xc9e   :  { %1644 = vmax.xlane.f32.xlu0 %v1643_v42 }
 0xc9f   :  { %v1640_v10 = vsel %vm807_vm3, %v1638_v41, -inf }
 0xca0   :  { %1641 = vmax.xlane.f32.xlu1 %v1640_v10 }
 0xd27   :  { %v1645_v43 = vpop.xlane.xlu0 %1644 }
 0xd28   :  { %v1647_v44 = vsub.f32 %v1639_v39, %v1645_v43 }
 0xd29   :  { %v1642_v49 = vpop.xlane.xlu1 %1641 }
 0xd2a   :  { %v1650_v50 = vmul.f32 1.442695, %v1647_v44  ;;  %v1646_v53 = vsub.f32 %v1638_v41, %v1642_v49 }
 0xd2c   :  { %6948 = vpow2.f32 %v1650_v50  ;;  %v1648_v54 = vmul.f32 1.442695, %v1646_v53 }
 0xd2e   :  { %6950 = vpow2.f32 %v1648_v54 }
 0xd39   :  { %v6949_v55 = vpop.eup %6948 }
 0xd3a   :  { %v1655_v56 = vsel %vm807_vm3, %v6949_v55, 0.0 }
 0xd3b   :  { %v6951_v58 = vpop.eup %6950  ;;  %1656 = vadd.xlane.f32.xlu1 %v1655_v56 }
 0xd3c   :  { %v1652_v63 = vsel %vm807_vm3, %v6951_v58, 0.0 }
 0xd3d   :  { %1653 = vadd.xlane.f32.xlu0 %v1652_v63 }
 0xd4c   :  { %1747 = vrot.lane.b32.xlu1 %v7823_v19, %s7147_s21 }
 0xd50   :  { %1743 = vrot.lane.b32.xlu1 %v7714_v37, %s7147_s21 }
 0xd53   :  { %1749 = vrot.lane.b32.xlu0 %v7815_v11, %s7147_s21 }
 0xd54   :  { %1745 = vrot.lane.b32.xlu1 %v7711_v34, %s7147_s21 }
 0xdc4   :  { %v1657_v0 = vpop.xlane.xlu1 %1656 }
 0xdc5   :  { %6952 = vrcp.f32 %v1657_v0 }
 0xdc6   :  { %v1654_v2 = vpop.xlane.xlu0 %1653 }
 0xdc7   :  { %6954 = vrcp.f32 %v1654_v2 }
 0xdc8   :  { %v1748_v4 = vpop.permute.xlu1 %1747 }
 0xdca   :  { %v1750_v3 = vpop.permute.xlu0 %1749 }
 0xdcb   :  { %6498 = vmatprep.subr.msk.mxu0 %vm717_vm2, %v1750_v3 }
 0xdcc   :  { %v1744_v18 = vpop.permute.xlu1 %1743 }
 0xdd0   :  { %v1746_v14 = vpop.permute.xlu1 %1745 }
 0xdd2   :  { %v6953_v5 = vpop.eup %6952 }
 0xdd3   :  { %v1661_v12 = vmul.f32 %v6953_v5, %v6949_v55 }
 0xdd4   :  { %v6955_v8 = vpop.eup %6954 }
 0xdd5   :  { %v1659_v9 = vmul.f32 %v6955_v8, %v6951_v58 }
 0xdd7   :  { %6495 = vmatprep.mubr.msk.f32.mxu0 %vm807_vm3, %v1659_v9 }
 0xdd8   :  { %6496 = vmatmul.mubr.msk.f32.vlgmr.msra.gmra.mxu0 %vm807_vm3, %v1661_v12 }
 0xdd9   :  { %6499 = vmatpush3.xpose.msk.msra.mxu0 %vm717_vm2, %v1750_v3  ;;  %6502 = vmatprep.mubr.msk.f32.mxu0 %vm717_vm2, %v1744_v18 }
 0xdda   :  { %6500 = vmatprep.subr.msk.mxu0 %vm717_vm2, %v1748_v4 }
 0xddd   :  { %6501 = vmatpush3.xpose.msk.msra.mxu0 %vm717_vm2, %v1748_v4 }
 0xde0   :  { %6503 = vmatmul.mubr.msk.f32.vlgmr.msra.gmra.mxu0 %vm717_vm2, %v1746_v14 }
 0xe98   :  { %v7862_v15 = vpop.f32.mrf.mxu0 }
 0xe9a   :  { %v7864_v22 = vpop.f32.mrf.mxu0 }
 0xea0   :  { %v6504_v24 = vpop.f32.mrf.mxu0 }
 0xea1   :  { %v1835_v25 = vmul.f32 0.17677669, %v6504_v24 }
 0xea2   :  { %v1825_v28 = vpop.f32.mrf.mxu0 }
 0xea3   :  { %v1834_v16 = vmul.f32 0.17677669, %v1825_v28  ;;  %v1839_v13 = vsel %vm807_vm3, %v1835_v25, -inf }
 0xea4   :  { %1840 = vmax.xlane.f32.xlu1 %v1839_v13 }
 0xea5   :  { %v1836_v17 = vsel %vm807_vm3, %v1834_v16, -inf }
 0xea6   :  { %1837 = vmax.xlane.f32.xlu0 %v1836_v17 }
 0xeb5   :  { %1860 = vrot.lane.b32.xlu1 %v7646_v59, %s7147_s21 }
 0xeb9   :  { %1953 = vrot.lane.b32.xlu1 %v7815_v11, %s7148_s26 }
 0xebd   :  { %1951 = vrot.lane.b32.xlu1 %v7823_v19, %s7148_s26 }
 0xec1   :  { %1949 = vrot.lane.b32.xlu1 %v7711_v34, %s7148_s26 }
 0xf2d   :  { %v1841_v32 = vpop.xlane.xlu1 %1840 }
 0xf2e   :  { %v1843_v20 = vsub.f32 %v1835_v25, %v1841_v32 }
 0xf2f   :  { %v1838_v36 = vpop.xlane.xlu0 %1837 }
 0xf30   :  { %v1846_v51 = vmul.f32 1.442695, %v1843_v20  ;;  %v1842_v38 = vsub.f32 %v1834_v16, %v1838_v36 }
 0xf31   :  { %v1861_v49 = vpop.permute.xlu1 %1860 }
 0xf32   :  { %6956 = vpow2.f32 %v1846_v51  ;;  %v1844_v39 = vmul.f32 1.442695, %v1842_v38 }
 0xf34   :  { %6958 = vpow2.f32 %v1844_v39 }
 0xf35   :  { %v1954_v53 = vpop.permute.xlu1 %1953 }
 0xf39   :  { %v1952_v0 = vpop.permute.xlu1 %1951 }
 0xf3d   :  { %v1950_v2 = vpop.permute.xlu1 %1949 }
 0xf3f   :  { %v6957_v40 = vpop.eup %6956 }
 0xf40   :  { %v1851_v41 = vsel %vm807_vm3, %v6957_v40, 0.0 }
 0xf41   :  { %v6959_v42 = vpop.eup %6958  ;;  %1852 = vadd.xlane.f32.xlu0 %v1851_v41 }
 0xf42   :  { %v1848_v10 = vsel %vm807_vm3, %v6959_v42, 0.0 }
 0xf45   :  { %1849 = vadd.xlane.f32.xlu0 %v1848_v10 }
 0xf5b   :  { %1862 = vrot.lane.b32.xlu0 %v7644_v57, %s7147_s21 }
 0xf5f   :  { %1947 = vrot.lane.b32.xlu0 %v7714_v37, %s7148_s26 }
 0xfca   :  { %v1853_v43 = vpop.xlane.xlu0 %1852 }
 0xfcb   :  { %6960 = vrcp.f32 %v1853_v43 }
 0xfce   :  { %v1850_v44 = vpop.xlane.xlu0 %1849 }
 0xfcf   :  { %6962 = vrcp.f32 %v1850_v44 }
 0xfd2   :  { %v1863_v50 = vpop.permute.xlu0 %1862 }
 0xfd3   :  { %6505 = vmatprep.subr.mxu1 %v1863_v50 }
 0xfd4   :  { %6506 = vmatpush3.msra.mxu1 %v1863_v50 }
 0xfd5   :  { %6507 = vmatprep.subr.mxu1 %v1861_v49 }
 0xfd6   :  { %6508 = vmatpush3.msra.mxu1 %v1861_v49  ;;  %v1948_v63 = vpop.permute.xlu0 %1947 }
 0xfd7   :  { %6512 = vmatprep.subr.msk.mxu1 %vm717_vm2, %v1954_v53 }
 0xfd8   :  { %v6961_v54 = vpop.eup %6960 }
 0xfd9   :  { %v1857_v58 = vmul.f32 %v6961_v54, %v6957_v40 }
 0xfdc   :  { %v6963_v55 = vpop.eup %6962 }
 0xfdd   :  { %v1855_v56 = vmul.f32 %v6963_v55, %v6959_v42 }
 0xfdf   :  { %6509 = vmatprep.mubr.msk.f32.mxu1 %vm807_vm3, %v1855_v56 }
 0xfe0   :  { %6510 = vmatmul.mubr.msk.f32.vlgmr.msra.gmra.mxu1 %vm807_vm3, %v1857_v58 }
 0xfe1   :  { %6513 = vmatpush3.xpose.msk.msra.mxu1 %vm717_vm2, %v1954_v53  ;;  %6516 = vmatprep.mubr.msk.f32.mxu1 %vm717_vm2, %v1948_v63 }
 0xfe2   :  { %6514 = vmatprep.subr.msk.mxu1 %vm717_vm2, %v1952_v0 }
 0xfe5   :  { %6515 = vmatpush3.xpose.msk.msra.mxu1 %vm717_vm2, %v1952_v0 }
 0xfe8   :  { %6517 = vmatmul.mubr.msk.f32.vlgmr.msra.gmra.mxu1 %vm717_vm2, %v1950_v2 }
0x10a0   :  { %v7890_v3 = vpop.f32.mrf.mxu1 }
0x10a2   :  { %v7892_v4 = vpop.f32.mrf.mxu1 }
0x10a3   :  { %v6863_v5 = vpack.i.bf16 %v7890_v3, %v7892_v4 }
0x10a8   :  { %v6518_v8 = vpop.f32.mrf.mxu1 }
0x10a9   :  { %v2039_v9 = vmul.f32 0.17677669, %v6518_v8 }
0x10aa   :  { %v2029_v12 = vpop.f32.mrf.mxu1 }
0x10ab   :  { %v2038_v18 = vmul.f32 0.17677669, %v2029_v12  ;;  %v2043_v14 = vsel %vm807_vm3, %v2039_v9, -inf }
0x10ac   :  { %2044 = vmax.xlane.f32.xlu1 %v2043_v14 }
0x10ad   :  { %v2040_v24 = vsel %vm807_vm3, %v2038_v18, -inf }
0x10ae   :  { %2041 = vmax.xlane.f32.xlu0 %v2040_v24 }
0x10bd   :  { %2062 = vrot.lane.b32.xlu1 %v7646_v59, %s7148_s26 }
0x10c1   :  { %2155 = vrot.lane.b32.xlu1 %v7815_v11, %s7149_s1 }
0x10c5   :  { %2153 = vrot.lane.b32.xlu1 %v7823_v19, %s7149_s1 }
0x10c9   :  { %2151 = vrot.lane.b32.xlu1 %v7711_v34, %s7149_s1 }
0x1135   :  { %v2045_v25 = vpop.xlane.xlu1 %2044 }
0x1136   :  { %v2047_v28 = vsub.f32 %v2039_v9, %v2045_v25 }
0x1137   :  { %v2042_v16 = vpop.xlane.xlu0 %2041 }
0x1138   :  { %v2050_v13 = vmul.f32 1.442695, %v2047_v28  ;;  %v2046_v17 = vsub.f32 %v2038_v18, %v2042_v16 }
0x1139   :  { %v2063_v38 = vpop.permute.xlu1 %2062 }
0x113a   :  { %6964 = vpow2.f32 %v2050_v13  ;;  %v2048_v32 = vmul.f32 1.442695, %v2046_v17 }
0x113c   :  { %6966 = vpow2.f32 %v2048_v32 }
0x113d   :  { %v2156_v40 = vpop.permute.xlu1 %2155 }
0x1141   :  { %v2154_v44 = vpop.permute.xlu1 %2153 }
0x1145   :  { %v2152_v49 = vpop.permute.xlu1 %2151 }
0x1147   :  { %v6965_v20 = vpop.eup %6964 }
0x1148   :  { %v2055_v36 = vsel %vm807_vm3, %v6965_v20, 0.0 }
0x1149   :  { %v6967_v51 = vpop.eup %6966  ;;  %2056 = vadd.xlane.f32.xlu0 %v2055_v36 }
0x114a   :  { %v2052_v11 = vsel %vm807_vm3, %v6967_v51, 0.0 }
0x114d   :  { %2053 = vadd.xlane.f32.xlu0 %v2052_v11  ;;  %v2394_v11 = vld [vmem:[%s9341_s6 + $0x68] sm:$0xff] }
0x1163   :  { %2064 = vrot.lane.b32.xlu0 %v7644_v57, %s7148_s26 }
0x1167   :  { %2149 = vrot.lane.b32.xlu0 %v7714_v37, %s7149_s1 }
0x11d2   :  { %v2057_v34 = vpop.xlane.xlu0 %2056 }
0x11d3   :  { %6968 = vrcp.f32 %v2057_v34  ;;  %v2392_v34 = vld [vmem:[%s9341_s6 + $0x58] sm:$0xff] }
0x11d6   :  { %v2054_v19 = vpop.xlane.xlu0 %2053 }
0x11d7   :  { %6970 = vrcp.f32 %v2054_v19  ;;  %v2391_v19 = vld [vmem:[%s9341_s6 + $0x50] sm:$0xff] }
0x11da   :  { %v2065_v39 = vpop.permute.xlu0 %2064 }
0x11db   :  { %6519 = vmatprep.subr.mxu0 %v2065_v39 }
0x11dc   :  { %6520 = vmatpush3.msra.mxu0 %v2065_v39  ;;  %v2389_v39 = vld [vmem:[%s9341_s6 + $0x40] sm:$0xff] }
0x11dd   :  { %6521 = vmatprep.subr.mxu0 %v2063_v38 }
0x11de   :  { %6522 = vmatpush3.msra.mxu0 %v2063_v38  ;;  %v2150_v37 = vpop.permute.xlu0 %2149  ;;  %v2390_v38 = vld [vmem:[%s9341_s6 + $0x48] sm:$0xff] }
0x11df   :  { %6526 = vmatprep.subr.msk.mxu0 %vm717_vm2, %v2156_v40 }
0x11e0   :  { %v6969_v41 = vpop.eup %6968 }
0x11e1   :  { %v2061_v43 = vmul.f32 %v6969_v41, %v6965_v20  ;;  %v2395_v20 = vld [vmem:[%s9341_s6 + $0x70] sm:$0xff] }
0x11e2   :  { %v2387_v41 = vld [vmem:[%s9341_s6 + $0x30] sm:$0xff] }
0x11e4   :  { %v6971_v42 = vpop.eup %6970 }
0x11e5   :  { %v2059_v10 = vmul.f32 %v6971_v42, %v6967_v51  ;;  %v2386_v42 = vld [vmem:[%s9341_s6 + $0x28] sm:$0xff] }
0x11e7   :  { %6523 = vmatprep.mubr.msk.f32.mxu0 %vm807_vm3, %v2059_v10  ;;  %v2385_v10 = vld [vmem:[%s9341_s6 + $0x20] sm:$0xff] }
0x11e8   :  { %6524 = vmatmul.mubr.msk.f32.vlgmr.msra.gmra.mxu0 %vm807_vm3, %v2061_v43  ;;  %v2384_v43 = vld [vmem:[%s9341_s6 + $0x18] sm:$0xff] }
0x11e9   :  { %6527 = vmatpush3.xpose.msk.msra.mxu0 %vm717_vm2, %v2156_v40  ;;  %6530 = vmatprep.mubr.msk.f32.mxu0 %vm717_vm2, %v2150_v37  ;;  %v2388_v40 = vld [vmem:[%s9341_s6 + $0x38] sm:$0xff]  ;;  %v2383_v37 = vld [vmem:[%s9341_s6 + $0x10] sm:$0xff] }
0x11ea   :  { %6528 = vmatprep.subr.msk.mxu0 %vm717_vm2, %v2154_v44 }
0x11ed   :  { %6529 = vmatpush3.xpose.msk.msra.mxu0 %vm717_vm2, %v2154_v44 }
0x11f0   :  { %6531 = vmatmul.mubr.msk.f32.vlgmr.msra.gmra.mxu0 %vm717_vm2, %v2152_v49  ;;  %v2382_v49 = vld [vmem:[%s9341_s6 + $0x8] sm:$0xff] }
0x11f1   :  { %2671 = vmatprep.mubr.f32.mxu0 %v7146_v1 }
0x12a8   :  { %v6525_v50 = vpop.f32.mrf.mxu0 }
0x12aa   :  { %v2140_v53 = vpop.f32.mrf.mxu0 }
0x12ab   :  { %v6868_v54 = vpack.i.bf16 %v6525_v50, %v2140_v53 }
0x12b0   :  { %v6532_v55 = vpop.f32.mrf.mxu0 }
0x12b1   :  { %v2241_v56 = vmul.f32 0.17677669, %v6532_v55 }
0x12b2   :  { %v2231_v58 = vpop.f32.mrf.mxu0 }
0x12b3   :  { %v2240_v63 = vmul.f32 0.17677669, %v2231_v58  ;;  %v2245_v0 = vsel %vm807_vm3, %v2241_v56, -inf }
0x12b4   :  { %2246 = vmax.xlane.f32.xlu1 %v2245_v0 }
0x12b5   :  { %v2242_v2 = vsel %vm807_vm3, %v2240_v63, -inf }
0x12b6   :  { %2243 = vmax.xlane.f32.xlu0 %v2242_v2 }
0x12c5   :  { %2264 = vrot.lane.b32.xlu1 %v7646_v59, %s7149_s1 }
0x12c9   :  { %6849 = vrot.lane.b32.xlu1 %v6848_v62, %s7149_s1 }
0x12cd   :  { %6854 = vrot.lane.b32.xlu1 %v6853_v48, %s7148_s26 }
0x12d1   :  { %6864 = vrot.lane.b32.xlu1 %v6863_v5, %s7149_s1 }
0x133d   :  { %v2247_v8 = vpop.xlane.xlu1 %2246 }
0x133e   :  { %v2249_v9 = vsub.f32 %v2241_v56, %v2247_v8 }
0x133f   :  { %v2244_v12 = vpop.xlane.xlu0 %2243 }
0x1340   :  { %v2252_v18 = vmul.f32 1.442695, %v2249_v9  ;;  %v2248_v59 = vsub.f32 %v2240_v63, %v2244_v12 }
0x1341   :  { %v2265_v48 = vpop.permute.xlu1 %2264 }
0x1342   :  { %6972 = vpow2.f32 %v2252_v18  ;;  %v2250_v14 = vmul.f32 1.442695, %v2248_v59 }
0x1344   :  { %6974 = vpow2.f32 %v2250_v14 }
0x1345   :  { %v7946_v4 = vpop.permute.xlu1 %6849 }
0x1346   :  { %v6852_v44 = vunpack.i.h.bf16 %v7946_v4 }
0x1348   :  { %v1544_v55 = vsel %vm717_vm2, %v7736_v6, %v6852_v44  ;;  %v8022_v6 = vld [vmem:[%s9342_s7] ss:$0 sm:$0xff]  ;;  %v2578_v44 = vld [vmem:[%s9345_s10 + $0x78] sm:$0xff] }
0x1349   :  { %v7951_v47 = vpop.permute.xlu1 %6854 }
0x134a   :  { %v6856_v25 = vunpack.i.l.bf16 %v7951_v47  ;;  %v6857_v50 = vunpack.i.h.bf16 %v7951_v47 }
0x134c   :  { %v1547_v56 = vsel %vm1545_vm4, %v1544_v55, %v6857_v50  ;;  %v2576_v50 = vld [vmem:[%s9345_s10 + $0x68] sm:$0xff]  ;;  %v2573_v55 = vld [vmem:[%s9345_s10 + $0x50] sm:$0xff] }
0x134f   :  { %v6973_v60 = vpop.eup %6972 }
0x1350   :  { %v2257_v61 = vsel %vm807_vm3, %v6973_v60, 0.0 }
0x1351   :  { %v6975_v62 = vpop.eup %6974  ;;  %2258 = vadd.xlane.f32.xlu0 %v2257_v61  ;;  %v2591_v61 = vld [vmem:[%s9345_s10 + $0xe0] sm:$0xff] }
0x1352   :  { %v2254_v46 = vsel %vm807_vm3, %v6975_v62, 0.0 }
0x1355   :  { %2255 = vadd.xlane.f32.xlu0 %v2254_v46 }
0x136b   :  { %2266 = vrot.lane.b32.xlu0 %v7644_v57, %s7149_s1  ;;  %v2396_v57 = vld [vmem:[%s9341_s6 + $0x78] sm:$0xff] }
0x136f   :  { %6859 = vrot.lane.b32.xlu0 %v6858_v23, %s7147_s21  ;;  %v6851_v23 = vunpack.i.l.bf16 %v7946_v4 }
0x1371   :  { %v1543_v32 = vsel %vm717_vm2, %v7738_v7, %v6851_v23  ;;  %v2393_v7 = vld [vmem:[%s9341_s6 + $0x60] sm:$0xff] }
0x1372   :  { %v1546_v36 = vsel %vm1545_vm4, %v1543_v32, %v6856_v25 }
0x1373   :  { %6869 = vrot.lane.b32.xlu0 %v6868_v54, %s7148_s26  ;;  %v2381_v54 = vld [vmem:[%s9341_s6] sm:$0xff] }
0x13da   :  { %v2259_v45 = vpop.xlane.xlu0 %2258 }
0x13db   :  { %6976 = vrcp.f32 %v2259_v45 }
0x13de   :  { %v2256_v3 = vpop.xlane.xlu0 %2255 }
0x13df   :  { %6978 = vrcp.f32 %v2256_v3 }
0x13e2   :  { %v2267_v5 = vpop.permute.xlu0 %2266 }
0x13e3   :  { %6533 = vmatprep.subr.mxu1 %v2267_v5 }
0x13e4   :  { %6534 = vmatpush3.msra.mxu1 %v2267_v5 }
0x13e5   :  { %6535 = vmatprep.subr.mxu1 %v2265_v48 }
0x13e6   :  { %6536 = vmatpush3.msra.mxu1 %v2265_v48  ;;  %v7953_v21 = vpop.permute.xlu0 %6859 }
0x13e7   :  { %6540 = vmatprep.subr.mxu1 %v2396_v57  ;;  %v6861_v16 = vunpack.i.l.bf16 %v7953_v21  ;;  %v6862_v53 = vunpack.i.h.bf16 %v7953_v21 }
0x13e8   :  { %v6977_v24 = vpop.eup %6976 }
0x13e9   :  { %v2263_v17 = vmul.f32 %v6977_v24, %v6973_v60  ;;  %v1549_v51 = vsel %vm1548_vm5, %v1546_v36, %v6861_v16  ;;  %v1550_v58 = vsel %vm1548_vm5, %v1547_v56, %v6862_v53  ;;  %v2592_v60 = vld [vmem:[%s9345_s10 + $0xe8] sm:$0xff]  ;;  %v2575_v53 = vld [vmem:[%s9345_s10 + $0x60] sm:$0xff] }
0x13ea   :  { %v6870_v46 = vpop.permute.xlu0 %6869  ;;  %v2572_v56 = vld [vmem:[%s9345_s10 + $0x48] sm:$0xff] }
0x13eb   :  { %v6872_v3 = vunpack.i.h.bf16 %v6870_v46  ;;  %v6871_v4 = vunpack.i.l.bf16 %v6870_v46 }
0x13ec   :  { %v6979_v28 = vpop.eup %6978 }
0x13ed   :  { %v2261_v13 = vmul.f32 %v6979_v28, %v6975_v62  ;;  %v6865_v62 = vpop.permute.xlu1 %6864 }
0x13ee   :  { %v6867_v45 = vunpack.i.h.bf16 %v6865_v62  ;;  %v6866_v48 = vunpack.i.l.bf16 %v6865_v62 }
0x13ef   :  { %6537 = vmatprep.mubr.msk.f32.mxu1 %vm807_vm3, %v2261_v13 }
0x13f0   :  { %6538 = vmatmul.mubr.msk.f32.vlgmr.msra.gmra.mxu1 %vm807_vm3, %v2263_v17  ;;  %v2375_v21 = vsel %vm717_vm2, %v7864_v22, %v6866_v48  ;;  %v2376_v23 = vsel %vm717_vm2, %v7862_v15, %v6867_v45 }
0x13f1   :  { %6541 = vmatpush3.msra.mxu1 %v2396_v57  ;;  %6572 = vmatprep.mubr.f32.mxu1 %v1549_v51  ;;  %v2377_v24 = vsel %vm1545_vm4, %v2375_v21, %v6871_v4  ;;  %v2378_v25 = vsel %vm1545_vm4, %v2376_v23, %v6872_v3  ;;  %v2767_v21 = vld [vmem:[%s9347_s12 + $0xf8] sm:$0xff] }
0x13f2   :  { %6542 = vmatprep.subr.mxu1 %v2395_v20  ;;  %v2751_v23 = vld [vmem:[%s9347_s12 + $0x78] sm:$0xff] }
0x13f3   :  { %6543 = vmatpush3.msra.mxu1 %v2395_v20 }
0x13f4   :  { %6544 = vmatprep.subr.mxu1 %v2394_v11 }
0x13f5   :  { %6545 = vmatpush3.msra.mxu1 %v2394_v11  ;;  %v2590_v11 = vld [vmem:[%s9345_s10 + $0xd8] sm:$0xff] }
0x13f6   :  { %6546 = vmatprep.subr.mxu1 %v2393_v7 }
0x13f7   :  { %6547 = vmatpush3.msra.mxu1 %v2393_v7  ;;  %v2589_v7 = vld [vmem:[%s9345_s10 + $0xd0] sm:$0xff] }
0x13f8   :  { %6548 = vmatprep.subr.mxu1 %v2392_v34 }
0x13f9   :  { %6549 = vmatpush3.msra.mxu1 %v2392_v34  ;;  %v2588_v34 = vld [vmem:[%s9345_s10 + $0xc8] sm:$0xff] }
0x13fa   :  { %6550 = vmatprep.subr.mxu1 %v2391_v19 }
0x13fb   :  { %6551 = vmatpush3.msra.mxu1 %v2391_v19  ;;  %v2587_v19 = vld [vmem:[%s9345_s10 + $0xc0] sm:$0xff] }
0x13fc   :  { %6552 = vmatprep.subr.mxu1 %v2390_v38 }
0x13fd   :  { %6553 = vmatpush3.msra.mxu1 %v2390_v38  ;;  %v2586_v38 = vld [vmem:[%s9345_s10 + $0xb8] sm:$0xff] }
0x13fe   :  { %6554 = vmatprep.subr.mxu1 %v2389_v39 }
0x13ff   :  { %6555 = vmatpush3.msra.mxu1 %v2389_v39  ;;  %v2585_v39 = vld [vmem:[%s9345_s10 + $0xb0] sm:$0xff] }
0x1400   :  { %6556 = vmatprep.subr.mxu1 %v2388_v40 }
0x1401   :  { %6557 = vmatpush3.msra.mxu1 %v2388_v40  ;;  %v2584_v40 = vld [vmem:[%s9345_s10 + $0xa8] sm:$0xff] }
0x1402   :  { %6558 = vmatprep.subr.mxu1 %v2387_v41 }
0x1403   :  { %6559 = vmatpush3.msra.mxu1 %v2387_v41  ;;  %v2583_v41 = vld [vmem:[%s9345_s10 + $0xa0] sm:$0xff] }
0x1404   :  { %6560 = vmatprep.subr.mxu1 %v2386_v42 }
0x1405   :  { %6561 = vmatpush3.msra.mxu1 %v2386_v42  ;;  %v2582_v42 = vld [vmem:[%s9345_s10 + $0x98] sm:$0xff] }
0x1406   :  { %6562 = vmatprep.subr.mxu1 %v2385_v10 }
0x1407   :  { %6563 = vmatpush3.msra.mxu1 %v2385_v10  ;;  %v2581_v10 = vld [vmem:[%s9345_s10 + $0x90] sm:$0xff] }
0x1408   :  { %6564 = vmatprep.subr.mxu1 %v2384_v43 }
0x1409   :  { %6565 = vmatpush3.msra.mxu1 %v2384_v43  ;;  %v2580_v43 = vld [vmem:[%s9345_s10 + $0x88] sm:$0xff] }
0x140a   :  { %6566 = vmatprep.subr.mxu1 %v2383_v37 }
0x140b   :  { %6567 = vmatpush3.msra.mxu1 %v2383_v37  ;;  %v2579_v37 = vld [vmem:[%s9345_s10 + $0x80] sm:$0xff] }
0x140c   :  { %6568 = vmatprep.subr.mxu1 %v2382_v49 }
0x140d   :  { %6569 = vmatpush3.msra.mxu1 %v2382_v49  ;;  %v2577_v49 = vld [vmem:[%s9345_s10 + $0x70] sm:$0xff] }
0x140e   :  { %6570 = vmatprep.subr.mxu1 %v2381_v54 }
0x140f   :  { %6571 = vmatpush3.msra.mxu1 %v2381_v54  ;;  %v2574_v54 = vld [vmem:[%s9345_s10 + $0x58] sm:$0xff] }
0x1410   :  { %6573 = vmatmul.mubr.f32.vlgmr.msra.gmra.mxu1 %v1550_v58  ;;  %v2571_v58 = vld [vmem:[%s9345_s10 + $0x40] sm:$0xff]  ;;  %6082 = vmatprep.subr.mxu1 %v2767_v21 }
0x1411   :  { %6083 = vmatpush3.msra.mxu1 %v2751_v23 }
0x14b0   :  { %v6539_v63 = vpop.f32.mrf.mxu1 }
0x14b2   :  { %v2342_v0 = vpop.f32.mrf.mxu1 }
0x14b3   :  { %v6873_v2 = vpack.i.bf16 %v6539_v63, %v2342_v0  ;;  %v2570_v63 = vld [vmem:[%s9345_s10 + $0x38] sm:$0xff]  ;;  %v2569_v0 = vld [vmem:[%s9345_s10 + $0x30] sm:$0xff] }
0x14b5   :  { %6874 = vrot.lane.b32.xlu1 %v6873_v2, %s7147_s21  ;;  %v2568_v2 = vld [vmem:[%s9345_s10 + $0x28] sm:$0xff] }
0x14d0   :  { %v6574_v8 = vpop.f32.mrf.mxu1 }
0x14d1   :  { %v2483_v12 = vadd.f32 %v6574_v8, %v7364_v31  ;;  %v2594_v31 = vld [vmem:[%s9345_s10 + $0xf8] sm:$0xff]  ;;  %v2567_v8 = vld [vmem:[%s9345_s10 + $0x20] sm:$0xff] }
0x14d2   :  { %v2463_v9 = vpop.f32.mrf.mxu1  ;;  %2607 = vmatprep.subr.mxu0 %v2594_v31  ;;  %v2563_v31 = vld [vmem:[%s9345_s10] sm:$0xff] }
0x14d3   :  { %v2482_v18 = vadd.f32 %v2463_v9, %v7361_v29  ;;  %v8028_v14 = vadd.f32 %v8022_v6, %v2483_v12  ;;  %v2593_v29 = vld [vmem:[%s9345_s10 + $0xf0] sm:$0xff]  ;;  %v2566_v9 = vld [vmem:[%s9345_s10 + $0x18] sm:$0xff] }
0x14d4   :  { %2608 = vmatpush1.msra.mxu0 %v2593_v29  ;;  %v2565_v12 = vld [vmem:[%s9345_s10 + $0x10] sm:$0xff] }
0x14d5   :  { %v8025_v59 = vadd.f32 %v8022_v6, %v2482_v18  ;;  %2609 = vmatprep.subr.mxu0 %v2592_v60  ;;  %v2564_v18 = vld [vmem:[%s9345_s10 + $0x8] sm:$0xff] }
0x14d6   :  { %2610 = vmatpush1.msra.mxu0 %v2591_v61 }
0x14d7   :  { %2499 = vadd.xlane.f32.xlu0 %v8025_v59  ;;  %2611 = vmatprep.subr.mxu0 %v2590_v11  ;;  %v2764_v11 = vld [vmem:[%s9347_s12 + $0xe0] sm:$0xff] }
0x14d8   :  { %2612 = vmatpush1.msra.mxu0 %v2589_v7  ;;  %v2763_v7 = vld [vmem:[%s9347_s12 + $0xd8] sm:$0xff] }
0x14d9   :  { %2501 = vadd.xlane.f32.xlu1 %v8028_v14  ;;  %2613 = vmatprep.subr.mxu0 %v2588_v34  ;;  %v2747_v34 = vld [vmem:[%s9347_s12 + $0x58] sm:$0xff] }
0x14da   :  { %2614 = vmatpush1.msra.mxu0 %v2587_v19  ;;  %v2762_v19 = vld [vmem:[%s9347_s12 + $0xd0] sm:$0xff] }
0x14db   :  { %2615 = vmatprep.subr.mxu0 %v2586_v38  ;;  %v2746_v38 = vld [vmem:[%s9347_s12 + $0x50] sm:$0xff] }
0x14dc   :  { %2616 = vmatpush1.msra.mxu0 %v2585_v39  ;;  %v2761_v39 = vld [vmem:[%s9347_s12 + $0xc8] sm:$0xff] }
0x14dd   :  { %2617 = vmatprep.subr.mxu0 %v2584_v40  ;;  %v2745_v40 = vld [vmem:[%s9347_s12 + $0x48] sm:$0xff] }
0x14de   :  { %2618 = vmatpush1.msra.mxu0 %v2583_v41  ;;  %v2760_v41 = vld [vmem:[%s9347_s12 + $0xc0] sm:$0xff] }
0x14df   :  { %2619 = vmatprep.subr.mxu0 %v2582_v42  ;;  %v2744_v42 = vld [vmem:[%s9347_s12 + $0x40] sm:$0xff] }
0x14e0   :  { %2620 = vmatpush1.msra.mxu0 %v2581_v10  ;;  %v2759_v10 = vld [vmem:[%s9347_s12 + $0xb8] sm:$0xff] }
0x14e1   :  { %2621 = vmatprep.subr.mxu0 %v2580_v43  ;;  %v2743_v43 = vld [vmem:[%s9347_s12 + $0x38] sm:$0xff] }
0x14e2   :  { %2622 = vmatpush1.msra.mxu0 %v2579_v37  ;;  %v2758_v37 = vld [vmem:[%s9347_s12 + $0xb0] sm:$0xff] }
0x14e3   :  { %2623 = vmatprep.subr.mxu0 %v2578_v44  ;;  %v2742_v44 = vld [vmem:[%s9347_s12 + $0x30] sm:$0xff] }
0x14e4   :  { %2624 = vmatpush1.msra.mxu0 %v2577_v49  ;;  %v2757_v49 = vld [vmem:[%s9347_s12 + $0xa8] sm:$0xff] }
0x14e5   :  { %2625 = vmatprep.subr.mxu0 %v2576_v50  ;;  %v2741_v50 = vld [vmem:[%s9347_s12 + $0x28] sm:$0xff] }
0x14e6   :  { %2626 = vmatpush1.msra.mxu0 %v2575_v53  ;;  %v2756_v53 = vld [vmem:[%s9347_s12 + $0xa0] sm:$0xff] }
0x14e7   :  { %2627 = vmatprep.subr.mxu0 %v2574_v54  ;;  %v2740_v54 = vld [vmem:[%s9347_s12 + $0x20] sm:$0xff] }
0x14e8   :  { %2628 = vmatpush1.msra.mxu0 %v2573_v55  ;;  %v2755_v55 = vld [vmem:[%s9347_s12 + $0x98] sm:$0xff] }
0x14e9   :  { %2629 = vmatprep.subr.mxu0 %v2572_v56  ;;  %v2739_v56 = vld [vmem:[%s9347_s12 + $0x18] sm:$0xff] }
0x14ea   :  { %2630 = vmatpush1.msra.mxu0 %v2571_v58  ;;  %v2754_v58 = vld [vmem:[%s9347_s12 + $0x90] sm:$0xff] }
0x14eb   :  { %2631 = vmatprep.subr.mxu0 %v2570_v63  ;;  %v2738_v63 = vld [vmem:[%s9347_s12 + $0x10] sm:$0xff] }
0x14ec   :  { %2632 = vmatpush1.msra.mxu0 %v2569_v0  ;;  %v2753_v0 = vld [vmem:[%s9347_s12 + $0x88] sm:$0xff] }
0x14ed   :  { %2633 = vmatprep.subr.mxu0 %v2568_v2  ;;  %v2737_v2 = vld [vmem:[%s9347_s12 + $0x8] sm:$0xff] }
0x14ee   :  { %2634 = vmatpush1.msra.mxu0 %v2567_v8  ;;  %v2752_v8 = vld [vmem:[%s9347_s12 + $0x80] sm:$0xff] }
0x14ef   :  { %2635 = vmatprep.subr.mxu0 %v2566_v9  ;;  %v2736_v9 = vld [vmem:[%s9347_s12] sm:$0xff] }
0x14f0   :  { %2636 = vmatpush1.msra.mxu0 %v2565_v12 }
0x14f1   :  { %2637 = vmatprep.subr.mxu0 %v2564_v18 }
0x14f2   :  { %2638 = vmatpush1.msra.mxu0 %v2563_v31 }
0x1527   :  { %v6875_v5 = vpop.permute.xlu1 %6874 }
0x1528   :  { %v6877_v57 = vunpack.i.h.bf16 %v6875_v5  ;;  %v6876_v47 = vunpack.i.l.bf16 %v6875_v5 }
0x152a   :  { %v2379_v28 = vsel %vm1548_vm5, %v2377_v24, %v6876_v47  ;;  %v2380_v16 = vsel %vm1548_vm5, %v2378_v25, %v6877_v57  ;;  %v2766_v24 = vld [vmem:[%s9347_s12 + $0xf0] sm:$0xff]  ;;  %v8174_v25 = vld [vmem:[%s9344_s9] ss:$0 sm:$0xff] }
0x152b   :  { %6575 = vmatprep.mubr.f32.mxu1 %v2379_v28  ;;  %v2750_v28 = vld [vmem:[%s9347_s12 + $0x70] sm:$0xff]  ;;  %6084 = vmatprep.subr.mxu1 %v2766_v24 }
0x152c   :  { %6576 = vmatmul.mubr.f32.gmra.mxu1 %v2380_v16 }
0x152d   :  { %6085 = vmatpush3.msra.mxu1 %v2750_v28 }
0x1560   :  { %v2500_v13 = vpop.xlane.xlu0 %2499 }
0x1561   :  { %v2507_v17 = vmul.f32 0.0078125, %v2500_v13  ;;  %v2765_v13 = vld [vmem:[%s9347_s12 + $0xe8] sm:$0xff] }
0x1562   :  { %v2502_v32 = vpop.xlane.xlu1 %2501  ;;  %6086 = vmatprep.subr.mxu1 %v2765_v13 }
0x1563   :  { %v2508_v20 = vmul.f32 0.0078125, %v2502_v32  ;;  %v8053_v36 = vsub.f32 %v8025_v59, %v2507_v17  ;;  %v2749_v32 = vld [vmem:[%s9347_s12 + $0x68] sm:$0xff] }
0x1564   :  { %6087 = vmatpush3.msra.mxu1 %v2749_v32 }
0x1565   :  { %v8056_v22 = vsub.f32 %v8028_v14, %v2508_v20  ;;  %v2515_v15 = vmul.f32 %v8053_v36, %v8053_v36  ;;  %6088 = vmatprep.subr.mxu1 %v2764_v11 }
0x1567   :  { %2519 = vadd.xlane.f32.xlu0 %v2515_v15  ;;  %v2516_v51 = vmul.f32 %v8056_v22, %v8056_v22 }
0x156b   :  { %2521 = vadd.xlane.f32.xlu0 %v2516_v51 }
0x15ec   :  { %v6577_v29 = vpop.f32.mrf.mxu1 }
0x15ed   :  { %v2485_v60 = vadd.f32 %v6577_v29, %v7370_v35 }
0x15ee   :  { %v2473_v61 = vpop.f32.mrf.mxu1 }
0x15ef   :  { %v8148_v62 = vadd.f32 %v8022_v6, %v2485_v60  ;;  %v2484_v46 = vadd.f32 %v2473_v61, %v7367_v33  ;;  %v8159_v33 = vld [vmem:[%s9343_s8] ss:$0 sm:$0xff] }
0x15f0   :  { %v2520_v45 = vpop.xlane.xlu0 %2519 }
0x15f1   :  { %v8152_v48 = vadd.f32 %v8022_v6, %v2484_v46  ;;  %v2527_v3 = vmul.f32 0.0078125, %v2520_v45  ;;  %2505 = vadd.xlane.f32.xlu1 %v8148_v62 }
0x15f3   :  { %v2531_v4 = vadd.f32 1e-05, %v2527_v3  ;;  %2503 = vadd.xlane.f32.xlu0 %v8152_v48  ;;  %v2595_v3 = vld [vmem:[%s9346_s11] sm:$0x3] }
0x15f4   :  { %v2522_v5 = vpop.xlane.xlu0 %2521 }
0x15f5   :  { %6980 = vrsqrt.f32 %v2531_v4  ;;  %v2528_v57 = vmul.f32 0.0078125, %v2522_v5  ;;  %v8276_v4 = vrot.slane %v2595_v3, %v7625_v27  ;;  %v8279_v5 = vrot.slane %v2595_v3, %v7631_v30 }
0x15f7   :  { %v2532_v35 = vadd.f32 1e-05, %v2528_v57 }
0x15f9   :  { %6982 = vrsqrt.f32 %v2532_v35 }
0x1602   :  { %v6981_v47 = vpop.eup %6980 }
0x1603   :  { %v2539_v6 = vmul.f32 %v6981_v47, %v8053_v36 }
0x1605   :  { %v2549_v16 = vmul.f32 %v8159_v33, %v2539_v6 }
0x1606   :  { %v6983_v17 = vpop.eup %6982 }
0x1607   :  { %v2559_v20 = vadd.f32 %v8174_v25, %v2549_v16  ;;  %v2540_v36 = vmul.f32 %v6983_v17, %v8056_v22  ;;  %v2748_v22 = vld [vmem:[%s9347_s12 + $0x60] sm:$0xff] }
0x1608   :  { %6089 = vmatpush3.msra.mxu1 %v2748_v22 }
0x1609   :  { %2672 = vmatmul.mubr.f32.vlgmr.msra.gmra.mxu0 %v2559_v20  ;;  %v2550_v15 = vmul.f32 %v8159_v33, %v2540_v36  ;;  %6090 = vmatprep.subr.mxu1 %v2763_v7 }
0x160a   :  { %2677 = vmatprep.mubr.f32.mxu0 %v7146_v1  ;;  %6091 = vmatpush3.msra.mxu1 %v2747_v34 }
0x160b   :  { %v2560_v51 = vadd.f32 %v8174_v25, %v2550_v15  ;;  %6092 = vmatprep.subr.mxu1 %v2762_v19 }
0x160c   :  { %6093 = vmatpush3.msra.mxu1 %v2746_v38 }
0x160d   :  { %2678 = vmatmul.mubr.f32.gmra.mxu0 %v2560_v51  ;;  %6094 = vmatprep.subr.mxu1 %v2761_v39 }
0x160e   :  { %2683 = vmatprep.mubr.f32.mxu0 %v7146_v1  ;;  %6095 = vmatpush3.msra.mxu1 %v2745_v40 }
0x160f   :  { %6096 = vmatprep.subr.mxu1 %v2760_v41 }
0x1610   :  { %6097 = vmatpush3.msra.mxu1 %v2744_v42 }
0x1611   :  { %6098 = vmatprep.subr.mxu1 %v2759_v10 }
0x1612   :  { %6099 = vmatpush3.msra.mxu1 %v2743_v43 }
0x1613   :  { %6100 = vmatprep.subr.mxu1 %v2758_v37 }
0x1614   :  { %6101 = vmatpush3.msra.mxu1 %v2742_v44 }
0x1615   :  { %6102 = vmatprep.subr.mxu1 %v2757_v49 }
0x1616   :  { %6103 = vmatpush3.msra.mxu1 %v2741_v50 }
0x1617   :  { %6104 = vmatprep.subr.mxu1 %v2756_v53 }
0x1618   :  { %6105 = vmatpush3.msra.mxu1 %v2740_v54 }
0x1619   :  { %6106 = vmatprep.subr.mxu1 %v2755_v55 }
0x161a   :  { %6107 = vmatpush3.msra.mxu1 %v2739_v56 }
0x161b   :  { %6108 = vmatprep.subr.mxu1 %v2754_v58 }
0x161c   :  { %6109 = vmatpush3.msra.mxu1 %v2738_v63 }
0x161d   :  { %6110 = vmatprep.subr.mxu1 %v2753_v0 }
0x161e   :  { %6111 = vmatpush3.msra.mxu1 %v2737_v2 }
0x161f   :  { %6112 = vmatprep.subr.mxu1 %v2752_v8 }
0x1620   :  { %6113 = vmatpush3.msra.mxu1 %v2736_v9 }
0x167a   :  { %v2506_v12 = vpop.xlane.xlu1 %2505 }
0x167b   :  { %v2510_v18 = vmul.f32 0.0078125, %v2506_v12 }
0x167c   :  { %v2504_v31 = vpop.xlane.xlu0 %2503 }
0x167d   :  { %v2514_v29 = vsub.f32 %v8148_v62, %v2510_v18  ;;  %v2509_v60 = vmul.f32 0.0078125, %v2504_v31 }
0x167f   :  { %v2513_v61 = vsub.f32 %v8152_v48, %v2509_v60  ;;  %v2518_v46 = vmul.f32 %v2514_v29, %v2514_v29 }
0x1681   :  { %2525 = vadd.xlane.f32.xlu1 %v2518_v46  ;;  %v2517_v45 = vmul.f32 %v2513_v61, %v2513_v61 }
0x1683   :  { %2523 = vadd.xlane.f32.xlu0 %v2517_v45 }
0x16c9   :  { %v2673_v57 = vpop.f32.mrf.mxu0 }
0x16ca   :  { %v2674_v35 = vadd.f32 %v2673_v57, %v8276_v4  ;;  %v5798_v57 = vld [vmem:[%s9339_s4 + $0x2f0] sm:$0xff] }
0x16cb   :  { %v2675_v47 = vpop.f32.mrf.mxu0  ;;  %3003 = vmatprep.subr.mxu0 %v5798_v57  ;;  %v5779_v57 = vld [vmem:[%s9339_s4 + $0x258] sm:$0xff] }
0x16cc   :  { %v2704_v6 = vmul.f32 0.70710677, %v2674_v35  ;;  %v2676_v21 = vadd.f32 %v2675_v47, %v8279_v5  ;;  %v2696_v7 = vmul.f32 0.5, %v2674_v35 }
0x16cd   :  { %v2679_v23 = vpop.f32.mrf.mxu0 }
0x16ce   :  { %6984 = verf.f32 %v2704_v6  ;;  %v2705_v24 = vmul.f32 0.70710677, %v2676_v21  ;;  %v2680_v28 = vadd.f32 %v2679_v23, %v8276_v4  ;;  %v2697_v51 = vmul.f32 0.5, %v2676_v21 }
0x16cf   :  { %v2681_v16 = vpop.f32.mrf.mxu0 }
0x16d0   :  { %6986 = verf.f32 %v2705_v24  ;;  %v2706_v13 = vmul.f32 0.70710677, %v2680_v28  ;;  %v2682_v17 = vadd.f32 %v2681_v16, %v8279_v5  ;;  %v2698_v42 = vmul.f32 0.5, %v2680_v28 }
0x16d2   :  { %6988 = verf.f32 %v2706_v13  ;;  %v2707_v32 = vmul.f32 0.70710677, %v2682_v17  ;;  %v2699_v40 = vmul.f32 0.5, %v2682_v17 }
0x16d4   :  { %6990 = verf.f32 %v2707_v32 }
0x16db   :  { %v6985_v20 = vpop.eup %6984 }
0x16dc   :  { %v2720_v15 = vadd.f32 1.0, %v6985_v20 }
0x16dd   :  { %v6987_v36 = vpop.eup %6986 }
0x16de   :  { %v2721_v11 = vadd.f32 1.0, %v6987_v36  ;;  %v2728_v38 = vmul.f32 %v2720_v15, %v2696_v7 }
0x16df   :  { %v6989_v22 = vpop.eup %6988 }
0x16e0   :  { %v2729_v34 = vmul.f32 %v2721_v11, %v2697_v51  ;;  %v2722_v39 = vadd.f32 1.0, %v6989_v22 }
0x16e1   :  { %v6991_v19 = vpop.eup %6990 }
0x16e2   :  { %2832 = vmatprep.mubr.f32.mxu1 %v2729_v34  ;;  %v2723_v41 = vadd.f32 1.0, %v6991_v19  ;;  %v2730_v43 = vmul.f32 %v2722_v39, %v2698_v42 }
0x16e3   :  { %2833 = vmatmul.mubr.f32.vlgmr.msra.gmra.mxu1 %v2728_v38 }
0x16e4   :  { %v2731_v10 = vmul.f32 %v2723_v41, %v2699_v40 }
0x16e6   :  { %2837 = vmatprep.mubr.f32.mxu1 %v2731_v10 }
0x16e7   :  { %2838 = vmatmul.mubr.f32.gmra.mxu1 %v2730_v43 }
0x170a   :  { %v2526_v37 = vpop.xlane.xlu1 %2525 }
0x170b   :  { %v2530_v44 = vmul.f32 0.0078125, %v2526_v37 }
0x170c   :  { %v2524_v49 = vpop.xlane.xlu0 %2523 }
0x170d   :  { %v2534_v50 = vadd.f32 1e-05, %v2530_v44  ;;  %v2529_v53 = vmul.f32 0.0078125, %v2524_v49 }
0x170f   :  { %6992 = vrsqrt.f32 %v2534_v50  ;;  %v2533_v54 = vadd.f32 1e-05, %v2529_v53 }
0x1711   :  { %6994 = vrsqrt.f32 %v2533_v54 }
0x171c   :  { %v6993_v55 = vpop.eup %6992 }
0x171d   :  { %v2542_v63 = vmul.f32 %v6993_v55, %v2514_v29  ;;  %v8294_v29 = vld [vmem:[%s9348_s13] ss:$0 sm:$0xff]  ;;  %v5795_v55 = vld [vmem:[%s9339_s4 + $0x2d8] sm:$0xff] }
0x171e   :  { %v6995_v56 = vpop.eup %6994 }
0x171f   :  { %v2541_v58 = vmul.f32 %v6995_v56, %v2513_v61  ;;  %v2552_v8 = vmul.f32 %v8159_v33, %v2542_v63  ;;  %v5794_v56 = vld [vmem:[%s9339_s4 + $0x2d0] sm:$0xff]  ;;  %v5799_v63 = vld [vmem:[%s9339_s4 + $0x2f8] sm:$0xff] }
0x1720   :  { %6578 = vmatprep.subr.mxu1 %v5799_v63 }
0x1721   :  { %v2551_v0 = vmul.f32 %v8159_v33, %v2541_v58  ;;  %v2562_v9 = vadd.f32 %v8174_v25, %v2552_v8  ;;  %v5792_v58 = vld [vmem:[%s9339_s4 + $0x2c0] sm:$0xff]  ;;  %6579 = vmatpush3.msra.mxu1 %v5799_v63 }
0x1722   :  { %v5796_v8 = vld [vmem:[%s9339_s4 + $0x2e0] sm:$0xff] }
0x1723   :  { %v2561_v2 = vadd.f32 %v8174_v25, %v2551_v0  ;;  %v5791_v0 = vld [vmem:[%s9339_s4 + $0x2b8] sm:$0xff]  ;;  %6580 = vmatprep.subr.mxu1 %v5796_v8 }
0x1724   :  { %6581 = vmatpush3.msra.mxu1 %v5796_v8 }
0x1725   :  { %2684 = vmatmul.mubr.f32.gmra.mxu0 %v2561_v2  ;;  %v5789_v2 = vld [vmem:[%s9339_s4 + $0x2a8] sm:$0xff] }
0x1726   :  { %2689 = vmatprep.mubr.f32.mxu0 %v7146_v1 }
0x1729   :  { %2690 = vmatmul.mubr.f32.gmra.mxu0 %v2562_v9  ;;  %v5788_v9 = vld [vmem:[%s9339_s4 + $0x2a0] sm:$0xff] }
0x172a   :  { %3067 = vmatprep.mubr.f32.mxu0 %v7146_v1 }
0x17a3   :  { %v6114_v12 = vpop.f32.mrf.mxu1 }
0x17a5   :  { %v6115_v18 = vpop.f32.mrf.mxu1 }
0x17a6   :  { %v6116_v31 = vadd.f32 %v6115_v18, %v6114_v12  ;;  %v5786_v12 = vld [vmem:[%s9339_s4 + $0x290] sm:$0xff]  ;;  %v5793_v18 = vld [vmem:[%s9339_s4 + $0x2c8] sm:$0xff] }
0x17a7   :  { %v6117_v60 = vpop.f32.mrf.mxu1  ;;  %6582 = vmatprep.subr.mxu1 %v5793_v18 }
0x17a8   :  { %v2853_v61 = vadd.f32 %v6116_v31, %v8025_v59  ;;  %v5797_v59 = vld [vmem:[%s9339_s4 + $0x2e8] sm:$0xff]  ;;  %6583 = vmatpush3.msra.mxu1 %v5793_v18 }
0x17a9   :  { %v6118_v33 = vpop.f32.mrf.mxu1  ;;  %3004 = vmatpush1.msra.mxu0 %v5797_v59  ;;  %v5785_v31 = vld [vmem:[%s9339_s4 + $0x288] sm:$0xff] }
0x17aa   :  { %v6119_v46 = vadd.f32 %v6118_v33, %v6117_v60  ;;  %v8298_v45 = vadd.f32 %v8294_v29, %v2853_v61  ;;  %3005 = vmatprep.subr.mxu0 %v5795_v55  ;;  %v5783_v60 = vld [vmem:[%s9339_s4 + $0x278] sm:$0xff]  ;;  %v5790_v61 = vld [vmem:[%s9339_s4 + $0x2b0] sm:$0xff]  ;;  %v5777_v59 = vld [vmem:[%s9339_s4 + $0x248] sm:$0xff] }
0x17ab   :  { %3006 = vmatpush1.msra.mxu0 %v5794_v56  ;;  %6584 = vmatprep.subr.mxu1 %v5790_v61  ;;  %v5782_v33 = vld [vmem:[%s9339_s4 + $0x270] sm:$0xff] }
0x17ac   :  { %v2854_v25 = vadd.f32 %v6119_v46, %v8028_v14  ;;  %2872 = vadd.xlane.f32.xlu0 %v8298_v45  ;;  %3007 = vmatprep.subr.mxu0 %v5792_v58  ;;  %v5780_v46 = vld [vmem:[%s9339_s4 + $0x260] sm:$0xff] }
0x17ad   :  { %3008 = vmatpush1.msra.mxu0 %v5791_v0  ;;  %6585 = vmatpush3.msra.mxu1 %v5790_v61  ;;  %v8486_v61 = vld [vmem:[%s9366_s29 + $0x1] ss:$0 sm:$0xff] }
0x17ae   :  { %v8303_v3 = vadd.f32 %v8294_v29, %v2854_v25  ;;  %3009 = vmatprep.subr.mxu0 %v5789_v2  ;;  %v5787_v25 = vld [vmem:[%s9339_s4 + $0x298] sm:$0xff] }
0x17af   :  { %3010 = vmatpush1.msra.mxu0 %v5788_v9  ;;  %6586 = vmatprep.subr.mxu1 %v5787_v25 }
0x17b0   :  { %2874 = vadd.xlane.f32.xlu1 %v8303_v3  ;;  %3011 = vmatprep.subr.mxu0 %v5786_v12 }
0x17b1   :  { %3012 = vmatpush1.msra.mxu0 %v5785_v31  ;;  %6587 = vmatpush3.msra.mxu1 %v5787_v25 }
0x17b2   :  { %3013 = vmatprep.subr.mxu0 %v5783_v60  ;;  %v8480_v60 = vld [vmem:[%s9365_s3 + $0x1] ss:$0 sm:$0xff] }
0x17b3   :  { %3014 = vmatpush1.msra.mxu0 %v5782_v33 }
0x17b4   :  { %3015 = vmatprep.subr.mxu0 %v5780_v46 }
0x17b5   :  { %3016 = vmatpush1.msra.mxu0 %v5779_v57 }
0x17b6   :  { %3017 = vmatprep.subr.mxu0 %v5777_v59  ;;  %v7101_v59 = vld [vmem:[%s9351_s16 + $0x70] sm:$0xff] }
0x17e5   :  { %v2685_v35 = vpop.f32.mrf.mxu0 }
0x17e6   :  { %v2686_v14 = vadd.f32 %v2685_v35, %v8276_v4  ;;  %v5784_v35 = vld [vmem:[%s9339_s4 + $0x280] sm:$0xff] }
0x17e7   :  { %v2687_v47 = vpop.f32.mrf.mxu0  ;;  %6588 = vmatprep.subr.mxu1 %v5784_v35 }
0x17e8   :  { %v2708_v6 = vmul.f32 0.70710677, %v2686_v14  ;;  %v2688_v21 = vadd.f32 %v2687_v47, %v8279_v5  ;;  %v2700_v7 = vmul.f32 0.5, %v2686_v14  ;;  %v5776_v14 = vld [vmem:[%s9339_s4 + $0x240] sm:$0xff]  ;;  %6589 = vmatpush3.msra.mxu1 %v5784_v35  ;;  %v5774_v47 = vld [vmem:[%s9339_s4 + $0x230] sm:$0xff] }
0x17e9   :  { %v2691_v23 = vpop.f32.mrf.mxu0  ;;  %3018 = vmatpush1.msra.mxu0 %v5776_v14  ;;  %v7103_v35 = vld [vmem:[%s9351_s16 + $0x60] sm:$0xff]  ;;  %v7104_v14 = vld [vmem:[%s9351_s16 + $0x58] sm:$0xff] }
0x17ea   :  { %6996 = verf.f32 %v2708_v6  ;;  %v2709_v24 = vmul.f32 0.70710677, %v2688_v21  ;;  %v2692_v28 = vadd.f32 %v2691_v23, %v8276_v4  ;;  %v2701_v51 = vmul.f32 0.5, %v2688_v21  ;;  %v5781_v6 = vld [vmem:[%s9339_s4 + $0x268] sm:$0xff]  ;;  %3019 = vmatprep.subr.mxu0 %v5774_v47  ;;  %v5771_v23 = vld [vmem:[%s9339_s4 + $0x218] sm:$0xff]  ;;  %v7105_v47 = vld [vmem:[%s9351_s16 + $0x50] sm:$0xff] }
0x17eb   :  { %v2693_v16 = vpop.f32.mrf.mxu0  ;;  %6590 = vmatprep.subr.mxu1 %v5781_v6  ;;  %v5773_v21 = vld [vmem:[%s9339_s4 + $0x228] sm:$0xff] }
0x17ec   :  { %6998 = verf.f32 %v2709_v24  ;;  %v2710_v13 = vmul.f32 0.70710677, %v2692_v28  ;;  %v2694_v17 = vadd.f32 %v2693_v16, %v8279_v5  ;;  %v2702_v41 = vmul.f32 0.5, %v2692_v28  ;;  %3020 = vmatpush1.msra.mxu0 %v5773_v21  ;;  %6591 = vmatpush3.msra.mxu1 %v5781_v6  ;;  %v5778_v24 = vld [vmem:[%s9339_s4 + $0x250] sm:$0xff]  ;;  %v5768_v16 = vld [vmem:[%s9339_s4 + $0x200] sm:$0xff]  ;;  %v7106_v6 = vld [vmem:[%s9351_s16 + $0x48] sm:$0xff] }
0x17ed   :  { %3021 = vmatprep.subr.mxu0 %v5771_v23  ;;  %6592 = vmatprep.subr.mxu1 %v5778_v24  ;;  %v5770_v28 = vld [vmem:[%s9339_s4 + $0x210] sm:$0xff]  ;;  %v7107_v21 = vld [vmem:[%s9351_s16 + $0x40] sm:$0xff]  ;;  %v7108_v23 = vld [vmem:[%s9351_s16 + $0x38] sm:$0xff] }
0x17ee   :  { %7000 = verf.f32 %v2710_v13  ;;  %v2711_v32 = vmul.f32 0.70710677, %v2694_v17  ;;  %v2703_v4 = vmul.f32 0.5, %v2694_v17  ;;  %3022 = vmatpush1.msra.mxu0 %v5770_v28  ;;  %6593 = vmatpush3.msra.mxu1 %v5778_v24  ;;  %v5775_v13 = vld [vmem:[%s9339_s4 + $0x238] sm:$0xff]  ;;  %v7109_v24 = vld [vmem:[%s9351_s16 + $0x30] sm:$0xff]  ;;  %v7110_v28 = vld [vmem:[%s9351_s16 + $0x28] sm:$0xff] }
0x17ef   :  { %3023 = vmatprep.subr.mxu0 %v5768_v16  ;;  %6594 = vmatprep.subr.mxu1 %v5775_v13  ;;  %v5767_v17 = vld [vmem:[%s9339_s4 + $0x1f8] sm:$0xff]  ;;  %v7111_v16 = vld [vmem:[%s9351_s16 + $0x20] sm:$0xff] }
0x17f0   :  { %7002 = verf.f32 %v2711_v32  ;;  %3024 = vmatpush1.msra.mxu0 %v5767_v17  ;;  %6595 = vmatpush3.msra.mxu1 %v5775_v13  ;;  %v5765_v32 = vld [vmem:[%s9339_s4 + $0x1e8] sm:$0xff]  ;;  %v7112_v13 = vld [vmem:[%s9351_s16 + $0x18] sm:$0xff]  ;;  %v7113_v17 = vld [vmem:[%s9351_s16 + $0x10] sm:$0xff] }
0x17f1   :  { %3025 = vmatprep.subr.mxu0 %v5765_v32  ;;  %v7114_v32 = vld [vmem:[%s9351_s16 + $0x8] sm:$0xff] }
0x17f7   :  { %v6997_v20 = vpop.eup %6996 }
0x17f8   :  { %v2724_v15 = vadd.f32 1.0, %v6997_v20  ;;  %v5772_v20 = vld [vmem:[%s9339_s4 + $0x220] sm:$0xff] }
0x17f9   :  { %v6999_v36 = vpop.eup %6998  ;;  %6596 = vmatprep.subr.mxu1 %v5772_v20 }
0x17fa   :  { %v2725_v11 = vadd.f32 1.0, %v6999_v36  ;;  %v2732_v38 = vmul.f32 %v2724_v15, %v2700_v7  ;;  %v5764_v36 = vld [vmem:[%s9339_s4 + $0x1e0] sm:$0xff]  ;;  %6597 = vmatpush3.msra.mxu1 %v5772_v20  ;;  %v5762_v15 = vld [vmem:[%s9339_s4 + $0x1d0] sm:$0xff] }
0x17fb   :  { %v7001_v22 = vpop.eup %7000  ;;  %3026 = vmatpush1.msra.mxu0 %v5764_v36  ;;  %v5766_v7 = vld [vmem:[%s9339_s4 + $0x1f0] sm:$0xff]  ;;  %v7115_v20 = vld [vmem:[%s9351_s16] sm:$0xff] }
0x17fc   :  { %v2733_v34 = vmul.f32 %v2725_v11, %v2701_v51  ;;  %v2726_v39 = vadd.f32 1.0, %v7001_v22  ;;  %v5769_v51 = vld [vmem:[%s9339_s4 + $0x208] sm:$0xff]  ;;  %3027 = vmatprep.subr.mxu0 %v5762_v15  ;;  %v5759_v22 = vld [vmem:[%s9339_s4 + $0x1b8] sm:$0xff] }
0x17fd   :  { %v7003_v19 = vpop.eup %7002  ;;  %6598 = vmatprep.subr.mxu1 %v5769_v51  ;;  %v5761_v11 = vld [vmem:[%s9339_s4 + $0x1c8] sm:$0xff] }
0x17fe   :  { %2842 = vmatprep.mubr.f32.mxu1 %v2733_v34  ;;  %v2727_v40 = vadd.f32 1.0, %v7003_v19  ;;  %v2734_v42 = vmul.f32 %v2726_v39, %v2702_v41  ;;  %3028 = vmatpush1.msra.mxu0 %v5761_v11  ;;  %v5758_v34 = vld [vmem:[%s9339_s4 + $0x1b0] sm:$0xff]  ;;  %v5756_v19 = vld [vmem:[%s9339_s4 + $0x1a0] sm:$0xff]  ;;  %v5755_v39 = vld [vmem:[%s9339_s4 + $0x198] sm:$0xff] }
0x17ff   :  { %2843 = vmatmul.mubr.f32.gmra.mxu1 %v2732_v38  ;;  %3029 = vmatprep.subr.mxu0 %v5759_v22  ;;  %v5763_v38 = vld [vmem:[%s9339_s4 + $0x1d8] sm:$0xff]  ;;  %v5752_v41 = vld [vmem:[%s9339_s4 + $0x180] sm:$0xff] }
0x1800   :  { %v2735_v5 = vmul.f32 %v2727_v40, %v2703_v4  ;;  %6599 = vmatpush3.msra.mxu1 %v5769_v51  ;;  %3030 = vmatpush1.msra.mxu0 %v5758_v34  ;;  %v5753_v4 = vld [vmem:[%s9339_s4 + $0x188] sm:$0xff]  ;;  %v5760_v40 = vld [vmem:[%s9339_s4 + $0x1c0] sm:$0xff] }
0x1801   :  { %6600 = vmatprep.subr.mxu1 %v5766_v7  ;;  %3031 = vmatprep.subr.mxu0 %v5756_v19 }
0x1802   :  { %2847 = vmatprep.mubr.f32.mxu1 %v2735_v5  ;;  %6601 = vmatpush3.msra.mxu1 %v5766_v7  ;;  %v5757_v5 = vld [vmem:[%s9339_s4 + $0x1a8] sm:$0xff] }
0x1803   :  { %2848 = vmatmul.mubr.f32.gmra.mxu1 %v2734_v42  ;;  %6602 = vmatprep.subr.mxu1 %v5763_v38  ;;  %v5754_v42 = vld [vmem:[%s9339_s4 + $0x190] sm:$0xff] }
0x1804   :  { %3032 = vmatpush1.msra.mxu0 %v5755_v39  ;;  %6603 = vmatpush3.msra.mxu1 %v5763_v38 }
0x1805   :  { %3033 = vmatprep.subr.mxu0 %v5753_v4  ;;  %6604 = vmatprep.subr.mxu1 %v5760_v40 }
0x1806   :  { %3034 = vmatpush1.msra.mxu0 %v5752_v41  ;;  %6605 = vmatpush3.msra.mxu1 %v5760_v40 }
0x1807   :  { %6606 = vmatprep.subr.mxu1 %v5757_v5 }
0x1808   :  { %6607 = vmatpush3.msra.mxu1 %v5757_v5 }
0x1809   :  { %6608 = vmatprep.subr.mxu1 %v5754_v42 }
0x180a   :  { %6609 = vmatpush3.msra.mxu1 %v5754_v42 }
0x1835   :  { %v2873_v10 = vpop.xlane.xlu0 %2872 }
0x1836   :  { %v2880_v43 = vmul.f32 0.0078125, %v2873_v10  ;;  %v7100_v10 = vld [vmem:[%s9351_s16 + $0x78] sm:$0xff] }
0x1837   :  { %6616 = vmatprep.subr.mxu0 %v7100_v10  ;;  %6654 = vmatprep.subr.mxu1 %v7100_v10 }
0x1838   :  { %v8317_v37 = vsub.f32 %v8298_v45, %v2880_v43 }
0x1839   :  { %v2875_v44 = vpop.xlane.xlu1 %2874 }
0x183a   :  { %v2881_v49 = vmul.f32 0.0078125, %v2875_v44  ;;  %v2888_v50 = vmul.f32 %v8317_v37, %v8317_v37 }
0x183c   :  { %v8322_v53 = vsub.f32 %v8303_v3, %v2881_v49  ;;  %2892 = vadd.xlane.f32.xlu0 %v2888_v50 }
0x183e   :  { %v2889_v54 = vmul.f32 %v8322_v53, %v8322_v53 }
0x1840   :  { %2894 = vadd.xlane.f32.xlu1 %v2889_v54 }
0x18bf   :  { %v6120_v43 = vpop.f32.mrf.mxu1 }
0x18c1   :  { %v6121_v44 = vpop.f32.mrf.mxu1 }
0x18c2   :  { %v6122_v49 = vadd.f32 %v6121_v44, %v6120_v43 }
0x18c3   :  { %v6123_v50 = vpop.f32.mrf.mxu1 }
0x18c4   :  { %v2855_v54 = vadd.f32 %v6122_v49, %v8152_v48  ;;  %v5800_v49 = vld [vmem:[%s9340_s5 + $0x3] sm:$0x7] }
0x18c5   :  { %v2893_v55 = vpop.xlane.xlu0 %2892  ;;  %v6124_v56 = vpop.f32.mrf.mxu1 }
0x18c6   :  { %v2900_v58 = vmul.f32 0.0078125, %v2893_v55  ;;  %v6125_v63 = vadd.f32 %v6124_v56, %v6123_v50  ;;  %v8469_v0 = vadd.f32 %v8294_v29, %v2855_v54 }
0x18c8   :  { %v2904_v2 = vadd.f32 1e-05, %v2900_v58  ;;  %v2856_v8 = vadd.f32 %v6125_v63, %v8148_v62  ;;  %2876 = vadd.xlane.f32.xlu0 %v8469_v0  ;;  %v2991_v58 = vrot.slane %v5800_v49, %v7625_v27  ;;  %v2995_v63 = vrot.slane %v5800_v49, %v7631_v30 }
0x18c9   :  { %v2895_v9 = vpop.xlane.xlu1 %2894 }
0x18ca   :  { %7004 = vrsqrt.f32 %v2904_v2  ;;  %v2901_v12 = vmul.f32 0.0078125, %v2895_v9  ;;  %v8474_v18 = vadd.f32 %v8294_v29, %v2856_v8 }
0x18cc   :  { %v2905_v31 = vadd.f32 1e-05, %v2901_v12  ;;  %2878 = vadd.xlane.f32.xlu1 %v8474_v18 }
0x18ce   :  { %7006 = vrsqrt.f32 %v2905_v31 }
0x18d7   :  { %v7005_v48 = vpop.eup %7004 }
0x18d8   :  { %v2912_v62 = vmul.f32 %v7005_v48, %v8317_v37 }
0x18da   :  { %v2922_v29 = vmul.f32 %v8480_v60, %v2912_v62 }
0x18db   :  { %v7007_v33 = vpop.eup %7006 }
0x18dc   :  { %v2932_v46 = vadd.f32 %v8486_v61, %v2922_v29  ;;  %v2913_v25 = vmul.f32 %v7007_v33, %v8322_v53  ;;  %v7102_v53 = vld [vmem:[%s9351_s16 + $0x68] sm:$0xff] }
0x18de   :  { %3068 = vmatmul.mubr.f32.vlgmr.msra.gmra.mxu0 %v2932_v46  ;;  %6610 = vmatprep.mubr.f32.mxu1 %v2932_v46  ;;  %v2923_v57 = vmul.f32 %v8480_v60, %v2913_v25 }
0x18df   :  { %3073 = vmatprep.mubr.f32.mxu0 %v7146_v1  ;;  %6617 = vmatpush3.msra.mxu0 %v7100_v10 }
0x18e0   :  { %v2933_v37 = vadd.f32 %v8486_v61, %v2923_v57  ;;  %6618 = vmatprep.subr.mxu0 %v7101_v59 }
0x18e1   :  { %6619 = vmatpush3.msra.mxu0 %v7101_v59 }
0x18e2   :  { %3074 = vmatmul.mubr.f32.gmra.mxu0 %v2933_v37  ;;  %6611 = vmatmul.mubr.f32.vlgmr.msra.gmra.mxu1 %v2933_v37 }
0x18e3   :  { %6655 = vmatpush3.msra.mxu1 %v7100_v10  ;;  %6620 = vmatprep.subr.mxu0 %v7102_v53 }
0x18e4   :  { %6656 = vmatprep.subr.mxu1 %v7101_v59  ;;  %6621 = vmatpush3.msra.mxu0 %v7102_v53 }
0x18e5   :  { %6657 = vmatpush3.msra.mxu1 %v7101_v59  ;;  %6622 = vmatprep.subr.mxu0 %v7103_v35 }
0x18e6   :  { %6658 = vmatprep.subr.mxu1 %v7102_v53  ;;  %6623 = vmatpush3.msra.mxu0 %v7103_v35 }
0x18e7   :  { %6659 = vmatpush3.msra.mxu1 %v7102_v53  ;;  %6624 = vmatprep.subr.mxu0 %v7104_v14 }
0x18e8   :  { %6660 = vmatprep.subr.mxu1 %v7103_v35  ;;  %6625 = vmatpush3.msra.mxu0 %v7104_v14 }
0x18e9   :  { %6661 = vmatpush3.msra.mxu1 %v7103_v35  ;;  %6626 = vmatprep.subr.mxu0 %v7105_v47 }
0x18ea   :  { %6662 = vmatprep.subr.mxu1 %v7104_v14  ;;  %6627 = vmatpush3.msra.mxu0 %v7105_v47 }
0x18eb   :  { %6663 = vmatpush3.msra.mxu1 %v7104_v14  ;;  %6628 = vmatprep.subr.mxu0 %v7106_v6 }
0x18ec   :  { %6664 = vmatprep.subr.mxu1 %v7105_v47  ;;  %6629 = vmatpush3.msra.mxu0 %v7106_v6 }
0x18ed   :  { %6665 = vmatpush3.msra.mxu1 %v7105_v47  ;;  %6630 = vmatprep.subr.mxu0 %v7107_v21 }
0x18ee   :  { %6666 = vmatprep.subr.mxu1 %v7106_v6  ;;  %6631 = vmatpush3.msra.mxu0 %v7107_v21 }
0x18ef   :  { %6667 = vmatpush3.msra.mxu1 %v7106_v6  ;;  %6632 = vmatprep.subr.mxu0 %v7108_v23 }
0x18f0   :  { %6668 = vmatprep.subr.mxu1 %v7107_v21  ;;  %6633 = vmatpush3.msra.mxu0 %v7108_v23 }
0x18f1   :  { %6669 = vmatpush3.msra.mxu1 %v7107_v21  ;;  %6634 = vmatprep.subr.mxu0 %v7109_v24 }
0x18f2   :  { %6670 = vmatprep.subr.mxu1 %v7108_v23  ;;  %6635 = vmatpush3.msra.mxu0 %v7109_v24 }
0x18f3   :  { %6671 = vmatpush3.msra.mxu1 %v7108_v23  ;;  %6636 = vmatprep.subr.mxu0 %v7110_v28  ;;  %v7116_v23 = vld [vmem:[%s9349_s14 + $0x8] sm:$0xff] }
0x18f4   :  { %6672 = vmatprep.subr.mxu1 %v7109_v24  ;;  %6637 = vmatpush3.msra.mxu0 %v7110_v28 }
0x18f5   :  { %6673 = vmatpush3.msra.mxu1 %v7109_v24  ;;  %6638 = vmatprep.subr.mxu0 %v7111_v16 }
0x18f6   :  { %6674 = vmatprep.subr.mxu1 %v7110_v28  ;;  %3079 = vmatprep.mubr.f32.mxu0 %v7146_v1 }
0x18f7   :  { %6675 = vmatpush3.msra.mxu1 %v7110_v28  ;;  %6639 = vmatpush3.msra.mxu0 %v7111_v16  ;;  %v7117_v28 = vld [vmem:[%s9350_s15 + $0x8] sm:$0xff] }
0x18f8   :  { %6676 = vmatprep.subr.mxu1 %v7111_v16  ;;  %6640 = vmatprep.subr.mxu0 %v7112_v13 }
0x18f9   :  { %6677 = vmatpush3.msra.mxu1 %v7111_v16  ;;  %6641 = vmatpush3.msra.mxu0 %v7112_v13 }
0x18fa   :  { %6678 = vmatprep.subr.mxu1 %v7112_v13  ;;  %6642 = vmatprep.subr.mxu0 %v7113_v17 }
0x18fb   :  { %6679 = vmatpush3.msra.mxu1 %v7112_v13  ;;  %6643 = vmatpush3.msra.mxu0 %v7113_v17  ;;  %v7118_v13 = vld [vmem:[%s9349_s14] sm:$0xff] }
0x18fc   :  { %6680 = vmatprep.subr.mxu1 %v7113_v17  ;;  %6644 = vmatprep.subr.mxu0 %v7114_v32 }
0x18fd   :  { %6681 = vmatpush3.msra.mxu1 %v7113_v17  ;;  %6645 = vmatpush3.msra.mxu0 %v7114_v32 }
0x18fe   :  { %6682 = vmatprep.subr.mxu1 %v7114_v32  ;;  %6646 = vmatprep.subr.mxu0 %v7115_v20 }
0x18ff   :  { %6683 = vmatpush3.msra.mxu1 %v7114_v32  ;;  %6647 = vmatpush3.msra.mxu0 %v7115_v20 }
0x1900   :  { %6684 = vmatprep.subr.mxu1 %v7115_v20 }
0x1901   :  { %6685 = vmatpush3.msra.mxu1 %v7115_v20 }
0x1951   :  { %v2877_v36 = vpop.xlane.xlu0 %2876 }
0x1952   :  { %v2882_v15 = vmul.f32 0.0078125, %v2877_v36 }
0x1954   :  { %v2886_v51 = vsub.f32 %v8469_v0, %v2882_v15 }
0x1955   :  { %v2879_v11 = vpop.xlane.xlu1 %2878 }
0x1956   :  { %v2883_v22 = vmul.f32 0.0078125, %v2879_v11  ;;  %v2890_v7 = vmul.f32 %v2886_v51, %v2886_v51 }
0x1958   :  { %v2887_v34 = vsub.f32 %v8474_v18, %v2883_v22  ;;  %2896 = vadd.xlane.f32.xlu0 %v2890_v7  ;;  %v8578_v7 = vrot.slane %v5800_v49, %v344_v52  ;;  %v8623_v49 = vld [vmem:[%s9349_s14 + $0x10] sm:$0xff] }
0x195a   :  { %v2891_v19 = vmul.f32 %v2887_v34, %v2887_v34 }
0x195c   :  { %2898 = vadd.xlane.f32.xlu1 %v2891_v19 }
0x199e   :  { %v3069_v42 = vpop.f32.mrf.mxu0 }
0x199f   :  { %v3070_v12 = vadd.f32 %v3069_v42, %v2991_v58 }
0x19a0   :  { %v3071_v44 = vpop.f32.mrf.mxu0 }
0x19a1   :  { %v3072_v31 = vadd.f32 %v3071_v44, %v2995_v63  ;;  %v3177_v17 = vmul.f32 %v7118_v13, %v3070_v12 }
0x19a2   :  { %v3075_v2 = vpop.f32.mrf.mxu0  ;;  %v6612_v33 = vpop.f32.mrf.mxu1 }
0x19a3   :  { %v3076_v62 = vadd.f32 %v3075_v2, %v2991_v58  ;;  %v3274_v36 = vmul.f32 %v7118_v13, %v3072_v31  ;;  %v8593_v52 = vadd.f32 %v6612_v33, %v8578_v7 }
0x19a4   :  { %v3077_v48 = vpop.f32.mrf.mxu0  ;;  %v3158_v57 = vpop.f32.mrf.mxu1 }
0x19a5   :  { %v3078_v29 = vadd.f32 %v3077_v48, %v2995_v63 }
0x19a7   :  { %v3275_v24 = vmul.f32 %v7116_v23, %v3078_v29 }
0x19e1   :  { %v2897_v38 = vpop.xlane.xlu0 %2896 }
0x19e2   :  { %v2902_v39 = vmul.f32 0.0078125, %v2897_v38 }
0x19e4   :  { %v2906_v4 = vadd.f32 1e-05, %v2902_v39  ;;  %v3178_v39 = vmul.f32 %v7116_v23, %v3076_v62 }
0x19e5   :  { %v2899_v40 = vpop.xlane.xlu1 %2898 }
0x19e6   :  { %7008 = vrsqrt.f32 %v2906_v4  ;;  %v2903_v41 = vmul.f32 0.0078125, %v2899_v40  ;;  %v8601_v40 = vadd.f32 %v3158_v57, %v8578_v7 }
0x19e8   :  { %v2907_v5 = vadd.f32 1e-05, %v2903_v41 }
0x19ea   :  { %7010 = vrsqrt.f32 %v2907_v5  ;;  %v8611_v5 = vld [vmem:[%s9349_s14 + $0x18] sm:$0xff] }
0x19f3   :  { %v7009_v10 = vpop.eup %7008 }
0x19f4   :  { %v2914_v43 = vmul.f32 %v7009_v10, %v2886_v51  ;;  %v7119_v51 = vld [vmem:[%s9350_s15] sm:$0xff]  ;;  %v8617_v10 = vld [vmem:[%s9350_s15 + $0x18] sm:$0xff] }
0x19f6   :  { %v2924_v50 = vmul.f32 %v8480_v60, %v2914_v43 }
0x19f7   :  { %v7011_v54 = vpop.eup %7010 }
0x19f8   :  { %v2934_v55 = vadd.f32 %v8486_v61, %v2924_v50  ;;  %v2915_v56 = vmul.f32 %v7011_v54, %v2887_v34 }
0x19fa   :  { %3080 = vmatmul.mubr.f32.gmra.mxu0 %v2934_v55  ;;  %6613 = vmatprep.mubr.f32.mxu1 %v2934_v55  ;;  %v2925_v8 = vmul.f32 %v8480_v60, %v2915_v56  ;;  %v8631_v55 = vld [vmem:[%s9350_s15 + $0x10] sm:$0xff] }
0x19fb   :  { %3085 = vmatprep.mubr.f32.mxu0 %v7146_v1 }
0x19fc   :  { %v2935_v9 = vadd.f32 %v8486_v61, %v2925_v8 }
0x19fe   :  { %3086 = vmatmul.mubr.f32.gmra.mxu0 %v2935_v9  ;;  %6614 = vmatmul.mubr.f32.gmra.mxu1 %v2935_v9 }
0x19ff   :  { %6648 = vmatprep.mubr.f32.mxu0 %v3070_v12  ;;  %6686 = vmatprep.mubr.f32.mxu1 %v3072_v31 }
0x1a02   :  { %6649 = vmatmul.mubr.f32.vlgmr.msra.gmra.mxu0 %v3076_v62  ;;  %6687 = vmatmul.mubr.f32.vlgmr.msra.gmra.mxu1 %v3078_v29 }
0x1aba   :  { %v3081_v46 = vpop.f32.mrf.mxu0 }
0x1abb   :  { %v3082_v25 = vadd.f32 %v3081_v46, %v2991_v58 }
0x1abc   :  { %v3083_v60 = vpop.f32.mrf.mxu0 }
0x1abd   :  { %v8552_v37 = vadd.f32 %v3083_v60, %v2995_v63  ;;  %6651 = vmatprep.mubr.f32.mxu0 %v3082_v25  ;;  %v3179_v50 = vmul.f32 %v8623_v49, %v3082_v25 }
0x1abe   :  { %v3087_v61 = vpop.f32.mrf.mxu0  ;;  %v8554_v59 = vpop.f32.mrf.mxu1 }
0x1abf   :  { %v3088_v53 = vadd.f32 %v3087_v61, %v2991_v58  ;;  %6689 = vmatprep.mubr.f32.mxu1 %v8552_v37 }
0x1ac0   :  { %v3089_v35 = vpop.f32.mrf.mxu0  ;;  %v8557_v14 = vpop.f32.mrf.mxu1 }
0x1ac1   :  { %v8559_v47 = vadd.f32 %v3089_v35, %v2995_v63  ;;  %6652 = vmatmul.mubr.f32.gmra.mxu0 %v3088_v53  ;;  %v3180_v42 = vmul.f32 %v8611_v5, %v3088_v53 }
0x1ac2   :  { %v6650_v6 = vpop.f32.mrf.mxu0  ;;  %v6688_v21 = vpop.f32.mrf.mxu1 }
0x1ac3   :  { %v3364_v16 = vmul.f32 %v7117_v28, %v6688_v21  ;;  %6690 = vmatmul.mubr.f32.gmra.mxu1 %v8559_v47  ;;  %v3267_v38 = vmul.f32 %v7117_v28, %v6650_v6 }
0x1ac4   :  { %v3247_v32 = vpop.f32.mrf.mxu0  ;;  %v3344_v20 = vpop.f32.mrf.mxu1 }
0x1ac5   :  { %v8571_v15 = vadd.f32 %v3364_v16, %v3275_v24  ;;  %v3266_v11 = vmul.f32 %v7119_v51, %v3247_v32  ;;  %v3363_v22 = vmul.f32 %v7119_v51, %v3344_v20  ;;  %v8597_v4 = vadd.f32 %v3267_v38, %v3178_v39 }
0x1ac7   :  { %v8580_v34 = vadd.f32 %v3266_v11, %v3177_v17  ;;  %v8582_v19 = vadd.f32 %v3363_v22, %v3274_v36  ;;  %6692 = vmatprep.subr.msk.mxu0 %vm717_vm2, %v8571_v15 }
0x1ac8   :  { %6693 = vmatpush3.xpose.msk.msra.mxu0 %vm717_vm2, %v8571_v15 }
0x1ac9   :  { %6694 = vmatprep.subr.msk.mxu0 %vm717_vm2, %v8582_v19  ;;  %6696 = vmatprep.mubr.msk.f32.mxu0 %vm717_vm2, %v8580_v34 }
0x1acc   :  { %6695 = vmatpush3.xpose.msk.msra.mxu0 %vm717_vm2, %v8582_v19 }
0x1acd   :  { %6699 = vmatprep.subr.mxu0 %v8593_v52 }
0x1acf   :  { %6697 = vmatmul.mubr.msk.f32.vlgmr.msra.gmra.mxu0 %vm717_vm2, %v8597_v4 }
0x1ad0   :  { %6700 = vmatpush3.msra.mxu0 %v8593_v52 }
0x1ad1   :  { %6701 = vmatprep.subr.mxu0 %v8601_v40 }
0x1ad2   :  { %6702 = vmatpush3.msra.mxu0 %v8601_v40 }
0x1b81   :  { %v6653_v41 = vpop.f32.mrf.mxu0 }
0x1b82   :  { %v3269_v43 = vmul.f32 %v8617_v10, %v6653_v41 }
0x1b83   :  { %v3257_v44 = vpop.f32.mrf.mxu0 }
0x1b84   :  { %v8626_v54 = vadd.f32 %v3269_v43, %v3180_v42  ;;  %v3268_v56 = vmul.f32 %v8631_v55, %v3257_v44 }
0x1b86   :  { %v8634_v58 = vadd.f32 %v3268_v56, %v3179_v50 }
0x1b8f   :  { %v6698_v63 = vpop.f32.mrf.mxu0 }
0x1b90   :  { %v3459_v2 = vmul.f32 0.17677669, %v6698_v63 }
0x1b91   :  { %v3449_v8 = vpop.f32.mrf.mxu0 }
0x1b92   :  { %v3458_v9 = vmul.f32 0.17677669, %v3449_v8  ;;  %v3463_v12 = vsel %vm807_vm3, %v3459_v2, -inf }
0x1b93   :  { %3464 = vmax.xlane.f32.xlu1 %v3463_v12 }
0x1b94   :  { %v3460_v31 = vsel %vm807_vm3, %v3458_v9, -inf }
0x1b95   :  { %3461 = vmax.xlane.f32.xlu0 %v3460_v31  ;;  %v3277_v31 = vmul.f32 %v8611_v5, %v8559_v47 }
0x1c1c   :  { %v3465_v48 = vpop.xlane.xlu1 %3464 }
0x1c1d   :  { %v3467_v62 = vsub.f32 %v3459_v2, %v3465_v48 }
0x1c1e   :  { %v3462_v29 = vpop.xlane.xlu0 %3461 }
0x1c1f   :  { %v3470_v33 = vmul.f32 1.442695, %v3467_v62  ;;  %v3466_v46 = vsub.f32 %v3458_v9, %v3462_v29  ;;  %v6691_v9 = vpop.f32.mrf.mxu1 }
0x1c21   :  { %7012 = vpow2.f32 %v3470_v33  ;;  %v3468_v25 = vmul.f32 1.442695, %v3466_v46 }
0x1c23   :  { %7014 = vpow2.f32 %v3468_v25 }
0x1c2e   :  { %v7013_v57 = vpop.eup %7012 }
0x1c2f   :  { %v3475_v60 = vsel %vm807_vm3, %v7013_v57, 0.0 }
0x1c30   :  { %v7015_v61 = vpop.eup %7014  ;;  %3476 = vadd.xlane.f32.xlu1 %v3475_v60 }
0x1c31   :  { %v3472_v53 = vsel %vm807_vm3, %v7015_v61, 0.0 }
0x1c32   :  { %3473 = vadd.xlane.f32.xlu0 %v3472_v53 }
0x1c41   :  { %3567 = vrot.lane.b32.xlu1 %v8582_v19, %s7147_s21 }
0x1c45   :  { %3563 = vrot.lane.b32.xlu1 %v8580_v34, %s7147_s21 }
0x1c48   :  { %3569 = vrot.lane.b32.xlu0 %v8571_v15, %s7147_s21 }
0x1c49   :  { %3565 = vrot.lane.b32.xlu1 %v8597_v4, %s7147_s21 }
0x1cb9   :  { %v3477_v35 = vpop.xlane.xlu1 %3476 }
0x1cba   :  { %7016 = vrcp.f32 %v3477_v35  ;;  %v3276_v35 = vmul.f32 %v8623_v49, %v8552_v37 }
0x1cbb   :  { %v3474_v6 = vpop.xlane.xlu0 %3473 }
0x1cbc   :  { %7018 = vrcp.f32 %v3474_v6 }
0x1cbd   :  { %v3568_v23 = vpop.permute.xlu1 %3567 }
0x1cbf   :  { %v3570_v21 = vpop.permute.xlu0 %3569 }
0x1cc0   :  { %6706 = vmatprep.subr.msk.mxu0 %vm717_vm2, %v3570_v21 }
0x1cc1   :  { %v3564_v17 = vpop.permute.xlu1 %3563 }
0x1cc5   :  { %v3566_v32 = vpop.permute.xlu1 %3565 }
0x1cc7   :  { %v7017_v24 = vpop.eup %7016 }
0x1cc8   :  { %v3481_v13 = vmul.f32 %v7017_v24, %v7013_v57  ;;  %v3354_v57 = vpop.f32.mrf.mxu1 }
0x1cc9   :  { %v7019_v28 = vpop.eup %7018  ;;  %v3365_v53 = vmul.f32 %v8631_v55, %v3354_v57 }
0x1cca   :  { %v3479_v16 = vmul.f32 %v7019_v28, %v7015_v61 }
0x1ccc   :  { %6703 = vmatprep.mubr.msk.f32.mxu0 %vm807_vm3, %v3479_v16 }
0x1ccd   :  { %6704 = vmatmul.mubr.msk.f32.vlgmr.msra.gmra.mxu0 %vm807_vm3, %v3481_v13 }
0x1cce   :  { %6707 = vmatpush3.xpose.msk.msra.mxu0 %vm717_vm2, %v3570_v21  ;;  %6710 = vmatprep.mubr.msk.f32.mxu0 %vm717_vm2, %v3564_v17 }
0x1ccf   :  { %6708 = vmatprep.subr.msk.mxu0 %vm717_vm2, %v3568_v23 }
0x1cd2   :  { %6709 = vmatpush3.xpose.msk.msra.mxu0 %vm717_vm2, %v3568_v23 }
0x1cd5   :  { %6711 = vmatmul.mubr.msk.f32.vlgmr.msra.gmra.mxu0 %vm717_vm2, %v3566_v32 }
0x1d8d   :  { %v8656_v20 = vpop.f32.mrf.mxu0 }
0x1d8f   :  { %v8658_v36 = vpop.f32.mrf.mxu0 }
0x1d95   :  { %v6712_v51 = vpop.f32.mrf.mxu0 }
0x1d96   :  { %v3655_v11 = vmul.f32 0.17677669, %v6712_v51 }
0x1d97   :  { %v3645_v22 = vpop.f32.mrf.mxu0 }
0x1d98   :  { %v3654_v38 = vmul.f32 0.17677669, %v3645_v22  ;;  %v3659_v39 = vsel %vm807_vm3, %v3655_v11, -inf }
0x1d99   :  { %3660 = vmax.xlane.f32.xlu1 %v3659_v39 }
0x1d9a   :  { %v3656_v41 = vsel %vm807_vm3, %v3654_v38, -inf }
0x1d9b   :  { %3657 = vmax.xlane.f32.xlu0 %v3656_v41 }
0x1daa   :  { %3680 = vrot.lane.b32.xlu1 %v8601_v40, %s7147_s21 }
0x1dae   :  { %3773 = vrot.lane.b32.xlu1 %v8571_v15, %s7148_s26 }
0x1db1   :  { %3682 = vrot.lane.b32.xlu0 %v8593_v52, %s7147_s21 }
0x1db2   :  { %3975 = vrot.lane.b32.xlu1 %v8571_v15, %s7149_s1 }
0x1db6   :  { %3973 = vrot.lane.b32.xlu1 %v8582_v19, %s7149_s1 }
0x1dba   :  { %3769 = vrot.lane.b32.xlu1 %v8597_v4, %s7148_s26 }
0x1dbe   :  { %3971 = vrot.lane.b32.xlu1 %v8597_v4, %s7149_s1  ;;  %v3366_v4 = vmul.f32 %v8617_v10, %v6691_v9 }
0x1dc0   :  { %v8682_v62 = vadd.f32 %v3366_v4, %v3277_v31 }
0x1e22   :  { %v3661_v42 = vpop.xlane.xlu1 %3660 }
0x1e23   :  { %v3663_v43 = vsub.f32 %v3655_v11, %v3661_v42 }
0x1e24   :  { %v3658_v44 = vpop.xlane.xlu0 %3657 }
0x1e25   :  { %v3666_v50 = vmul.f32 1.442695, %v3663_v43  ;;  %v3662_v56 = vsub.f32 %v3654_v38, %v3658_v44 }
0x1e26   :  { %v3681_v63 = vpop.permute.xlu1 %3680 }
0x1e27   :  { %7020 = vpow2.f32 %v3666_v50  ;;  %v3664_v2 = vmul.f32 1.442695, %v3662_v56 }
0x1e28   :  { %v3683_v8 = vpop.permute.xlu0 %3682 }
0x1e29   :  { %7022 = vpow2.f32 %v3664_v2  ;;  %6713 = vmatprep.subr.mxu0 %v3683_v8 }
0x1e2a   :  { %v3774_v15 = vpop.permute.xlu1 %3773  ;;  %6714 = vmatpush3.msra.mxu0 %v3683_v8 }
0x1e2b   :  { %6715 = vmatprep.subr.mxu0 %v3681_v63 }
0x1e2c   :  { %6716 = vmatpush3.msra.mxu0 %v3681_v63 }
0x1e2d   :  { %6720 = vmatprep.subr.msk.mxu0 %vm717_vm2, %v3774_v15 }
0x1e2e   :  { %v3976_v12 = vpop.permute.xlu1 %3975 }
0x1e2f   :  { %6734 = vmatprep.subr.msk.mxu1 %vm717_vm2, %v3976_v12 }
0x1e30   :  { %6735 = vmatpush3.xpose.msk.msra.mxu1 %vm717_vm2, %v3976_v12 }
0x1e32   :  { %v3974_v48 = vpop.permute.xlu1 %3973 }
0x1e33   :  { %6736 = vmatprep.subr.msk.mxu1 %vm717_vm2, %v3974_v48 }
0x1e34   :  { %v7021_v29 = vpop.eup %7020  ;;  %6737 = vmatpush3.xpose.msk.msra.mxu1 %vm717_vm2, %v3974_v48 }
0x1e35   :  { %6748 = vmatprep.subr.msk.mxu1 %vm717_vm2, %v8682_v62  ;;  %v3671_v10 = vsel %vm807_vm3, %v7021_v29, 0.0 }
0x1e36   :  { %v7023_v33 = vpop.eup %7022  ;;  %3672 = vadd.xlane.f32.xlu0 %v3671_v10  ;;  %v3770_v60 = vpop.permute.xlu1 %3769 }
0x1e37   :  { %v3668_v46 = vsel %vm807_vm3, %v7023_v33, 0.0 }
0x1e3a   :  { %3669 = vadd.xlane.f32.xlu0 %v3668_v46  ;;  %v3972_v21 = vpop.permute.xlu1 %3971 }
0x1e50   :  { %3771 = vrot.lane.b32.xlu0 %v8582_v19, %s7148_s26 }
0x1e54   :  { %3767 = vrot.lane.b32.xlu0 %v8580_v34, %s7148_s26 }
0x1e58   :  { %3969 = vrot.lane.b32.xlu0 %v8580_v34, %s7149_s1  ;;  %v8700_v34 = vadd.f32 %v3365_v53, %v3276_v35 }
0x1ebf   :  { %v3673_v47 = vpop.xlane.xlu0 %3672 }
0x1ec0   :  { %7024 = vrcp.f32 %v3673_v47 }
0x1ec3   :  { %v3670_v5 = vpop.xlane.xlu0 %3669 }
0x1ec4   :  { %7026 = vrcp.f32 %v3670_v5 }
0x1ec7   :  { %v3772_v25 = vpop.permute.xlu0 %3771 }
0x1ecb   :  { %v3768_v61 = vpop.permute.xlu0 %3767 }
0x1ecd   :  { %v7025_v6 = vpop.eup %7024 }
0x1ece   :  { %v3677_v37 = vmul.f32 %v7025_v6, %v7021_v29 }
0x1ecf   :  { %v3970_v19 = vpop.permute.xlu0 %3969 }
0x1ed0   :  { %6738 = vmatprep.mubr.msk.f32.mxu1 %vm717_vm2, %v3970_v19 }
0x1ed1   :  { %v7027_v23 = vpop.eup %7026  ;;  %6739 = vmatmul.mubr.msk.f32.vlgmr.msra.gmra.mxu1 %vm717_vm2, %v3972_v21 }
0x1ed2   :  { %6749 = vmatpush3.xpose.msk.msra.mxu1 %vm717_vm2, %v8682_v62  ;;  %6752 = vmatprep.mubr.msk.f32.mxu1 %vm717_vm2, %v8634_v58  ;;  %v3675_v55 = vmul.f32 %v7027_v23, %v7023_v33 }
0x1ed3   :  { %6750 = vmatprep.subr.msk.mxu1 %vm717_vm2, %v8700_v34 }
0x1ed4   :  { %6717 = vmatprep.mubr.msk.f32.mxu0 %vm807_vm3, %v3675_v55 }
0x1ed5   :  { %6718 = vmatmul.mubr.msk.f32.vlgmr.msra.gmra.mxu0 %vm807_vm3, %v3677_v37 }
0x1ed6   :  { %6721 = vmatpush3.xpose.msk.msra.mxu0 %vm717_vm2, %v3774_v15  ;;  %6751 = vmatpush3.xpose.msk.msra.mxu1 %vm717_vm2, %v8700_v34 }
0x1ed7   :  { %6722 = vmatprep.subr.msk.mxu0 %vm717_vm2, %v3772_v25  ;;  %6724 = vmatprep.mubr.msk.f32.mxu0 %vm717_vm2, %v3768_v61 }
0x1ed9   :  { %6753 = vmatmul.mubr.msk.f32.vlgmr.msra.gmra.mxu1 %vm717_vm2, %v8626_v54 }
0x1eda   :  { %6723 = vmatpush3.xpose.msk.msra.mxu0 %vm717_vm2, %v3772_v25 }
0x1edd   :  { %6725 = vmatmul.mubr.msk.f32.vlgmr.msra.gmra.mxu0 %vm717_vm2, %v3770_v60 }
0x1f91   :  { %v6740_v49 = vpop.f32.mrf.mxu1 }
0x1f92   :  { %v4061_v43 = vmul.f32 0.17677669, %v6740_v49 }
0x1f93   :  { %v4051_v24 = vpop.f32.mrf.mxu1 }
0x1f94   :  { %v4060_v28 = vmul.f32 0.17677669, %v4051_v24  ;;  %v4065_v2 = vsel %vm807_vm3, %v4061_v43, -inf }
0x1f95   :  { %v8720_v16 = vpop.f32.mrf.mxu0 }
0x1f96   :  { %v4062_v13 = vsel %vm807_vm3, %v4060_v28, -inf }
0x1f97   :  { %v8723_v17 = vpop.f32.mrf.mxu0  ;;  %4063 = vmax.xlane.f32.xlu0 %v4062_v13 }
0x1f98   :  { %v6878_v32 = vpack.i.bf16 %v8720_v16, %v8723_v17 }
0x1f99   :  { %v6754_v51 = vpop.f32.mrf.mxu1 }
0x1f9a   :  { %v4289_v39 = vmul.f32 0.17677669, %v6754_v51 }
0x1f9b   :  { %v4279_v50 = vpop.f32.mrf.mxu1 }
0x1f9c   :  { %v4293_v56 = vsel %vm807_vm3, %v4289_v39, -inf  ;;  %v4288_v63 = vmul.f32 0.17677669, %v4279_v50 }
0x1f9d   :  { %v6726_v11 = vpop.f32.mrf.mxu0 }
0x1f9e   :  { %v3859_v22 = vmul.f32 0.17677669, %v6726_v11  ;;  %v4290_v8 = vsel %vm807_vm3, %v4288_v63, -inf }
0x1f9f   :  { %v3849_v38 = vpop.f32.mrf.mxu0 }
0x1fa0   :  { %v3858_v41 = vmul.f32 0.17677669, %v3849_v38  ;;  %v3863_v42 = vsel %vm807_vm3, %v3859_v22, -inf }
0x1fa1   :  { %3864 = vmax.xlane.f32.xlu1 %v3863_v42 }
0x1fa2   :  { %v3860_v44 = vsel %vm807_vm3, %v3858_v41, -inf }
0x1fa3   :  { %3861 = vmax.xlane.f32.xlu0 %v3860_v44 }
0x1fa5   :  { %4294 = vmax.xlane.f32.xlu1 %v4293_v56 }
0x1fa7   :  { %4066 = vmax.xlane.f32.xlu0 %v4065_v2 }
0x1fab   :  { %4291 = vmax.xlane.f32.xlu0 %v4290_v8 }
0x2020   :  { %v4064_v15 = vpop.xlane.xlu0 %4063 }
0x2021   :  { %v4068_v9 = vsub.f32 %v4060_v28, %v4064_v15 }
0x2023   :  { %v4070_v12 = vmul.f32 1.442695, %v4068_v9 }
0x2025   :  { %7028 = vpow2.f32 %v4070_v12 }
0x202a   :  { %v3865_v4 = vpop.xlane.xlu1 %3864 }
0x202b   :  { %v3867_v47 = vsub.f32 %v3859_v22, %v3865_v4 }
0x202c   :  { %v3862_v31 = vpop.xlane.xlu0 %3861 }
0x202d   :  { %v3866_v5 = vsub.f32 %v3858_v41, %v3862_v31  ;;  %v3870_v35 = vmul.f32 1.442695, %v3867_v47  ;;  %v8766_v31 = vadd.f32 %v8554_v59, %v8578_v7 }
0x202e   :  { %v4295_v48 = vpop.xlane.xlu1 %4294 }
0x202f   :  { %v4297_v29 = vsub.f32 %v4289_v39, %v4295_v48  ;;  %v3868_v19 = vmul.f32 1.442695, %v3866_v5 }
0x2030   :  { %v4067_v10 = vpop.xlane.xlu0 %4066 }
0x2031   :  { %v4069_v33 = vsub.f32 %v4061_v43, %v4067_v10  ;;  %v4300_v25 = vmul.f32 1.442695, %v4297_v29 }
0x2032   :  { %v8732_v46 = vpop.eup %7028 }
0x2033   :  { %v4072_v57 = vmul.f32 1.442695, %v4069_v33  ;;  %v4074_v60 = vsel %vm807_vm3, %v8732_v46, 0.0 }
0x2034   :  { %v4292_v61 = vpop.xlane.xlu0 %4291  ;;  %4075 = vadd.xlane.f32.xlu0 %v4074_v60 }
0x2035   :  { %7030 = vpow2.f32 %v4072_v57  ;;  %v4296_v53 = vsub.f32 %v4288_v63, %v4292_v61 }
0x2036   :  { %7032 = vpow2.f32 %v4300_v25 }
0x2037   :  { %v4298_v6 = vmul.f32 1.442695, %v4296_v53 }
0x2039   :  { %7034 = vpow2.f32 %v4298_v6 }
0x203a   :  { %7036 = vpow2.f32 %v3870_v35 }
0x203b   :  { %7038 = vpow2.f32 %v3868_v19 }
0x2042   :  { %v7031_v21 = vpop.eup %7030 }
0x2043   :  { %v4077_v23 = vsel %vm807_vm3, %v7031_v21, 0.0  ;;  %v8737_v55 = vpop.eup %7032 }
0x2044   :  { %4078 = vadd.xlane.f32.xlu1 %v4077_v23  ;;  %v4305_v24 = vsel %vm807_vm3, %v8737_v55, 0.0 }
0x2046   :  { %v7035_v37 = vpop.eup %7034 }
0x2047   :  { %v7037_v49 = vpop.eup %7036  ;;  %v4302_v28 = vsel %vm807_vm3, %v7035_v37, 0.0 }
0x2048   :  { %v7039_v13 = vpop.eup %7038  ;;  %4306 = vadd.xlane.f32.xlu1 %v4305_v24  ;;  %4303 = vadd.xlane.f32.xlu0 %v4302_v28  ;;  %v3875_v51 = vsel %vm807_vm3, %v7037_v49, 0.0 }
0x2049   :  { %v3872_v11 = vsel %vm807_vm3, %v7039_v13, 0.0 }
0x204c   :  { %3876 = vadd.xlane.f32.xlu1 %v3875_v51  ;;  %3873 = vadd.xlane.f32.xlu0 %v3872_v11 }
0x205d   :  { %3882 = vrot.lane.b32.xlu1 %v8601_v40, %s7148_s26 }
0x2061   :  { %4086 = vrot.lane.b32.xlu1 %v8593_v52, %s7149_s1 }
0x2062   :  { %3884 = vrot.lane.b32.xlu0 %v8593_v52, %s7148_s26 }
0x2065   :  { %4084 = vrot.lane.b32.xlu1 %v8601_v40, %s7149_s1 }
0x2066   :  { %4399 = vrot.lane.b32.xlu0 %v8682_v62, %s7147_s21 }
0x2069   :  { %4397 = vrot.lane.b32.xlu1 %v8700_v34, %s7147_s21 }
0x206a   :  { %4393 = vrot.lane.b32.xlu0 %v8634_v58, %s7147_s21 }
0x206d   :  { %4395 = vrot.lane.b32.xlu1 %v8626_v54, %s7147_s21 }
0x20bd   :  { %v4076_v22 = vpop.xlane.xlu0 %4075 }
0x20be   :  { %7040 = vrcp.f32 %v4076_v22 }
0x20cb   :  { %v7041_v50 = vpop.eup %7040 }
0x20cc   :  { %v4081_v9 = vmul.f32 %v7041_v50, %v8732_v46  ;;  %v8770_v46 = vadd.f32 %v8557_v14, %v8578_v7 }
0x20cd   :  { %v4079_v38 = vpop.xlane.xlu1 %4078 }
0x20d1   :  { %v4307_v39 = vpop.xlane.xlu1 %4306  ;;  %v4304_v41 = vpop.xlane.xlu0 %4303 }
0x20d5   :  { %v3877_v52 = vpop.xlane.xlu1 %3876  ;;  %v3874_v42 = vpop.xlane.xlu0 %3873 }
0x20d6   :  { %7042 = vrcp.f32 %v3877_v52 }
0x20d7   :  { %7044 = vrcp.f32 %v3874_v42 }
0x20d8   :  { %7046 = vrcp.f32 %v4079_v38 }
0x20d9   :  { %v3883_v40 = vpop.permute.xlu1 %3882  ;;  %v3885_v43 = vpop.permute.xlu0 %3884  ;;  %7048 = vrcp.f32 %v4304_v41 }
0x20da   :  { %6727 = vmatprep.subr.mxu0 %v3885_v43  ;;  %7050 = vrcp.f32 %v4307_v39 }
0x20db   :  { %6728 = vmatpush3.msra.mxu0 %v3885_v43 }
0x20dc   :  { %6729 = vmatprep.subr.mxu0 %v3883_v40 }
0x20dd   :  { %v4087_v44 = vpop.permute.xlu1 %4086  ;;  %6730 = vmatpush3.msra.mxu0 %v3883_v40  ;;  %v4400_v48 = vpop.permute.xlu0 %4399 }
0x20de   :  { %6741 = vmatprep.subr.mxu0 %v4087_v44 }
0x20e1   :  { %v4085_v4 = vpop.permute.xlu1 %4084  ;;  %v4394_v47 = vpop.permute.xlu0 %4393 }
0x20e3   :  { %v7043_v56 = vpop.eup %7042 }
0x20e4   :  { %v7045_v63 = vpop.eup %7044  ;;  %v3881_v2 = vmul.f32 %v7043_v56, %v7037_v49 }
0x20e5   :  { %v3879_v8 = vmul.f32 %v7045_v63, %v7039_v13  ;;  %v7047_v15 = vpop.eup %7046  ;;  %v4398_v14 = vpop.permute.xlu1 %4397 }
0x20e6   :  { %v7049_v12 = vpop.eup %7048  ;;  %v4083_v29 = vmul.f32 %v7047_v15, %v7031_v21 }
0x20e7   :  { %6731 = vmatprep.mubr.msk.f32.mxu0 %vm807_vm3, %v3879_v8  ;;  %v7051_v10 = vpop.eup %7050  ;;  %v4309_v33 = vmul.f32 %v7049_v12, %v7035_v37 }
0x20e8   :  { %6732 = vmatmul.mubr.msk.f32.vlgmr.msra.gmra.mxu0 %vm807_vm3, %v3881_v2  ;;  %v4311_v59 = vmul.f32 %v7051_v10, %v8737_v55 }
0x20e9   :  { %6742 = vmatpush3.msra.mxu0 %v4087_v44  ;;  %6745 = vmatprep.mubr.msk.f32.mxu0 %vm807_vm3, %v4081_v9  ;;  %v4396_v7 = vpop.permute.xlu1 %4395 }
0x20ea   :  { %6743 = vmatprep.subr.mxu0 %v4085_v4 }
0x20eb   :  { %6744 = vmatpush3.msra.mxu0 %v4085_v4 }
0x20ec   :  { %6755 = vmatprep.subr.mxu0 %v8766_v31  ;;  %6746 = vmatmul.mubr.msk.f32.vlgmr.msra.gmra.mxu0 %vm807_vm3, %v4083_v29 }
0x20ed   :  { %6756 = vmatpush3.msra.mxu0 %v8766_v31  ;;  %6759 = vmatprep.mubr.msk.f32.mxu0 %vm807_vm3, %v4309_v33 }
0x20ee   :  { %6757 = vmatprep.subr.mxu0 %v8770_v46 }
0x20ef   :  { %6758 = vmatpush3.msra.mxu0 %v8770_v46 }
0x20f0   :  { %6762 = vmatprep.subr.msk.mxu0 %vm717_vm2, %v4400_v48  ;;  %6760 = vmatmul.mubr.msk.f32.vlgmr.msra.gmra.mxu0 %vm807_vm3, %v4311_v59 }
0x20f1   :  { %6763 = vmatpush3.xpose.msk.msra.mxu0 %vm717_vm2, %v4400_v48  ;;  %6766 = vmatprep.mubr.msk.f32.mxu0 %vm717_vm2, %v4394_v47 }
0x20f2   :  { %6764 = vmatprep.subr.msk.mxu0 %vm717_vm2, %v4398_v14 }
0x20f5   :  { %6765 = vmatpush3.xpose.msk.msra.mxu0 %vm717_vm2, %v4398_v14 }
0x20f8   :  { %6767 = vmatmul.mubr.msk.f32.vlgmr.msra.gmra.mxu0 %vm717_vm2, %v4396_v7 }
0x21a8   :  { %v8786_v5 = vpop.f32.mrf.mxu0 }
0x21aa   :  { %v8788_v25 = vpop.f32.mrf.mxu0 }
0x21ab   :  { %v6883_v57 = vpack.i.bf16 %v8786_v5, %v8788_v25 }
0x21ac   :  { %v8792_v60 = vpop.f32.mrf.mxu0 }
0x21ae   :  { %v8794_v61 = vpop.f32.mrf.mxu0 }
0x21af   :  { %v6888_v53 = vpack.i.bf16 %v8792_v60, %v8794_v61 }
0x21b0   :  { %v8798_v35 = vpop.f32.mrf.mxu0 }
0x21b2   :  { %v8800_v19 = vpop.f32.mrf.mxu0 }
0x21b8   :  { %v6768_v6 = vpop.f32.mrf.mxu0 }
0x21b9   :  { %v4485_v21 = vmul.f32 0.17677669, %v6768_v6 }
0x21ba   :  { %v4475_v23 = vpop.f32.mrf.mxu0 }
0x21bb   :  { %v4484_v55 = vmul.f32 0.17677669, %v4475_v23  ;;  %v4489_v37 = vsel %vm807_vm3, %v4485_v21, -inf }
0x21bc   :  { %4490 = vmax.xlane.f32.xlu1 %v4489_v37 }
0x21bd   :  { %v4486_v49 = vsel %vm807_vm3, %v4484_v55, -inf }
0x21be   :  { %4487 = vmax.xlane.f32.xlu0 %v4486_v49 }
0x21cd   :  { %4510 = vrot.lane.b32.xlu1 %v8770_v46, %s7147_s21 }
0x21d1   :  { %4603 = vrot.lane.b32.xlu1 %v8682_v62, %s7148_s26 }
0x21d5   :  { %4601 = vrot.lane.b32.xlu1 %v8700_v34, %s7148_s26 }
0x21d9   :  { %4599 = vrot.lane.b32.xlu1 %v8626_v54, %s7148_s26 }
0x2245   :  { %v4491_v24 = vpop.xlane.xlu1 %4490 }
0x2246   :  { %v4493_v28 = vsub.f32 %v4485_v21, %v4491_v24 }
0x2247   :  { %v4488_v13 = vpop.xlane.xlu0 %4487 }
0x2248   :  { %v4496_v51 = vmul.f32 1.442695, %v4493_v28  ;;  %v4492_v11 = vsub.f32 %v4484_v55, %v4488_v13 }
0x2249   :  { %v4511_v43 = vpop.permute.xlu1 %4510 }
0x224a   :  { %7052 = vpow2.f32 %v4496_v51  ;;  %v4494_v22 = vmul.f32 1.442695, %v4492_v11 }
0x224c   :  { %7054 = vpow2.f32 %v4494_v22 }
0x224d   :  { %v4604_v50 = vpop.permute.xlu1 %4603 }
0x2251   :  { %v4602_v9 = vpop.permute.xlu1 %4601 }
0x2255   :  { %v4600_v12 = vpop.permute.xlu1 %4599 }
0x2257   :  { %v7053_v38 = vpop.eup %7052 }
0x2258   :  { %v4501_v39 = vsel %vm807_vm3, %v7053_v38, 0.0 }
0x2259   :  { %v7055_v41 = vpop.eup %7054  ;;  %4502 = vadd.xlane.f32.xlu0 %v4501_v39 }
0x225a   :  { %v4498_v52 = vsel %vm807_vm3, %v7055_v41, 0.0 }
0x225d   :  { %4499 = vadd.xlane.f32.xlu0 %v4498_v52 }
0x2273   :  { %4512 = vrot.lane.b32.xlu0 %v8766_v31, %s7147_s21 }
0x2277   :  { %4597 = vrot.lane.b32.xlu0 %v8634_v58, %s7148_s26 }
0x22e2   :  { %v4503_v42 = vpop.xlane.xlu0 %4502 }
0x22e3   :  { %7056 = vrcp.f32 %v4503_v42 }
0x22e6   :  { %v4500_v40 = vpop.xlane.xlu0 %4499 }
0x22e7   :  { %7058 = vrcp.f32 %v4500_v40 }
0x22ea   :  { %v4513_v44 = vpop.permute.xlu0 %4512 }
0x22eb   :  { %6769 = vmatprep.subr.mxu1 %v4513_v44 }
0x22ec   :  { %6770 = vmatpush3.msra.mxu1 %v4513_v44 }
0x22ed   :  { %6771 = vmatprep.subr.mxu1 %v4511_v43 }
0x22ee   :  { %6772 = vmatpush3.msra.mxu1 %v4511_v43  ;;  %v4598_v15 = vpop.permute.xlu0 %4597 }
0x22ef   :  { %6776 = vmatprep.subr.msk.mxu1 %vm717_vm2, %v4604_v50 }
0x22f0   :  { %v7057_v56 = vpop.eup %7056 }
0x22f1   :  { %v4507_v8 = vmul.f32 %v7057_v56, %v7053_v38 }
0x22f4   :  { %v7059_v63 = vpop.eup %7058 }
0x22f5   :  { %v4505_v2 = vmul.f32 %v7059_v63, %v7055_v41 }
0x22f7   :  { %6773 = vmatprep.mubr.msk.f32.mxu1 %vm807_vm3, %v4505_v2 }
0x22f8   :  { %6774 = vmatmul.mubr.msk.f32.vlgmr.msra.gmra.mxu1 %vm807_vm3, %v4507_v8 }
0x22f9   :  { %6777 = vmatpush3.xpose.msk.msra.mxu1 %vm717_vm2, %v4604_v50  ;;  %6780 = vmatprep.mubr.msk.f32.mxu1 %vm717_vm2, %v4598_v15 }
0x22fa   :  { %6778 = vmatprep.subr.msk.mxu1 %vm717_vm2, %v4602_v9 }
0x22fd   :  { %6779 = vmatpush3.xpose.msk.msra.mxu1 %vm717_vm2, %v4602_v9 }
0x2300   :  { %6781 = vmatmul.mubr.msk.f32.vlgmr.msra.gmra.mxu1 %vm717_vm2, %v4600_v12 }
0x23b8   :  { %v8826_v4 = vpop.f32.mrf.mxu1 }
0x23ba   :  { %v8828_v48 = vpop.f32.mrf.mxu1 }
0x23bb   :  { %v6893_v29 = vpack.i.bf16 %v8826_v4, %v8828_v48 }
0x23c0   :  { %v6782_v10 = vpop.f32.mrf.mxu1 }
0x23c1   :  { %v4689_v33 = vmul.f32 0.17677669, %v6782_v10 }
0x23c2   :  { %v4679_v59 = vpop.f32.mrf.mxu1 }
0x23c3   :  { %v4688_v47 = vmul.f32 0.17677669, %v4679_v59  ;;  %v4693_v14 = vsel %vm807_vm3, %v4689_v33, -inf }
0x23c4   :  { %4694 = vmax.xlane.f32.xlu1 %v4693_v14 }
0x23c5   :  { %v4690_v7 = vsel %vm807_vm3, %v4688_v47, -inf }
0x23c6   :  { %4691 = vmax.xlane.f32.xlu0 %v4690_v7 }
0x23d5   :  { %4712 = vrot.lane.b32.xlu1 %v8770_v46, %s7148_s26 }
0x23d9   :  { %4805 = vrot.lane.b32.xlu1 %v8682_v62, %s7149_s1 }
0x23dd   :  { %4803 = vrot.lane.b32.xlu1 %v8700_v34, %s7149_s1 }
0x23e1   :  { %4801 = vrot.lane.b32.xlu1 %v8626_v54, %s7149_s1 }
0x244d   :  { %v4695_v6 = vpop.xlane.xlu1 %4694 }
0x244e   :  { %v4697_v21 = vsub.f32 %v4689_v33, %v4695_v6 }
0x244f   :  { %v4692_v23 = vpop.xlane.xlu0 %4691 }
0x2450   :  { %v4700_v55 = vmul.f32 1.442695, %v4697_v21  ;;  %v4696_v37 = vsub.f32 %v4688_v47, %v4692_v23 }
0x2451   :  { %v4713_v51 = vpop.permute.xlu1 %4712 }
0x2452   :  { %7060 = vpow2.f32 %v4700_v55  ;;  %v4698_v49 = vmul.f32 1.442695, %v4696_v37 }
0x2454   :  { %7062 = vpow2.f32 %v4698_v49  ;;  %v5863_v49 = vld [vmem:[%s9341_s6 + $0xf0] sm:$0xff] }
0x2455   :  { %v4806_v22 = vpop.permute.xlu1 %4805 }
0x2459   :  { %v4804_v42 = vpop.permute.xlu1 %4803 }
0x245d   :  { %v4802_v40 = vpop.permute.xlu1 %4801 }
0x245f   :  { %v7061_v24 = vpop.eup %7060 }
0x2460   :  { %v4705_v28 = vsel %vm807_vm3, %v7061_v24, 0.0 }
0x2461   :  { %v7063_v13 = vpop.eup %7062  ;;  %4706 = vadd.xlane.f32.xlu0 %v4705_v28 }
0x2462   :  { %v4702_v62 = vsel %vm807_vm3, %v7063_v13, 0.0 }
0x2465   :  { %4703 = vadd.xlane.f32.xlu0 %v4702_v62  ;;  %v5860_v62 = vld [vmem:[%s9341_s6 + $0xd8] sm:$0xff] }
0x247b   :  { %4714 = vrot.lane.b32.xlu0 %v8766_v31, %s7148_s26 }
0x247f   :  { %4799 = vrot.lane.b32.xlu0 %v8634_v58, %s7149_s1 }
0x24ea   :  { %v4707_v54 = vpop.xlane.xlu0 %4706 }
0x24eb   :  { %7064 = vrcp.f32 %v4707_v54  ;;  %v5859_v54 = vld [vmem:[%s9341_s6 + $0xd0] sm:$0xff] }
0x24ee   :  { %v4704_v34 = vpop.xlane.xlu0 %4703 }
0x24ef   :  { %7066 = vrcp.f32 %v4704_v34  ;;  %v5858_v34 = vld [vmem:[%s9341_s6 + $0xc8] sm:$0xff] }
0x24f2   :  { %v4715_v11 = vpop.permute.xlu0 %4714 }
0x24f3   :  { %6783 = vmatprep.subr.mxu0 %v4715_v11 }
0x24f4   :  { %6784 = vmatpush3.msra.mxu0 %v4715_v11  ;;  %v5856_v11 = vld [vmem:[%s9341_s6 + $0xb8] sm:$0xff] }
0x24f5   :  { %6785 = vmatprep.subr.mxu0 %v4713_v51 }
0x24f6   :  { %6786 = vmatpush3.msra.mxu0 %v4713_v51  ;;  %v4800_v58 = vpop.permute.xlu0 %4799  ;;  %v5857_v51 = vld [vmem:[%s9341_s6 + $0xc0] sm:$0xff] }
0x24f7   :  { %6790 = vmatprep.subr.msk.mxu0 %vm717_vm2, %v4806_v22 }
0x24f8   :  { %v7065_v38 = vpop.eup %7064 }
0x24f9   :  { %v4711_v52 = vmul.f32 %v7065_v38, %v7061_v24  ;;  %v5854_v38 = vld [vmem:[%s9341_s6 + $0xa8] sm:$0xff] }
0x24fc   :  { %v7067_v39 = vpop.eup %7066 }
0x24fd   :  { %v4709_v41 = vmul.f32 %v7067_v39, %v7063_v13  ;;  %v5862_v13 = vld [vmem:[%s9341_s6 + $0xe8] sm:$0xff]  ;;  %v5853_v39 = vld [vmem:[%s9341_s6 + $0xa0] sm:$0xff] }
0x24ff   :  { %6787 = vmatprep.mubr.msk.f32.mxu0 %vm807_vm3, %v4709_v41  ;;  %v5852_v41 = vld [vmem:[%s9341_s6 + $0x98] sm:$0xff] }
0x2500   :  { %6788 = vmatmul.mubr.msk.f32.vlgmr.msra.gmra.mxu0 %vm807_vm3, %v4711_v52  ;;  %v5851_v52 = vld [vmem:[%s9341_s6 + $0x90] sm:$0xff] }
0x2501   :  { %6791 = vmatpush3.xpose.msk.msra.mxu0 %vm717_vm2, %v4806_v22  ;;  %6794 = vmatprep.mubr.msk.f32.mxu0 %vm717_vm2, %v4800_v58  ;;  %v5855_v22 = vld [vmem:[%s9341_s6 + $0xb0] sm:$0xff] }
0x2502   :  { %6792 = vmatprep.subr.msk.mxu0 %vm717_vm2, %v4804_v42 }
0x2505   :  { %6793 = vmatpush3.xpose.msk.msra.mxu0 %vm717_vm2, %v4804_v42  ;;  %v5850_v42 = vld [vmem:[%s9341_s6 + $0x88] sm:$0xff] }
0x2508   :  { %6795 = vmatmul.mubr.msk.f32.vlgmr.msra.gmra.mxu0 %vm717_vm2, %v4802_v40 }
0x2509   :  { %5327 = vmatprep.mubr.f32.mxu0 %v7146_v1 }
0x25c0   :  { %v6789_v43 = vpop.f32.mrf.mxu0 }
0x25c2   :  { %v4790_v44 = vpop.f32.mrf.mxu0 }
0x25c3   :  { %v6898_v50 = vpack.i.bf16 %v6789_v43, %v4790_v44  ;;  %v5849_v44 = vld [vmem:[%s9341_s6 + $0x80] sm:$0xff] }
0x25c8   :  { %v6796_v56 = vpop.f32.mrf.mxu0 }
0x25c9   :  { %v4891_v63 = vmul.f32 0.17677669, %v6796_v56 }
0x25ca   :  { %v4881_v2 = vpop.f32.mrf.mxu0 }
0x25cb   :  { %v4890_v8 = vmul.f32 0.17677669, %v4881_v2  ;;  %v4895_v15 = vsel %vm807_vm3, %v4891_v63, -inf }
0x25cc   :  { %4896 = vmax.xlane.f32.xlu1 %v4895_v15 }
0x25cd   :  { %v4892_v9 = vsel %vm807_vm3, %v4890_v8, -inf }
0x25ce   :  { %4893 = vmax.xlane.f32.xlu0 %v4892_v9 }
0x25dd   :  { %4914 = vrot.lane.b32.xlu1 %v8770_v46, %s7149_s1 }
0x25e1   :  { %6879 = vrot.lane.b32.xlu1 %v6878_v32, %s7149_s1 }
0x25e5   :  { %6884 = vrot.lane.b32.xlu1 %v6883_v57, %s7148_s26 }
0x25e9   :  { %6894 = vrot.lane.b32.xlu1 %v6893_v29, %s7149_s1 }
0x2655   :  { %v4897_v12 = vpop.xlane.xlu1 %4896 }
0x2656   :  { %v4899_v10 = vsub.f32 %v4891_v63, %v4897_v12 }
0x2657   :  { %v4894_v33 = vpop.xlane.xlu0 %4893 }
0x2658   :  { %v4902_v59 = vmul.f32 1.442695, %v4899_v10  ;;  %v4898_v46 = vsub.f32 %v4890_v8, %v4894_v33 }
0x2659   :  { %v4915_v57 = vpop.permute.xlu1 %4914 }
0x265a   :  { %7068 = vpow2.f32 %v4902_v59  ;;  %v4900_v47 = vmul.f32 1.442695, %v4898_v46 }
0x265c   :  { %7070 = vpow2.f32 %v4900_v47 }
0x265d   :  { %v8882_v48 = vpop.permute.xlu1 %6879 }
0x265e   :  { %v6882_v58 = vunpack.i.h.bf16 %v8882_v48 }
0x2661   :  { %v8887_v60 = vpop.permute.xlu1 %6884 }
0x2662   :  { %v6886_v7 = vunpack.i.l.bf16 %v8887_v60  ;;  %v6887_v40 = vunpack.i.h.bf16 %v8887_v60 }
0x2665   :  { %v6895_v47 = vpop.permute.xlu1 %6894 }
0x2667   :  { %v7069_v16 = vpop.eup %7068 }
0x2668   :  { %v4907_v17 = vsel %vm807_vm3, %v7069_v16, 0.0 }
0x2669   :  { %v7071_v32 = vpop.eup %7070  ;;  %4908 = vadd.xlane.f32.xlu0 %v4907_v17  ;;  %v6897_v17 = vunpack.i.h.bf16 %v6895_v47 }
0x266a   :  { %v4904_v5 = vsel %vm807_vm3, %v7071_v32, 0.0 }
0x266d   :  { %4905 = vadd.xlane.f32.xlu0 %v4904_v5 }
0x2683   :  { %4916 = vrot.lane.b32.xlu0 %v8766_v31, %s7149_s1  ;;  %v5864_v31 = vld [vmem:[%s9341_s6 + $0xf8] sm:$0xff] }
0x2687   :  { %6889 = vrot.lane.b32.xlu0 %v6888_v53, %s7147_s21  ;;  %v6881_v53 = vunpack.i.l.bf16 %v8882_v48  ;;  %v5026_v48 = vsel %vm717_vm2, %v8798_v35, %v6897_v17  ;;  %v5871_v17 = vld [vmem:[%s9345_s10 + $0x100] sm:$0xff] }
0x2689   :  { %v4195_v37 = vsel %vm717_vm2, %v8658_v36, %v6881_v53  ;;  %v5861_v36 = vld [vmem:[%s9341_s6 + $0xe0] sm:$0xff] }
0x268a   :  { %v4197_v24 = vsel %vm1545_vm4, %v4195_v37, %v6886_v7 }
0x268b   :  { %6899 = vrot.lane.b32.xlu0 %v6898_v50, %s7148_s26  ;;  %v4196_v50 = vsel %vm717_vm2, %v8656_v20, %v6882_v58  ;;  %v5866_v20 = vld [vmem:[%s9342_s7 + $0x1] ss:$0 sm:$0xff]  ;;  %v5889_v58 = vld [vmem:[%s9345_s10 + $0x190] sm:$0xff] }
0x268c   :  { %v4198_v56 = vsel %vm1545_vm4, %v4196_v50, %v6887_v40  ;;  %v5887_v40 = vld [vmem:[%s9345_s10 + $0x180] sm:$0xff]  ;;  %v5884_v50 = vld [vmem:[%s9345_s10 + $0x168] sm:$0xff] }
0x26f2   :  { %v4909_v25 = vpop.xlane.xlu0 %4908 }
0x26f3   :  { %7072 = vrcp.f32 %v4909_v25 }
0x26f6   :  { %v4906_v4 = vpop.xlane.xlu0 %4905 }
0x26f7   :  { %7074 = vrcp.f32 %v4906_v4 }
0x26fa   :  { %v4917_v29 = vpop.permute.xlu0 %4916 }
0x26fb   :  { %6797 = vmatprep.subr.mxu1 %v4917_v29 }
0x26fc   :  { %6798 = vmatpush3.msra.mxu1 %v4917_v29 }
0x26fd   :  { %6799 = vmatprep.subr.mxu1 %v4915_v57 }
0x26fe   :  { %6800 = vmatpush3.msra.mxu1 %v4915_v57  ;;  %v8889_v61 = vpop.permute.xlu0 %6889 }
0x26ff   :  { %6804 = vmatprep.subr.mxu1 %v5864_v31  ;;  %v6891_v21 = vunpack.i.l.bf16 %v8889_v61  ;;  %v6892_v43 = vunpack.i.h.bf16 %v8889_v61 }
0x2700   :  { %v7073_v14 = vpop.eup %7072 }
0x2701   :  { %v4913_v55 = vmul.f32 %v7073_v14, %v7069_v16  ;;  %v4199_v28 = vsel %vm1548_vm5, %v4197_v24, %v6891_v21  ;;  %v4200_v63 = vsel %vm1548_vm5, %v4198_v56, %v6892_v43  ;;  %v5886_v43 = vld [vmem:[%s9345_s10 + $0x178] sm:$0xff]  ;;  %v5883_v56 = vld [vmem:[%s9345_s10 + $0x160] sm:$0xff] }
0x2702   :  { %v6900_v16 = vpop.permute.xlu0 %6899 }
0x2703   :  { %v6902_v5 = vunpack.i.h.bf16 %v6900_v16 }
0x2704   :  { %v7075_v6 = vpop.eup %7074 }
0x2705   :  { %v4911_v23 = vmul.f32 %v7075_v6, %v7071_v32  ;;  %v6896_v32 = vunpack.i.l.bf16 %v6895_v47  ;;  %v5873_v47 = vld [vmem:[%s9345_s10 + $0x110] sm:$0xff] }
0x2707   :  { %6801 = vmatprep.mubr.msk.f32.mxu1 %vm807_vm3, %v4911_v23  ;;  %v5025_v4 = vsel %vm717_vm2, %v8800_v19, %v6896_v32 }
0x2708   :  { %6802 = vmatmul.mubr.msk.f32.vlgmr.msra.gmra.mxu1 %vm807_vm3, %v4913_v55 }
0x2709   :  { %6805 = vmatpush3.msra.mxu1 %v5864_v31  ;;  %6836 = vmatprep.mubr.f32.mxu1 %v4199_v28  ;;  %v5028_v31 = vsel %vm1545_vm4, %v5026_v48, %v6902_v5 }
0x270a   :  { %6806 = vmatprep.subr.mxu1 %v5863_v49 }
0x270b   :  { %6807 = vmatpush3.msra.mxu1 %v5863_v49 }
0x270c   :  { %6808 = vmatprep.subr.mxu1 %v5862_v13 }
0x270d   :  { %6809 = vmatpush3.msra.mxu1 %v5862_v13 }
0x270e   :  { %6810 = vmatprep.subr.mxu1 %v5861_v36 }
0x270f   :  { %6811 = vmatpush3.msra.mxu1 %v5861_v36  ;;  %v5900_v36 = vld [vmem:[%s9345_s10 + $0x1e8] sm:$0xff] }
0x2710   :  { %6812 = vmatprep.subr.mxu1 %v5860_v62 }
0x2711   :  { %6813 = vmatpush3.msra.mxu1 %v5860_v62  ;;  %v5899_v62 = vld [vmem:[%s9345_s10 + $0x1e0] sm:$0xff] }
0x2712   :  { %6814 = vmatprep.subr.mxu1 %v5859_v54 }
0x2713   :  { %6815 = vmatpush3.msra.mxu1 %v5859_v54  ;;  %v5898_v54 = vld [vmem:[%s9345_s10 + $0x1d8] sm:$0xff] }
0x2714   :  { %6816 = vmatprep.subr.mxu1 %v5858_v34 }
0x2715   :  { %6817 = vmatpush3.msra.mxu1 %v5858_v34  ;;  %v5897_v34 = vld [vmem:[%s9345_s10 + $0x1d0] sm:$0xff] }
0x2716   :  { %6818 = vmatprep.subr.mxu1 %v5857_v51 }
0x2717   :  { %6819 = vmatpush3.msra.mxu1 %v5857_v51  ;;  %v5896_v51 = vld [vmem:[%s9345_s10 + $0x1c8] sm:$0xff] }
0x2718   :  { %6820 = vmatprep.subr.mxu1 %v5856_v11 }
0x2719   :  { %6821 = vmatpush3.msra.mxu1 %v5856_v11  ;;  %v5895_v11 = vld [vmem:[%s9345_s10 + $0x1c0] sm:$0xff] }
0x271a   :  { %6822 = vmatprep.subr.mxu1 %v5855_v22 }
0x271b   :  { %6823 = vmatpush3.msra.mxu1 %v5855_v22  ;;  %v5894_v22 = vld [vmem:[%s9345_s10 + $0x1b8] sm:$0xff] }
0x271c   :  { %6824 = vmatprep.subr.mxu1 %v5854_v38 }
0x271d   :  { %6825 = vmatpush3.msra.mxu1 %v5854_v38  ;;  %v5893_v38 = vld [vmem:[%s9345_s10 + $0x1b0] sm:$0xff] }
0x271e   :  { %6826 = vmatprep.subr.mxu1 %v5853_v39 }
0x271f   :  { %6827 = vmatpush3.msra.mxu1 %v5853_v39  ;;  %v5892_v39 = vld [vmem:[%s9345_s10 + $0x1a8] sm:$0xff] }
0x2720   :  { %6828 = vmatprep.subr.mxu1 %v5852_v41 }
0x2721   :  { %6829 = vmatpush3.msra.mxu1 %v5852_v41  ;;  %v5891_v41 = vld [vmem:[%s9345_s10 + $0x1a0] sm:$0xff] }
0x2722   :  { %6830 = vmatprep.subr.mxu1 %v5851_v52 }
0x2723   :  { %6831 = vmatpush3.msra.mxu1 %v5851_v52  ;;  %v5890_v52 = vld [vmem:[%s9345_s10 + $0x198] sm:$0xff] }
0x2724   :  { %6832 = vmatprep.subr.mxu1 %v5850_v42 }
0x2725   :  { %6833 = vmatpush3.msra.mxu1 %v5850_v42  ;;  %v5888_v42 = vld [vmem:[%s9345_s10 + $0x188] sm:$0xff] }
0x2726   :  { %6834 = vmatprep.subr.mxu1 %v5849_v44 }
0x2727   :  { %6835 = vmatpush3.msra.mxu1 %v5849_v44  ;;  %v5885_v44 = vld [vmem:[%s9345_s10 + $0x170] sm:$0xff] }
0x2728   :  { %6837 = vmatmul.mubr.f32.vlgmr.msra.gmra.mxu1 %v4200_v63  ;;  %v5882_v63 = vld [vmem:[%s9345_s10 + $0x158] sm:$0xff] }
0x27c8   :  { %v6803_v2 = vpop.f32.mrf.mxu1 }
0x27ca   :  { %v4992_v8 = vpop.f32.mrf.mxu1 }
0x27cb   :  { %v6903_v15 = vpack.i.bf16 %v6803_v2, %v4992_v8  ;;  %v5881_v2 = vld [vmem:[%s9345_s10 + $0x150] sm:$0xff]  ;;  %v5880_v8 = vld [vmem:[%s9345_s10 + $0x148] sm:$0xff] }
0x27cd   :  { %6904 = vrot.lane.b32.xlu1 %v6903_v15, %s7147_s21  ;;  %v5879_v15 = vld [vmem:[%s9345_s10 + $0x140] sm:$0xff]  ;;  %s7151_s21 = smov [#allocation2]  }
0x27ce   :  { %s5681_s29 = sshll.u32 %s7151_s21, 4  ;;  %s5682_s29 = int_to_ptr.vmem [resolvable:$true] %s5681_s29 }
0x27cf   :  { %p7129_p1 = scmp.lt.s32.totalorder %s5682_s29, %s5682_s29 }
0x27e8   :  { %v6838_v9 = vpop.f32.mrf.mxu1 }
0x27e9   :  { %v5134_v10 = vadd.f32 %v6838_v9, %v8303_v3  ;;  %v6901_v3 = vunpack.i.l.bf16 %v6900_v16  ;;  %v5878_v9 = vld [vmem:[%s9345_s10 + $0x138] sm:$0xff]  ;;  %v5872_v16 = vld [vmem:[%s9345_s10 + $0x108] sm:$0xff] }
0x27ea   :  { %v5114_v12 = vpop.f32.mrf.mxu1 }
0x27eb   :  { %v5133_v33 = vadd.f32 %v5114_v12, %v8298_v45  ;;  %v8960_v46 = vadd.f32 %v5866_v20, %v5134_v10  ;;  %v5027_v29 = vsel %vm1545_vm4, %v5025_v4, %v6901_v3  ;;  %v5877_v12 = vld [vmem:[%s9345_s10 + $0x130] sm:$0xff]  ;;  %v5876_v10 = vld [vmem:[%s9345_s10 + $0x128] sm:$0xff] }
0x27ed   :  { %v8958_v59 = vadd.f32 %v5866_v20, %v5133_v33  ;;  %v5875_v33 = vld [vmem:[%s9345_s10 + $0x120] sm:$0xff] }
0x27ef   :  { %5153 = vadd.xlane.f32.xlu0 %v8958_v59 }
0x27f1   :  { %5155 = vadd.xlane.f32.xlu1 %v8960_v46 }
0x283f   :  { %v6905_v25 = vpop.permute.xlu1 %6904 }
0x2840   :  { %v6907_v45 = vunpack.i.h.bf16 %v6905_v25  ;;  %v6906_v57 = vunpack.i.l.bf16 %v6905_v25 }
0x2842   :  { %v5029_v60 = vsel %vm1548_vm5, %v5027_v29, %v6906_v57  ;;  %v5030_v61 = vsel %vm1548_vm5, %v5028_v31, %v6907_v45 }
0x2843   :  { %6839 = vmatprep.mubr.f32.mxu1 %v5029_v60 }
0x2844   :  { %6840 = vmatmul.mubr.f32.gmra.mxu1 %v5030_v61 }
0x2878   :  { %v5154_v6 = vpop.xlane.xlu0 %5153 }
0x2879   :  { %v5161_v55 = vmul.f32 0.0078125, %v5154_v6 }
0x287a   :  { %v5156_v53 = vpop.xlane.xlu1 %5155 }
0x287b   :  { %v5162_v14 = vmul.f32 0.0078125, %v5156_v53  ;;  %v8983_v24 = vsub.f32 %v8958_v59, %v5161_v55 }
0x287d   :  { %v8973_v7 = vsub.f32 %v8960_v46, %v5162_v14  ;;  %v5169_v13 = vmul.f32 %v8983_v24, %v8983_v24 }
0x287f   :  { %v5170_v19 = vmul.f32 %v8973_v7, %v8973_v7 }
0x2881   :  { %5175 = vadd.xlane.f32.xlu1 %v5170_v19 }
0x2904   :  { %v6841_v35 = vpop.f32.mrf.mxu1 }
0x2905   :  { %v5136_v37 = vadd.f32 %v6841_v35, %v8474_v18  ;;  %v5901_v18 = vld [vmem:[%s9345_s10 + $0x1f0] sm:$0xff] }
0x2906   :  { %v5124_v21 = vpop.f32.mrf.mxu1 }
0x2907   :  { %v5135_v23 = vadd.f32 %v5124_v21, %v8469_v0  ;;  %v8985_v28 = vadd.f32 %v5866_v20, %v5136_v37  ;;  %v5902_v0 = vld [vmem:[%s9345_s10 + $0x1f8] sm:$0xff]  ;;  %v9107_v37 = vld [vmem:[%s9344_s9 + $0x1] ss:$0 sm:$0xff] }
0x2908   :  { %5263 = vmatprep.subr.mxu0 %v5902_v0 }
0x2909   :  { %v8979_v49 = vadd.f32 %v5866_v20, %v5135_v23  ;;  %5264 = vmatpush1.msra.mxu0 %v5901_v18  ;;  %v5874_v20 = vld [vmem:[%s9345_s10 + $0x118] sm:$0xff]  ;;  %v9101_v23 = vld [vmem:[%s9343_s8 + $0x1] ss:$0 sm:$0xff] }
0x290a   :  { %5265 = vmatprep.subr.mxu0 %v5900_v36  ;;  %v5176_v32 = vpop.xlane.xlu1 %5175  ;;  %v5919_v18 = vld [vmem:[%s9347_s12 + $0x178] sm:$0xff]  ;;  %v5934_v36 = vld [vmem:[%s9347_s12 + $0x1f0] sm:$0xff] }
0x290b   :  { %5157 = vadd.xlane.f32.xlu0 %v8979_v49  ;;  %5266 = vmatpush1.msra.mxu0 %v5899_v62  ;;  %v5182_v25 = vmul.f32 0.0078125, %v5176_v32  ;;  %v5918_v62 = vld [vmem:[%s9347_s12 + $0x170] sm:$0xff] }
0x290c   :  { %5267 = vmatprep.subr.mxu0 %v5898_v54  ;;  %v5933_v54 = vld [vmem:[%s9347_s12 + $0x1e8] sm:$0xff] }
0x290d   :  { %5268 = vmatpush1.msra.mxu0 %v5897_v34  ;;  %v5186_v29 = vadd.f32 1e-05, %v5182_v25  ;;  %v5917_v34 = vld [vmem:[%s9347_s12 + $0x168] sm:$0xff] }
0x290e   :  { %5269 = vmatprep.subr.mxu0 %v5896_v51  ;;  %v5932_v51 = vld [vmem:[%s9347_s12 + $0x1e0] sm:$0xff] }
0x290f   :  { %5159 = vadd.xlane.f32.xlu0 %v8985_v28  ;;  %5270 = vmatpush1.msra.mxu0 %v5895_v11  ;;  %7076 = vrsqrt.f32 %v5186_v29  ;;  %v5916_v11 = vld [vmem:[%s9347_s12 + $0x160] sm:$0xff] }
0x2910   :  { %5271 = vmatprep.subr.mxu0 %v5894_v22  ;;  %v5931_v22 = vld [vmem:[%s9347_s12 + $0x1d8] sm:$0xff] }
0x2911   :  { %5272 = vmatpush1.msra.mxu0 %v5893_v38  ;;  %v5915_v38 = vld [vmem:[%s9347_s12 + $0x158] sm:$0xff] }
0x2912   :  { %5273 = vmatprep.subr.mxu0 %v5892_v39  ;;  %v5930_v39 = vld [vmem:[%s9347_s12 + $0x1d0] sm:$0xff] }
0x2913   :  { %5173 = vadd.xlane.f32.xlu0 %v5169_v13  ;;  %5274 = vmatpush1.msra.mxu0 %v5891_v41  ;;  %v5914_v41 = vld [vmem:[%s9347_s12 + $0x150] sm:$0xff] }
0x2914   :  { %5275 = vmatprep.subr.mxu0 %v5890_v52  ;;  %v5929_v52 = vld [vmem:[%s9347_s12 + $0x1c8] sm:$0xff] }
0x2915   :  { %5276 = vmatpush1.msra.mxu0 %v5889_v58  ;;  %v5913_v58 = vld [vmem:[%s9347_s12 + $0x148] sm:$0xff] }
0x2916   :  { %5277 = vmatprep.subr.mxu0 %v5888_v42  ;;  %v5928_v42 = vld [vmem:[%s9347_s12 + $0x1c0] sm:$0xff] }
0x2917   :  { %5278 = vmatpush1.msra.mxu0 %v5887_v40  ;;  %v5912_v40 = vld [vmem:[%s9347_s12 + $0x140] sm:$0xff] }
0x2918   :  { %5279 = vmatprep.subr.mxu0 %v5886_v43  ;;  %v5927_v43 = vld [vmem:[%s9347_s12 + $0x1b8] sm:$0xff] }
0x2919   :  { %5280 = vmatpush1.msra.mxu0 %v5885_v44  ;;  %v5911_v44 = vld [vmem:[%s9347_s12 + $0x138] sm:$0xff] }
0x291a   :  { %5281 = vmatprep.subr.mxu0 %v5884_v50  ;;  %v5926_v50 = vld [vmem:[%s9347_s12 + $0x1b0] sm:$0xff] }
0x291b   :  { %5282 = vmatpush1.msra.mxu0 %v5883_v56  ;;  %v5910_v56 = vld [vmem:[%s9347_s12 + $0x130] sm:$0xff] }
0x291c   :  { %5283 = vmatprep.subr.mxu0 %v5882_v63  ;;  %v7077_v19 = vpop.eup %7076  ;;  %v5925_v63 = vld [vmem:[%s9347_s12 + $0x1a8] sm:$0xff] }
0x291d   :  { %5284 = vmatpush1.msra.mxu0 %v5881_v2  ;;  %v5194_v21 = vmul.f32 %v7077_v19, %v8973_v7  ;;  %v5909_v2 = vld [vmem:[%s9347_s12 + $0x128] sm:$0xff] }
0x291e   :  { %5285 = vmatprep.subr.mxu0 %v5880_v8  ;;  %v5924_v8 = vld [vmem:[%s9347_s12 + $0x1a0] sm:$0xff] }
0x291f   :  { %5286 = vmatpush1.msra.mxu0 %v5879_v15  ;;  %v5204_v0 = vmul.f32 %v9101_v23, %v5194_v21  ;;  %v5908_v15 = vld [vmem:[%s9347_s12 + $0x120] sm:$0xff] }
0x2920   :  { %5287 = vmatprep.subr.mxu0 %v5878_v9  ;;  %v5923_v9 = vld [vmem:[%s9347_s12 + $0x198] sm:$0xff] }
0x2921   :  { %5288 = vmatpush1.msra.mxu0 %v5877_v12  ;;  %v5214_v7 = vadd.f32 %v9107_v37, %v5204_v0  ;;  %v5907_v12 = vld [vmem:[%s9347_s12 + $0x118] sm:$0xff] }
0x2922   :  { %5289 = vmatprep.subr.mxu0 %v5876_v10  ;;  %v5922_v10 = vld [vmem:[%s9347_s12 + $0x190] sm:$0xff] }
0x2923   :  { %5290 = vmatpush1.msra.mxu0 %v5875_v33  ;;  %v5906_v33 = vld [vmem:[%s9347_s12 + $0x110] sm:$0xff] }
0x2924   :  { %5291 = vmatprep.subr.mxu0 %v5874_v20  ;;  %v5921_v20 = vld [vmem:[%s9347_s12 + $0x188] sm:$0xff] }
0x2925   :  { %5292 = vmatpush1.msra.mxu0 %v5873_v47  ;;  %v5905_v47 = vld [vmem:[%s9347_s12 + $0x108] sm:$0xff] }
0x2926   :  { %5293 = vmatprep.subr.mxu0 %v5872_v16  ;;  %v5920_v16 = vld [vmem:[%s9347_s12 + $0x180] sm:$0xff] }
0x2927   :  { %5294 = vmatpush1.msra.mxu0 %v5871_v17  ;;  %v5904_v17 = vld [vmem:[%s9347_s12 + $0x100] sm:$0xff] }
0x2994   :  { %v5158_v5 = vpop.xlane.xlu0 %5157 }
0x2995   :  { %v5163_v3 = vmul.f32 0.0078125, %v5158_v5 }
0x2997   :  { %v9087_v45 = vsub.f32 %v8979_v49, %v5163_v3 }
0x2998   :  { %v5160_v57 = vpop.xlane.xlu0 %5159 }
0x2999   :  { %v5164_v4 = vmul.f32 0.0078125, %v5160_v57  ;;  %v5171_v48 = vmul.f32 %v9087_v45, %v9087_v45 }
0x299b   :  { %v9092_v31 = vsub.f32 %v8985_v28, %v5164_v4  ;;  %5177 = vadd.xlane.f32.xlu0 %v5171_v48 }
0x299c   :  { %v5174_v60 = vpop.xlane.xlu0 %5173 }
0x299d   :  { %v5181_v61 = vmul.f32 0.0078125, %v5174_v60  ;;  %v5172_v53 = vmul.f32 %v9092_v31, %v9092_v31 }
0x299f   :  { %v5185_v14 = vadd.f32 1e-05, %v5181_v61  ;;  %5179 = vadd.xlane.f32.xlu1 %v5172_v53 }
0x29a1   :  { %7078 = vrsqrt.f32 %v5185_v14 }
0x29ae   :  { %v7079_v35 = vpop.eup %7078 }
0x29af   :  { %v5193_v6 = vmul.f32 %v7079_v35, %v8983_v24  ;;  %v5935_v24 = vld [vmem:[%s9347_s12 + $0x1f8] sm:$0xff] }
0x29b0   :  { %6270 = vmatprep.subr.mxu1 %v5935_v24 }
0x29b1   :  { %v5203_v55 = vmul.f32 %v9101_v23, %v5193_v6  ;;  %6271 = vmatpush3.msra.mxu1 %v5919_v18 }
0x29b2   :  { %6272 = vmatprep.subr.mxu1 %v5934_v36 }
0x29b3   :  { %v5213_v13 = vadd.f32 %v9107_v37, %v5203_v55  ;;  %6273 = vmatpush3.msra.mxu1 %v5918_v62 }
0x29b4   :  { %6274 = vmatprep.subr.mxu1 %v5933_v54 }
0x29b5   :  { %5328 = vmatmul.mubr.f32.vlgmr.msra.gmra.mxu0 %v5213_v13  ;;  %6275 = vmatpush3.msra.mxu1 %v5917_v34 }
0x29b6   :  { %5333 = vmatprep.mubr.f32.mxu0 %v7146_v1  ;;  %6276 = vmatprep.subr.mxu1 %v5932_v51 }
0x29b7   :  { %6277 = vmatpush3.msra.mxu1 %v5916_v11 }
0x29b8   :  { %6278 = vmatprep.subr.mxu1 %v5931_v22 }
0x29b9   :  { %5334 = vmatmul.mubr.f32.gmra.mxu0 %v5214_v7  ;;  %6279 = vmatpush3.msra.mxu1 %v5915_v38 }
0x29ba   :  { %5339 = vmatprep.mubr.f32.mxu0 %v7146_v1  ;;  %6280 = vmatprep.subr.mxu1 %v5930_v39 }
0x29bb   :  { %6281 = vmatpush3.msra.mxu1 %v5914_v41 }
0x29bc   :  { %6282 = vmatprep.subr.mxu1 %v5929_v52 }
0x29bd   :  { %6283 = vmatpush3.msra.mxu1 %v5913_v58 }
0x29be   :  { %6284 = vmatprep.subr.mxu1 %v5928_v42 }
0x29bf   :  { %6285 = vmatpush3.msra.mxu1 %v5912_v40 }
0x29c0   :  { %6286 = vmatprep.subr.mxu1 %v5927_v43 }
0x29c1   :  { %6287 = vmatpush3.msra.mxu1 %v5911_v44 }
0x29c2   :  { %6288 = vmatprep.subr.mxu1 %v5926_v50 }
0x29c3   :  { %6289 = vmatpush3.msra.mxu1 %v5910_v56 }
0x29c4   :  { %6290 = vmatprep.subr.mxu1 %v5925_v63  ;;  %v5576_v63 = vld [vmem:[%s9352_s17 + $0xf8] sm:$0xff] }
0x29c5   :  { %6291 = vmatpush3.msra.mxu1 %v5909_v2  ;;  %v5575_v2 = vld [vmem:[%s9352_s17 + $0xf0] sm:$0xff]  ;;  %5589 = vmatprep.subr.mxu0 %v5576_v63 }
0x29c6   :  { %6292 = vmatprep.subr.mxu1 %v5924_v8  ;;  %5590 = vmatpush1.msra.mxu0 %v5575_v2  ;;  %v5547_v63 = vld [vmem:[%s9352_s17 + $0x10] sm:$0xff]  ;;  %v5546_v2 = vld [vmem:[%s9352_s17 + $0x8] sm:$0xff] }
0x29c7   :  { %6293 = vmatpush3.msra.mxu1 %v5908_v15 }
0x29c8   :  { %6294 = vmatprep.subr.mxu1 %v5923_v9 }
0x29c9   :  { %6295 = vmatpush3.msra.mxu1 %v5907_v12 }
0x29ca   :  { %6296 = vmatprep.subr.mxu1 %v5922_v10 }
0x29cb   :  { %6297 = vmatpush3.msra.mxu1 %v5906_v33 }
0x29cc   :  { %6298 = vmatprep.subr.mxu1 %v5921_v20 }
0x29cd   :  { %6299 = vmatpush3.msra.mxu1 %v5905_v47 }
0x29ce   :  { %6300 = vmatprep.subr.mxu1 %v5920_v16 }
0x29cf   :  { %6301 = vmatpush3.msra.mxu1 %v5904_v17 }
0x2a24   :  { %v5178_v32 = vpop.xlane.xlu0 %5177 }
0x2a25   :  { %v5183_v5 = vmul.f32 0.0078125, %v5178_v32 }
0x2a27   :  { %v5187_v3 = vadd.f32 1e-05, %v5183_v5 }
0x2a28   :  { %v5180_v25 = vpop.xlane.xlu1 %5179 }
0x2a29   :  { %7080 = vrsqrt.f32 %v5187_v3  ;;  %v5184_v57 = vmul.f32 0.0078125, %v5180_v25 }
0x2a2b   :  { %v5188_v4 = vadd.f32 1e-05, %v5184_v57 }
0x2a2d   :  { %7082 = vrsqrt.f32 %v5188_v4 }
0x2a36   :  { %v7081_v48 = vpop.eup %7080 }
0x2a37   :  { %v5195_v29 = vmul.f32 %v7081_v48, %v9087_v45  ;;  %v5903_v45 = vld [vmem:[%s9346_s11 + $0x2] sm:$0x3] }
0x2a38   :  { %v5256_v6 = vrot.slane %v5903_v45, %v7625_v27  ;;  %v5260_v21 = vrot.slane %v5903_v45, %v7631_v30 }
0x2a39   :  { %v5205_v60 = vmul.f32 %v9101_v23, %v5195_v29 }
0x2a3a   :  { %v7083_v61 = vpop.eup %7082 }
0x2a3b   :  { %v5215_v53 = vadd.f32 %v9107_v37, %v5205_v60  ;;  %v5196_v14 = vmul.f32 %v7083_v61, %v9092_v31 }
0x2a3d   :  { %5340 = vmatmul.mubr.f32.gmra.mxu0 %v5215_v53  ;;  %v5206_v19 = vmul.f32 %v9101_v23, %v5196_v14 }
0x2a3e   :  { %5345 = vmatprep.mubr.f32.mxu0 %v7146_v1 }
0x2a3f   :  { %v5216_v35 = vadd.f32 %v9107_v37, %v5206_v19 }
0x2a41   :  { %5346 = vmatmul.mubr.f32.gmra.mxu0 %v5216_v35 }
0x2a42   :  { %5653 = vmatprep.mubr.f32.mxu0 %v7146_v1 }
0x2a75   :  { %v5329_v55 = vpop.f32.mrf.mxu0 }
0x2a76   :  { %v5330_v31 = vadd.f32 %v5329_v55, %v5256_v6 }
0x2a77   :  { %v5331_v13 = vpop.f32.mrf.mxu0 }
0x2a78   :  { %v5360_v0 = vmul.f32 0.70710677, %v5330_v31  ;;  %v5332_v23 = vadd.f32 %v5331_v13, %v5260_v21  ;;  %v5352_v39 = vmul.f32 0.5, %v5330_v31  ;;  %v5574_v31 = vld [vmem:[%s9352_s17 + $0xe8] sm:$0xff]  ;;  %v5573_v13 = vld [vmem:[%s9352_s17 + $0xe0] sm:$0xff] }
0x2a79   :  { %v5335_v7 = vpop.f32.mrf.mxu0  ;;  %5591 = vmatprep.subr.mxu0 %v5574_v31 }
0x2a7a   :  { %7084 = verf.f32 %v5360_v0  ;;  %v5361_v24 = vmul.f32 0.70710677, %v5332_v23  ;;  %v5336_v37 = vadd.f32 %v5335_v7, %v5256_v6  ;;  %v5353_v11 = vmul.f32 0.5, %v5332_v23  ;;  %5592 = vmatpush1.msra.mxu0 %v5573_v13  ;;  %v5572_v0 = vld [vmem:[%s9352_s17 + $0xd8] sm:$0xff]  ;;  %v5571_v23 = vld [vmem:[%s9352_s17 + $0xd0] sm:$0xff]  ;;  %v5570_v7 = vld [vmem:[%s9352_s17 + $0xc8] sm:$0xff] }
0x2a7b   :  { %v5337_v18 = vpop.f32.mrf.mxu0  ;;  %5593 = vmatprep.subr.mxu0 %v5572_v0 }
0x2a7c   :  { %7086 = verf.f32 %v5361_v24  ;;  %v5362_v1 = vmul.f32 0.70710677, %v5336_v37  ;;  %v5338_v36 = vadd.f32 %v5337_v18, %v5260_v21  ;;  %v5354_v44 = vmul.f32 0.5, %v5336_v37  ;;  %5594 = vmatpush1.msra.mxu0 %v5571_v23  ;;  %v5569_v24 = vld [vmem:[%s9352_s17 + $0xc0] sm:$0xff]  ;;  %v5568_v37 = vld [vmem:[%s9352_s17 + $0xb8] sm:$0xff]  ;;  %v5567_v18 = vld [vmem:[%s9352_s17 + $0xb0] sm:$0xff] }
0x2a7d   :  { %5595 = vmatprep.subr.mxu0 %v5570_v7 }
0x2a7e   :  { %7088 = verf.f32 %v5362_v1  ;;  %v5363_v62 = vmul.f32 0.70710677, %v5338_v36  ;;  %v5355_v40 = vmul.f32 0.5, %v5338_v36  ;;  %5596 = vmatpush1.msra.mxu0 %v5569_v24  ;;  %v5566_v1 = vld [vmem:[%s9352_s17 + $0xa8] sm:$0xff]  ;;  %v5565_v36 = vld [vmem:[%s9352_s17 + $0xa0] sm:$0xff] }
0x2a7f   :  { %5597 = vmatprep.subr.mxu0 %v5568_v37 }
0x2a80   :  { %7090 = verf.f32 %v5363_v62  ;;  %5598 = vmatpush1.msra.mxu0 %v5567_v18  ;;  %v5564_v62 = vld [vmem:[%s9352_s17 + $0x98] sm:$0xff] }
0x2a81   :  { %5599 = vmatprep.subr.mxu0 %v5566_v1  ;;  %v7150_v1 = vmov 1983009808  }
0x2a82   :  { %5600 = vmatpush1.msra.mxu0 %v5565_v36  ;;  %v5577_v36 = vld [vmem:[%s9353_s18] sm:$0x3]  ;;  %s7124_s18 = scalar_lea.vmem %s5682_s29, 64 }
0x2a83   :  { %5601 = vmatprep.subr.mxu0 %v5564_v62  ;;  %p7125_p0 = scmp.ne.s32.totalorder %s5682_s29, %s7124_s18  ;;  %p7130_p2 = scmp.lt.s32.totalorder %s7124_s18, %s7124_s18 }
0x2a85   :  { %p7131_p3 = por %p7130_p2, %p7129_p1 }
0x2a87   :  { %v7085_v54 = vpop.eup %7084  ;;  %p7132_p4 = pnand %p7131_p3, %p7125_p0 }
0x2a88   :  { %v5376_v51 = vadd.f32 1.0, %v7085_v54  ;;  %v5563_v54 = vld [vmem:[%s9352_s17 + $0x90] sm:$0xff] }
0x2a89   :  { %v7087_v34 = vpop.eup %7086  ;;  %5602 = vmatpush1.msra.mxu0 %v5563_v54  ;;  %v5582_v54 = vrot.slane %v5577_v36, %v7625_v27 }
0x2a8a   :  { %v5377_v22 = vadd.f32 1.0, %v7087_v34  ;;  %v5384_v58 = vmul.f32 %v5376_v51, %v5352_v39  ;;  %v5562_v34 = vld [vmem:[%s9352_s17 + $0x88] sm:$0xff]  ;;  %v5561_v51 = vld [vmem:[%s9352_s17 + $0x80] sm:$0xff] }
0x2a8b   :  { %v7089_v38 = vpop.eup %7088  ;;  %5603 = vmatprep.subr.mxu0 %v5562_v34  ;;  %v5557_v39 = vld [vmem:[%s9352_s17 + $0x60] sm:$0xff]  ;;  %v5586_v34 = vrot.slane %v5577_v36, %v7631_v30 }
0x2a8c   :  { %v5385_v41 = vmul.f32 %v5377_v22, %v5353_v11  ;;  %v5378_v42 = vadd.f32 1.0, %v7089_v38  ;;  %5604 = vmatpush1.msra.mxu0 %v5561_v51  ;;  %v5560_v11 = vld [vmem:[%s9352_s17 + $0x78] sm:$0xff]  ;;  %v5559_v22 = vld [vmem:[%s9352_s17 + $0x70] sm:$0xff]  ;;  %v5558_v38 = vld [vmem:[%s9352_s17 + $0x68] sm:$0xff] }
0x2a8d   :  { %v7091_v52 = vpop.eup %7090  ;;  %5605 = vmatprep.subr.mxu0 %v5560_v11 }
0x2a8e   :  { %5489 = vmatprep.mubr.f32.mxu1 %v5385_v41  ;;  %v5379_v43 = vadd.f32 1.0, %v7091_v52  ;;  %v5386_v56 = vmul.f32 %v5378_v42, %v5354_v44  ;;  %5606 = vmatpush1.msra.mxu0 %v5559_v22  ;;  %v5556_v41 = vld [vmem:[%s9352_s17 + $0x58] sm:$0xff]  ;;  %v5555_v52 = vld [vmem:[%s9352_s17 + $0x50] sm:$0xff]  ;;  %v5553_v42 = vld [vmem:[%s9352_s17 + $0x40] sm:$0xff] }
0x2a8f   :  { %5490 = vmatmul.mubr.f32.vlgmr.msra.gmra.mxu1 %v5384_v58  ;;  %5607 = vmatprep.subr.mxu0 %v5558_v38  ;;  %v5554_v58 = vld [vmem:[%s9352_s17 + $0x48] sm:$0xff] }
0x2a90   :  { %v5387_v50 = vmul.f32 %v5379_v43, %v5355_v40  ;;  %5608 = vmatpush1.msra.mxu0 %v5557_v39  ;;  %v5552_v40 = vld [vmem:[%s9352_s17 + $0x38] sm:$0xff]  ;;  %v5551_v43 = vld [vmem:[%s9352_s17 + $0x30] sm:$0xff]  ;;  %v5550_v44 = vld [vmem:[%s9352_s17 + $0x28] sm:$0xff] }
0x2a91   :  { %5609 = vmatprep.subr.mxu0 %v5556_v41 }
0x2a92   :  { %5494 = vmatprep.mubr.f32.mxu1 %v5387_v50  ;;  %5610 = vmatpush1.msra.mxu0 %v5555_v52  ;;  %v5549_v50 = vld [vmem:[%s9352_s17 + $0x20] sm:$0xff] }
0x2a93   :  { %5495 = vmatmul.mubr.f32.gmra.mxu1 %v5386_v56  ;;  %5611 = vmatprep.subr.mxu0 %v5554_v58  ;;  %v5548_v56 = vld [vmem:[%s9352_s17 + $0x18] sm:$0xff] }
0x2a94   :  { %5612 = vmatpush1.msra.mxu0 %v5553_v42 }
0x2a95   :  { %5613 = vmatprep.subr.mxu0 %v5552_v40 }
0x2a96   :  { %5614 = vmatpush1.msra.mxu0 %v5551_v43 }
0x2a97   :  { %5615 = vmatprep.subr.mxu0 %v5550_v44 }
0x2a98   :  { %5616 = vmatpush1.msra.mxu0 %v5549_v50 }
0x2a99   :  { %5617 = vmatprep.subr.mxu0 %v5548_v56 }
0x2a9a   :  { %5618 = vmatpush1.msra.mxu0 %v5547_v63 }
0x2a9b   :  { %5619 = vmatprep.subr.mxu0 %v5546_v2 }
0x2afd   :  { %v5341_v8 = vpop.f32.mrf.mxu0 }
0x2afe   :  { %v5342_v15 = vadd.f32 %v5341_v8, %v5256_v6  ;;  %v5545_v8 = vld [vmem:[%s9352_s17] sm:$0xff] }
0x2aff   :  { %v5343_v9 = vpop.f32.mrf.mxu0  ;;  %5620 = vmatpush1.msra.mxu0 %v5545_v8 }
0x2b00   :  { %v5364_v12 = vmul.f32 0.70710677, %v5342_v15  ;;  %v5344_v10 = vadd.f32 %v5343_v9, %v5260_v21  ;;  %v5356_v60 = vmul.f32 0.5, %v5342_v15 }
0x2b01   :  { %v5347_v33 = vpop.f32.mrf.mxu0 }
0x2b02   :  { %7092 = verf.f32 %v5364_v12  ;;  %v5365_v20 = vmul.f32 0.70710677, %v5344_v10  ;;  %v5348_v47 = vadd.f32 %v5347_v33, %v5256_v6  ;;  %v5357_v4 = vmul.f32 0.5, %v5344_v10 }
0x2b03   :  { %v5349_v16 = vpop.f32.mrf.mxu0 }
0x2b04   :  { %7094 = verf.f32 %v5365_v20  ;;  %v5366_v17 = vmul.f32 0.70710677, %v5348_v47  ;;  %v5350_v32 = vadd.f32 %v5349_v16, %v5260_v21  ;;  %v5358_v6 = vmul.f32 0.5, %v5348_v47 }
0x2b06   :  { %7096 = verf.f32 %v5366_v17  ;;  %v5367_v5 = vmul.f32 0.70710677, %v5350_v32  ;;  %v5359_v35 = vmul.f32 0.5, %v5350_v32  ;;  %v5937_v17 = vld [vmem:[%s9348_s13 + $0x1] ss:$0 sm:$0xff] }
0x2b08   :  { %7098 = verf.f32 %v5367_v5 }
0x2b0f   :  { %v7093_v3 = vpop.eup %7092 }
0x2b10   :  { %v5380_v57 = vadd.f32 1.0, %v7093_v3 }
0x2b11   :  { %v7095_v25 = vpop.eup %7094 }
0x2b12   :  { %v5381_v48 = vadd.f32 1.0, %v7095_v25  ;;  %v5388_v14 = vmul.f32 %v5380_v57, %v5356_v60 }
0x2b13   :  { %v7097_v29 = vpop.eup %7096 }
0x2b14   :  { %v5389_v61 = vmul.f32 %v5381_v48, %v5357_v4  ;;  %v5382_v19 = vadd.f32 1.0, %v7097_v29 }
0x2b15   :  { %v7099_v53 = vpop.eup %7098 }
0x2b16   :  { %5499 = vmatprep.mubr.f32.mxu1 %v5389_v61  ;;  %v5383_v45 = vadd.f32 1.0, %v7099_v53  ;;  %v5390_v55 = vmul.f32 %v5382_v19, %v5358_v6 }
0x2b17   :  { %5500 = vmatmul.mubr.f32.gmra.mxu1 %v5388_v14 }
0x2b18   :  { %v5391_v21 = vmul.f32 %v5383_v45, %v5359_v35 }
0x2b1a   :  { %5504 = vmatprep.mubr.f32.mxu1 %v5391_v21 }
0x2b1b   :  { %5505 = vmatmul.mubr.f32.gmra.mxu1 %v5390_v55 }
0x2b4f   :  { %v6302_v15 = vpop.f32.mrf.mxu1 }
0x2b51   :  { %v6303_v9 = vpop.f32.mrf.mxu1 }
0x2b52   :  { %v6304_v20 = vadd.f32 %v6303_v9, %v6302_v15 }
0x2b53   :  { %v6305_v12 = vpop.f32.mrf.mxu1 }
0x2b54   :  { %v5510_v16 = vadd.f32 %v6304_v20, %v8958_v59 }
0x2b55   :  { %v6306_v10 = vpop.f32.mrf.mxu1 }
0x2b56   :  { %v6307_v33 = vadd.f32 %v6306_v10, %v6305_v12  ;;  %v5522_v5 = vadd.f32 %v5937_v17, %v5510_v16 }
0x2b58   :  { %v5511_v47 = vadd.f32 %v6307_v33, %v8960_v46 }
0x2b5a   :  { %v5523_v32 = vadd.f32 %v5937_v17, %v5511_v47 }
0x2b5c   :  { %v5526_v3 = vadd.f32 %v5523_v32, %v5522_v5 }
0x2b5e   :  { %v5527_v4 = vrot.slane %v5526_v3, 4 }
0x2b60   :  { %v5528_v61 = vadd.f32 %v5527_v4, %v5526_v3 }
0x2b62   :  { %v5529_v59 = vrot.slane %v5528_v61, 2 }
0x2b64   :  { %v5530_v6 = vadd.f32 %v5529_v59, %v5528_v61 }
0x2b66   :  { %v5531_v31 = vrot.slane %v5530_v6, 1 }
0x2b68   :  { %v5532_v7 = vadd.f32 %v5531_v31, %v5530_v6 }
0x2b6a   :  { %v5534_v37 = vmul.f32 0.0625, %v5532_v7 }
0x2bd7   :  { %v6308_v25 = vpop.f32.mrf.mxu1 }
0x2bd9   :  { %v6309_v57 = vpop.f32.mrf.mxu1 }
0x2bda   :  { %v6310_v48 = vadd.f32 %v6309_v57, %v6308_v25 }
0x2bdb   :  { %v6311_v29 = vpop.f32.mrf.mxu1 }
0x2bdc   :  { %v5512_v53 = vadd.f32 %v6310_v48, %v8979_v49 }
0x2bdd   :  { %v6312_v60 = vpop.f32.mrf.mxu1 }
0x2bde   :  { %v6313_v14 = vadd.f32 %v6312_v60, %v6311_v29  ;;  %v5524_v19 = vadd.f32 %v5937_v17, %v5512_v53 }
0x2be0   :  { %v5513_v46 = vadd.f32 %v6313_v14, %v8985_v28  ;;  %v5664_v28 = vunpack.c.l.s4 %v7150_v1 }
0x2be2   :  { %v5525_v35 = vadd.f32 %v5937_v17, %v5513_v46  ;;  %v5665_v62 = vunpack.c.0.s8 %v5664_v28 }
0x2be4   :  { %v5535_v45 = vadd.f32 %v5525_v35, %v5524_v19  ;;  %v5668_v22 = vsub.s32 %v5665_v62, %v7622_v26 }
0x2be6   :  { %v5536_v21 = vrot.slane %v5535_v45, 4 }
0x2be8   :  { %v5537_v55 = vadd.f32 %v5536_v21, %v5535_v45 }
0x2bea   :  { %v5538_v13 = vrot.slane %v5537_v55, 2 }
0x2bec   :  { %v5539_v0 = vadd.f32 %v5538_v13, %v5537_v55 }
0x2bee   :  { %v5540_v23 = vrot.slane %v5539_v0, 1 }
0x2bf0   :  { %v5541_v24 = vadd.f32 %v5540_v23, %v5539_v0 }
0x2bf2   :  { %v5542_v18 = vmul.f32 0.0625, %v5541_v24 }
0x2bf4   :  { %v5544_v49 = vsel %vm5543_vm6, %v5534_v37, %v5542_v18 }
0x2bf5   :  { %5654 = vmatmul.mubr.f32.vlgmr.msra.gmra.mxu0 %v5544_v49 }
0x2cb5   :  { %v5655_v51 = vpop.f32.mrf.mxu0 }
0x2cb6   :  { %v5656_v38 = vadd.f32 %v5655_v51, %v5582_v54 }
0x2cb7   :  { %v5657_v11 = vpop.f32.mrf.mxu0 }
0x2cb8   :  { %v5658_v39 = vadd.f32 %v5657_v11, %v5586_v34 }
0x2cba   :  { %v5662_v41 = vcombine.low %v5656_v38, %v5658_v39 }
0x2cbc   :  { %v5669_v52 = vrot.slane %v5662_v41, %v5668_v22 }
0x2cbe   :  { %5674 = vst.msk [vmem:[#allocation2] sm:$0xf] %vm5673_vm9, %v5669_v52 }
0x2cbf   :  { %7135 = shalt.err (!%p7132_p4)
}
0x2cc0   :  { %5684 = dma.vmem_to_hbm [thread:$0]  %s5682_s29, 64, %s9354_s19, [#allocation3]  }
0x2cc1   :  { %7144 = dma.done.wait [#allocation3], 64  }
0x2cc2   :  { %7145 = vsyncadd [#allocation3], 4294967232 }
0x2cc3   :  { %5688 = vsyncpa [#allocation3], 1 }

</bundles_post_ra>
